<compile_context>
chip_gen: v6e
topology: v6e:2x2x1
jax: 0.10.0
libtpu: 0.0.40
codegen_flags: <defaults>
</compile_context>

<pallas_src>
import functools

import jax
import jax.numpy as jnp
import numpy as np
from jax import lax
from jax.experimental import pallas as pl
from jax.experimental.pallas import tpu as pltpu

F32 = jnp.float32
VMEM_SPEC = pl.BlockSpec(memory_space=pltpu.MemorySpace.VMEM)


def _silu(x):
    return x * jax.nn.sigmoid(x)


def _scatter_rows(rr, m):
    # unsorted_segment_sum(m, row, N) == rr.T @ m, expressed as a transposed
    # MXU contraction (no [N, E] transpose materialized or DMA'd).
    return lax.dot_general(
        rr, m, dimension_numbers=(((0,), (0,)), ((), ())),
        preferred_element_type=F32)


# ---------------------------------------------------------------------------
# Fused Pallas kernel: embedding_in + n_layers x E_GCL
# ---------------------------------------------------------------------------
def _egnn_fused_kernel(
    x_ref, coord_ref, rr_ref, rc_ref, invc_ref,
    wemb_ref, bemb_ref,
    we1_ref, we1r_ref, be1_ref, we2_ref, be2_ref,
    wn1_ref, bn1_ref, wn2_ref, bn2_ref,
    wc1_ref, bc1_ref, wc2_ref,
    h_out_ref, coord_out_ref,
    *, n_layers: int,
):
    rr = rr_ref[...]            # [E, N]  one-hot of `row`
    rc = rc_ref[...]            # [E, N]  one-hot of `col`
    coord = coord_ref[...]      # [N, CP] (xyz padded with zeros)
    invc = invc_ref[...]        # [N, 1]  1 / clamp(degree, 1)

    # ---- embedding_in ----
    h = jnp.dot(x_ref[...], wemb_ref[...],
                preferred_element_type=F32) + bemb_ref[...]       # [N, H]

    # ---- coord2radial (hoisted: coord is constant until the final update) ----
    c_row = jnp.dot(rr, coord, preferred_element_type=F32)
    c_col = jnp.dot(rc, coord, preferred_element_type=F32)
    coord_diff = c_row - c_col                                     # [E, CP]
    radial = jnp.sum(coord_diff * coord_diff, axis=1, keepdims=True)  # [E, 1]

    for i in range(n_layers):
        # ---- edge_model: edge_mlp(cat([h[row], h[col], radial])) ----
        h_row = jnp.dot(rr, h, preferred_element_type=F32)         # h[row]
        h_col = jnp.dot(rc, h, preferred_element_type=F32)         # h[col]
        hh = jnp.concatenate([h_row, h_col], axis=1)               # [E, 2H]
        pre1 = (jnp.dot(hh, we1_ref[i], preferred_element_type=F32)
                + radial * we1r_ref[i]                             # radial column of W1
                + be1_ref[i])
        m1 = _silu(pre1)
        edge_feat = _silu(
            jnp.dot(m1, we2_ref[i], preferred_element_type=F32) + be2_ref[i])

        # ---- coord_model (last E_GCL layer only) ----
        if i == n_layers - 1:
            c1 = _silu(jnp.dot(edge_feat, wc1_ref[...],
                               preferred_element_type=F32) + bc1_ref[...])
            # final coord linear: out_features=1, no bias; weight stored as [1, H]
            scal = jnp.sum(c1 * wc2_ref[...], axis=1, keepdims=True)   # [E, 1]
            trans = coord_diff * scal                                   # [E, CP]
            agg_c = _scatter_rows(rr, trans)                            # segment sum
            coord = coord + agg_c * invc                                # segment mean

        # ---- node_model: node_mlp(cat([h, segment_sum(edge_feat, row)])) ----
        agg_h = _scatter_rows(rr, edge_feat)                       # [N, H]
        hcat = jnp.concatenate([h, agg_h], axis=1)                 # [N, 2H]
        n1 = _silu(jnp.dot(hcat, wn1_ref[i], preferred_element_type=F32)
                   + bn1_ref[i])
        out = jnp.dot(n1, wn2_ref[i], preferred_element_type=F32) + bn2_ref[i]

        # residual (use_layer_norm=False so h0 == h)
        h = h + out

    h_out_ref[...] = h
    coord_out_ref[...] = coord


# ---------------------------------------------------------------------------
# Python wrapper
# ---------------------------------------------------------------------------
def _stack_layer_params(layer_params):
    def stack(idx):
        return jnp.stack([p[idx] for p in layer_params], axis=0)
    we1s, we1rs, be1s = stack(0), stack(1), stack(2)
    we2s, be2s = stack(3), stack(4)
    wn1s, bn1s, wn2s, bn2s = stack(5), stack(6), stack(7), stack(8)
    # coord MLP weights are only used by the final layer in EGNN_last.forward
    wc1, bc1, wc2 = layer_params[-1][9], layer_params[-1][10], layer_params[-1][11]
    return (we1s, we1rs, be1s, we2s, be2s, wn1s, bn1s, wn2s, bn2s, wc1, bc1, wc2)


def egnn_last_forward(h_in, x_in, rows, cols, emb_params, layer_params, n_layers):
    n = h_in.shape[0]
    hidden = emb_params[0].shape[1]
    coord_pad = 8  # pad xyz (3) -> 8 lanes; padded lanes stay identically zero

    rr = jax.nn.one_hot(rows, n, dtype=F32)                 # [E, N]
    rc = jax.nn.one_hot(cols, n, dtype=F32)                 # [E, N]

    # degree reciprocal 1 / clamp(count, 1): constant for a given edge list
    deg = jnp.sum(rr, axis=0)                               # [N]
    invc = (1.0 / jnp.maximum(deg, 1.0)).reshape(n, 1)      # [N, 1]

    coord_p = jnp.pad(x_in.astype(F32),
                      ((0, 0), (0, coord_pad - x_in.shape[1])))

    (we1s, we1rs, be1s, we2s, be2s,
     wn1s, bn1s, wn2s, bn2s, wc1, bc1, wc2) = _stack_layer_params(layer_params)

    inputs = (h_in.astype(F32), coord_p, rr, rc, invc,
              emb_params[0], emb_params[1],
              we1s, we1rs, be1s, we2s, be2s,
              wn1s, bn1s, wn2s, bn2s,
              wc1, bc1, wc2)

    h_out, coord_out = pl.pallas_call(
        functools.partial(_egnn_fused_kernel, n_layers=n_layers),
        out_shape=(
            jax.ShapeDtypeStruct((n, hidden), F32),
            jax.ShapeDtypeStruct((n, coord_pad), F32),
        ),
        in_specs=[VMEM_SPEC] * len(inputs),
        out_specs=(VMEM_SPEC, VMEM_SPEC),
    )(*inputs)
    return h_out, coord_out[:, :3]


# ---------------------------------------------------------------------------
# Deterministic parameter initialization (shapes follow the nn.Module __init__)
# ---------------------------------------------------------------------------
def _init_linear(key, fan_in, fan_out, scale=None):
    if scale is None:
        scale = 1.0 / np.sqrt(fan_in)
    kw, kb = jax.random.split(key)
    w = jax.random.uniform(kw, (fan_in, fan_out), minval=-scale, maxval=scale,
                           dtype=F32)
    b = jax.random.uniform(kb, (1, fan_out), minval=-scale, maxval=scale,
                           dtype=F32)
    return w, b


def init_egcl_params(key, hidden_nf):
    h = hidden_nf
    keys = jax.random.split(key, 6)
    # edge_mlp: Linear(2H+1, H) -> SiLU -> Linear(H, H) -> SiLU
    we1, be1 = _init_linear(keys[0], 2 * h + 1, h)
    we1hh, we1r = we1[: 2 * h], we1[2 * h: 2 * h + 1]       # [2H,H], [1,H]
    we2, be2 = _init_linear(keys[1], h, h)
    # node_mlp: Linear(2H, H) -> SiLU -> Linear(H, H)
    wn1, bn1 = _init_linear(keys[2], 2 * h, h)
    wn2, bn2 = _init_linear(keys[3], h, h)
    # coord_mlp: Linear(H, H) -> SiLU -> Linear(H, 1, bias=False) [xavier gain 1e-3]
    wc1, bc1 = _init_linear(keys[4], h, h)
    xav = 0.001 * np.sqrt(6.0 / (h + 1))
    wc2 = jax.random.uniform(keys[5], (1, h), minval=-xav, maxval=xav, dtype=F32)
    return (we1hh, we1r, be1, we2, be2,
            wn1, bn1, wn2, bn2,
            wc1, bc1, wc2)


# ---------------------------------------------------------------------------
if __name__ == "__main__":
    N_NODES = 8
    IN_NODE_NF = 4
    HIDDEN_NF = 32
    N_LAYERS = 4

    key = jax.random.PRNGKey(0)
    k_h, k_x, k_emb, k_layers = jax.random.split(key, 4)

    h_in = jax.random.normal(k_h, (N_NODES, IN_NODE_NF), dtype=F32)
    x_in = jax.random.normal(k_x, (N_NODES, 3), dtype=F32)

    # fully connected edge list (no self loops): E = N*(N-1) = 56
    rows_np, cols_np = [], []
    for i in range(N_NODES):
        for j in range(N_NODES):
            if i != j:
                rows_np.append(i)
                cols_np.append(j)
    rows = jnp.asarray(rows_np, dtype=jnp.int32)
    cols = jnp.asarray(cols_np, dtype=jnp.int32)

    emb_params = _init_linear(k_emb, IN_NODE_NF, HIDDEN_NF)
    layer_keys = jax.random.split(k_layers, N_LAYERS)
    layer_params = [init_egcl_params(layer_keys[i], HIDDEN_NF)
                    for i in range(N_LAYERS)]

    h_out, x_out = egnn_last_forward(h_in, x_in, rows, cols,
                                     emb_params, layer_params, N_LAYERS)
    jax.block_until_ready((h_out, x_out))

    assert h_out.shape == (N_NODES, HIDDEN_NF)
    assert x_out.shape == (N_NODES, 3)
    assert jnp.all(jnp.isfinite(h_out)) and jnp.all(jnp.isfinite(x_out))
    print("KERNEL_OK")
</pallas_src>

<mosaic_0001>
module attributes {stable_mosaic.version = 11 : i64} {
  func.func @_egnn_fused_kernel(%arg0: memref<8x4xf32, #tpu.memory_space<vmem>>, %arg1: memref<8x8xf32, #tpu.memory_space<vmem>>, %arg2: memref<56x8xf32, #tpu.memory_space<vmem>>, %arg3: memref<56x8xf32, #tpu.memory_space<vmem>>, %arg4: memref<8x1xf32, #tpu.memory_space<vmem>>, %arg5: memref<4x32xf32, #tpu.memory_space<vmem>>, %arg6: memref<1x32xf32, #tpu.memory_space<vmem>>, %arg7: memref<4x64x32xf32, #tpu.memory_space<vmem>>, %arg8: memref<4x1x32xf32, #tpu.memory_space<vmem>>, %arg9: memref<4x1x32xf32, #tpu.memory_space<vmem>>, %arg10: memref<4x32x32xf32, #tpu.memory_space<vmem>>, %arg11: memref<4x1x32xf32, #tpu.memory_space<vmem>>, %arg12: memref<4x64x32xf32, #tpu.memory_space<vmem>>, %arg13: memref<4x1x32xf32, #tpu.memory_space<vmem>>, %arg14: memref<4x32x32xf32, #tpu.memory_space<vmem>>, %arg15: memref<4x1x32xf32, #tpu.memory_space<vmem>>, %arg16: memref<32x32xf32, #tpu.memory_space<vmem>>, %arg17: memref<1x32xf32, #tpu.memory_space<vmem>>, %arg18: memref<1x32xf32, #tpu.memory_space<vmem>>, %arg19: memref<8x32xf32, #tpu.memory_space<vmem>>, %arg20: memref<8x8xf32, #tpu.memory_space<vmem>>) attributes {dimension_semantics = [], scalar_prefetch = 0 : i64, scratch_operands = 0 : i64, tpu.core_type = #tpu.core_type<tc>} {
    %c0 = arith.constant 0 : index
    %c0_0 = arith.constant 0 : index
    %0 = vector.load %arg2[%c0, %c0_0] : memref<56x8xf32, #tpu.memory_space<vmem>>, vector<56x8xf32>
    %c0_1 = arith.constant 0 : index
    %c0_2 = arith.constant 0 : index
    %1 = vector.load %arg3[%c0_1, %c0_2] : memref<56x8xf32, #tpu.memory_space<vmem>>, vector<56x8xf32>
    %c0_3 = arith.constant 0 : index
    %c0_4 = arith.constant 0 : index
    %2 = vector.load %arg1[%c0_3, %c0_4] : memref<8x8xf32, #tpu.memory_space<vmem>>, vector<8x8xf32>
    %c0_5 = arith.constant 0 : index
    %c0_6 = arith.constant 0 : index
    %3 = vector.load %arg4[%c0_5, %c0_6] : memref<8x1xf32, #tpu.memory_space<vmem>>, vector<8x1xf32>
    %c0_7 = arith.constant 0 : index
    %c0_8 = arith.constant 0 : index
    %4 = vector.load %arg0[%c0_7, %c0_8] : memref<8x4xf32, #tpu.memory_space<vmem>>, vector<8x4xf32>
    %c0_9 = arith.constant 0 : index
    %c0_10 = arith.constant 0 : index
    %5 = vector.load %arg5[%c0_9, %c0_10] : memref<4x32xf32, #tpu.memory_space<vmem>>, vector<4x32xf32>
    %cst = arith.constant dense<0.000000e+00> : vector<8x32xf32>
    %6 = tpu.matmul %4, %5, %cst {dimension_numbers = #tpu.dot_dimension_numbers<[1], [0], [0], [1], [0, 0, 1, 1], [], []>} : vector<8x4xf32>, vector<4x32xf32>, vector<8x32xf32> -> vector<8x32xf32>
    %c0_11 = arith.constant 0 : index
    %c0_12 = arith.constant 0 : index
    %7 = vector.load %arg6[%c0_11, %c0_12] : memref<1x32xf32, #tpu.memory_space<vmem>>, vector<1x32xf32>
    %8 = vector.broadcast %7 : vector<1x32xf32> to vector<8x32xf32>
    %9 = arith.addf %6, %8 : vector<8x32xf32>
    %cst_13 = arith.constant dense<0.000000e+00> : vector<56x8xf32>
    %10 = tpu.matmul %0, %2, %cst_13 {dimension_numbers = #tpu.dot_dimension_numbers<[1], [0], [0], [1], [0, 0, 1, 1], [], []>} : vector<56x8xf32>, vector<8x8xf32>, vector<56x8xf32> -> vector<56x8xf32>
    %cst_14 = arith.constant dense<0.000000e+00> : vector<56x8xf32>
    %11 = tpu.matmul %1, %2, %cst_14 {dimension_numbers = #tpu.dot_dimension_numbers<[1], [0], [0], [1], [0, 0, 1, 1], [], []>} : vector<56x8xf32>, vector<8x8xf32>, vector<56x8xf32> -> vector<56x8xf32>
    %12 = arith.subf %10, %11 : vector<56x8xf32>
    %13 = arith.mulf %12, %12 : vector<56x8xf32>
    %cst_15 = arith.constant dense<0.000000e+00> : vector<56xf32>
    %14 = vector.multi_reduction <add>, %13, %cst_15 [1] : vector<56x8xf32> to vector<56xf32>
    %15 = vector.shape_cast %14 : vector<56xf32> to vector<56x1xf32>
    %cst_16 = arith.constant dense<0.000000e+00> : vector<56x32xf32>
    %16 = tpu.matmul %0, %9, %cst_16 {dimension_numbers = #tpu.dot_dimension_numbers<[1], [0], [0], [1], [0, 0, 1, 1], [], []>} : vector<56x8xf32>, vector<8x32xf32>, vector<56x32xf32> -> vector<56x32xf32>
    %cst_17 = arith.constant dense<0.000000e+00> : vector<56x32xf32>
    %17 = tpu.matmul %1, %9, %cst_17 {dimension_numbers = #tpu.dot_dimension_numbers<[1], [0], [0], [1], [0, 0, 1, 1], [], []>} : vector<56x8xf32>, vector<8x32xf32>, vector<56x32xf32> -> vector<56x32xf32>
    %18 = tpu.concatenate %16, %17 in 1 : vector<56x32xf32>, vector<56x32xf32> -> vector<56x64xf32>
    %c0_18 = arith.constant 0 : index
    %c0_19 = arith.constant 0 : index
    %c0_20 = arith.constant 0 : index
    %19 = vector.load %arg7[%c0_18, %c0_19, %c0_20] : memref<4x64x32xf32, #tpu.memory_space<vmem>>, vector<1x64x32xf32>
    %20 = vector.shape_cast %19 : vector<1x64x32xf32> to vector<64x32xf32>
    %cst_21 = arith.constant dense<0.000000e+00> : vector<56x32xf32>
    %21 = tpu.matmul %18, %20, %cst_21 {dimension_numbers = #tpu.dot_dimension_numbers<[1], [0], [0], [1], [0, 0, 1, 1], [], []>} : vector<56x64xf32>, vector<64x32xf32>, vector<56x32xf32> -> vector<56x32xf32>
    %c0_22 = arith.constant 0 : index
    %c0_23 = arith.constant 0 : index
    %c0_24 = arith.constant 0 : index
    %22 = vector.load %arg8[%c0_22, %c0_23, %c0_24] : memref<4x1x32xf32, #tpu.memory_space<vmem>>, vector<1x1x32xf32>
    %23 = vector.shape_cast %22 : vector<1x1x32xf32> to vector<1x32xf32>
    %24 = vector.broadcast %15 : vector<56x1xf32> to vector<56x32xf32>
    %25 = vector.broadcast %23 : vector<1x32xf32> to vector<56x32xf32>
    %26 = arith.mulf %24, %25 : vector<56x32xf32>
    %27 = arith.addf %21, %26 : vector<56x32xf32>
    %c0_25 = arith.constant 0 : index
    %c0_26 = arith.constant 0 : index
    %c0_27 = arith.constant 0 : index
    %28 = vector.load %arg9[%c0_25, %c0_26, %c0_27] : memref<4x1x32xf32, #tpu.memory_space<vmem>>, vector<1x1x32xf32>
    %29 = vector.shape_cast %28 : vector<1x1x32xf32> to vector<1x32xf32>
    %30 = vector.broadcast %29 : vector<1x32xf32> to vector<56x32xf32>
    %31 = arith.addf %27, %30 : vector<56x32xf32>
    %32 = arith.negf %31 : vector<56x32xf32>
    %33 = math.exp %32 : vector<56x32xf32>
    %cst_28 = arith.constant 1.000000e+00 : f32
    %34 = vector.broadcast %cst_28 : f32 to vector<56x32xf32>
    %35 = arith.addf %34, %33 : vector<56x32xf32>
    %36 = arith.divf %34, %35 : vector<56x32xf32>
    %37 = arith.mulf %31, %36 : vector<56x32xf32>
    %c0_29 = arith.constant 0 : index
    %c0_30 = arith.constant 0 : index
    %c0_31 = arith.constant 0 : index
    %38 = vector.load %arg10[%c0_29, %c0_30, %c0_31] : memref<4x32x32xf32, #tpu.memory_space<vmem>>, vector<1x32x32xf32>
    %39 = vector.shape_cast %38 : vector<1x32x32xf32> to vector<32x32xf32>
    %cst_32 = arith.constant dense<0.000000e+00> : vector<56x32xf32>
    %40 = tpu.matmul %37, %39, %cst_32 {dimension_numbers = #tpu.dot_dimension_numbers<[1], [0], [0], [1], [0, 0, 1, 1], [], []>} : vector<56x32xf32>, vector<32x32xf32>, vector<56x32xf32> -> vector<56x32xf32>
    %c0_33 = arith.constant 0 : index
    %c0_34 = arith.constant 0 : index
    %c0_35 = arith.constant 0 : index
    %41 = vector.load %arg11[%c0_33, %c0_34, %c0_35] : memref<4x1x32xf32, #tpu.memory_space<vmem>>, vector<1x1x32xf32>
    %42 = vector.shape_cast %41 : vector<1x1x32xf32> to vector<1x32xf32>
    %43 = vector.broadcast %42 : vector<1x32xf32> to vector<56x32xf32>
    %44 = arith.addf %40, %43 : vector<56x32xf32>
    %45 = arith.negf %44 : vector<56x32xf32>
    %46 = math.exp %45 : vector<56x32xf32>
    %cst_36 = arith.constant 1.000000e+00 : f32
    %47 = vector.broadcast %cst_36 : f32 to vector<56x32xf32>
    %48 = arith.addf %47, %46 : vector<56x32xf32>
    %49 = arith.divf %47, %48 : vector<56x32xf32>
    %50 = arith.mulf %44, %49 : vector<56x32xf32>
    %cst_37 = arith.constant dense<0.000000e+00> : vector<8x32xf32>
    %51 = tpu.matmul %0, %50, %cst_37 {dimension_numbers = #tpu.dot_dimension_numbers<[0], [0], [1], [1], [0, 1, 1, 1], [], []>} : vector<56x8xf32>, vector<56x32xf32>, vector<8x32xf32> -> vector<8x32xf32>
    %52 = tpu.concatenate %9, %51 in 1 : vector<8x32xf32>, vector<8x32xf32> -> vector<8x64xf32>
    %c0_38 = arith.constant 0 : index
    %c0_39 = arith.constant 0 : index
    %c0_40 = arith.constant 0 : index
    %53 = vector.load %arg12[%c0_38, %c0_39, %c0_40] : memref<4x64x32xf32, #tpu.memory_space<vmem>>, vector<1x64x32xf32>
    %54 = vector.shape_cast %53 : vector<1x64x32xf32> to vector<64x32xf32>
    %cst_41 = arith.constant dense<0.000000e+00> : vector<8x32xf32>
    %55 = tpu.matmul %52, %54, %cst_41 {dimension_numbers = #tpu.dot_dimension_numbers<[1], [0], [0], [1], [0, 0, 1, 1], [], []>} : vector<8x64xf32>, vector<64x32xf32>, vector<8x32xf32> -> vector<8x32xf32>
    %c0_42 = arith.constant 0 : index
    %c0_43 = arith.constant 0 : index
    %c0_44 = arith.constant 0 : index
    %56 = vector.load %arg13[%c0_42, %c0_43, %c0_44] : memref<4x1x32xf32, #tpu.memory_space<vmem>>, vector<1x1x32xf32>
    %57 = vector.shape_cast %56 : vector<1x1x32xf32> to vector<1x32xf32>
    %58 = vector.broadcast %57 : vector<1x32xf32> to vector<8x32xf32>
    %59 = arith.addf %55, %58 : vector<8x32xf32>
    %60 = arith.negf %59 : vector<8x32xf32>
    %61 = math.exp %60 : vector<8x32xf32>
    %cst_45 = arith.constant 1.000000e+00 : f32
    %62 = vector.broadcast %cst_45 : f32 to vector<8x32xf32>
    %63 = arith.addf %62, %61 : vector<8x32xf32>
    %64 = arith.divf %62, %63 : vector<8x32xf32>
    %65 = arith.mulf %59, %64 : vector<8x32xf32>
    %c0_46 = arith.constant 0 : index
    %c0_47 = arith.constant 0 : index
    %c0_48 = arith.constant 0 : index
    %66 = vector.load %arg14[%c0_46, %c0_47, %c0_48] : memref<4x32x32xf32, #tpu.memory_space<vmem>>, vector<1x32x32xf32>
    %67 = vector.shape_cast %66 : vector<1x32x32xf32> to vector<32x32xf32>
    %cst_49 = arith.constant dense<0.000000e+00> : vector<8x32xf32>
    %68 = tpu.matmul %65, %67, %cst_49 {dimension_numbers = #tpu.dot_dimension_numbers<[1], [0], [0], [1], [0, 0, 1, 1], [], []>} : vector<8x32xf32>, vector<32x32xf32>, vector<8x32xf32> -> vector<8x32xf32>
    %c0_50 = arith.constant 0 : index
    %c0_51 = arith.constant 0 : index
    %c0_52 = arith.constant 0 : index
    %69 = vector.load %arg15[%c0_50, %c0_51, %c0_52] : memref<4x1x32xf32, #tpu.memory_space<vmem>>, vector<1x1x32xf32>
    %70 = vector.shape_cast %69 : vector<1x1x32xf32> to vector<1x32xf32>
    %71 = vector.broadcast %70 : vector<1x32xf32> to vector<8x32xf32>
    %72 = arith.addf %68, %71 : vector<8x32xf32>
    %73 = arith.addf %9, %72 : vector<8x32xf32>
    %cst_53 = arith.constant dense<0.000000e+00> : vector<56x32xf32>
    %74 = tpu.matmul %0, %73, %cst_53 {dimension_numbers = #tpu.dot_dimension_numbers<[1], [0], [0], [1], [0, 0, 1, 1], [], []>} : vector<56x8xf32>, vector<8x32xf32>, vector<56x32xf32> -> vector<56x32xf32>
    %cst_54 = arith.constant dense<0.000000e+00> : vector<56x32xf32>
    %75 = tpu.matmul %1, %73, %cst_54 {dimension_numbers = #tpu.dot_dimension_numbers<[1], [0], [0], [1], [0, 0, 1, 1], [], []>} : vector<56x8xf32>, vector<8x32xf32>, vector<56x32xf32> -> vector<56x32xf32>
    %76 = tpu.concatenate %74, %75 in 1 : vector<56x32xf32>, vector<56x32xf32> -> vector<56x64xf32>
    %c1 = arith.constant 1 : index
    %c0_55 = arith.constant 0 : index
    %c0_56 = arith.constant 0 : index
    %77 = vector.load %arg7[%c1, %c0_55, %c0_56] : memref<4x64x32xf32, #tpu.memory_space<vmem>>, vector<1x64x32xf32>
    %78 = vector.shape_cast %77 : vector<1x64x32xf32> to vector<64x32xf32>
    %cst_57 = arith.constant dense<0.000000e+00> : vector<56x32xf32>
    %79 = tpu.matmul %76, %78, %cst_57 {dimension_numbers = #tpu.dot_dimension_numbers<[1], [0], [0], [1], [0, 0, 1, 1], [], []>} : vector<56x64xf32>, vector<64x32xf32>, vector<56x32xf32> -> vector<56x32xf32>
    %c1_58 = arith.constant 1 : index
    %c0_59 = arith.constant 0 : index
    %c0_60 = arith.constant 0 : index
    %80 = vector.load %arg8[%c1_58, %c0_59, %c0_60] : memref<4x1x32xf32, #tpu.memory_space<vmem>>, vector<1x1x32xf32>
    %81 = vector.shape_cast %80 : vector<1x1x32xf32> to vector<1x32xf32>
    %82 = vector.broadcast %15 : vector<56x1xf32> to vector<56x32xf32>
    %83 = vector.broadcast %81 : vector<1x32xf32> to vector<56x32xf32>
    %84 = arith.mulf %82, %83 : vector<56x32xf32>
    %85 = arith.addf %79, %84 : vector<56x32xf32>
    %c1_61 = arith.constant 1 : index
    %c0_62 = arith.constant 0 : index
    %c0_63 = arith.constant 0 : index
    %86 = vector.load %arg9[%c1_61, %c0_62, %c0_63] : memref<4x1x32xf32, #tpu.memory_space<vmem>>, vector<1x1x32xf32>
    %87 = vector.shape_cast %86 : vector<1x1x32xf32> to vector<1x32xf32>
    %88 = vector.broadcast %87 : vector<1x32xf32> to vector<56x32xf32>
    %89 = arith.addf %85, %88 : vector<56x32xf32>
    %90 = arith.negf %89 : vector<56x32xf32>
    %91 = math.exp %90 : vector<56x32xf32>
    %cst_64 = arith.constant 1.000000e+00 : f32
    %92 = vector.broadcast %cst_64 : f32 to vector<56x32xf32>
    %93 = arith.addf %92, %91 : vector<56x32xf32>
    %94 = arith.divf %92, %93 : vector<56x32xf32>
    %95 = arith.mulf %89, %94 : vector<56x32xf32>
    %c1_65 = arith.constant 1 : index
    %c0_66 = arith.constant 0 : index
    %c0_67 = arith.constant 0 : index
    %96 = vector.load %arg10[%c1_65, %c0_66, %c0_67] : memref<4x32x32xf32, #tpu.memory_space<vmem>>, vector<1x32x32xf32>
    %97 = vector.shape_cast %96 : vector<1x32x32xf32> to vector<32x32xf32>
    %cst_68 = arith.constant dense<0.000000e+00> : vector<56x32xf32>
    %98 = tpu.matmul %95, %97, %cst_68 {dimension_numbers = #tpu.dot_dimension_numbers<[1], [0], [0], [1], [0, 0, 1, 1], [], []>} : vector<56x32xf32>, vector<32x32xf32>, vector<56x32xf32> -> vector<56x32xf32>
    %c1_69 = arith.constant 1 : index
    %c0_70 = arith.constant 0 : index
    %c0_71 = arith.constant 0 : index
    %99 = vector.load %arg11[%c1_69, %c0_70, %c0_71] : memref<4x1x32xf32, #tpu.memory_space<vmem>>, vector<1x1x32xf32>
    %100 = vector.shape_cast %99 : vector<1x1x32xf32> to vector<1x32xf32>
    %101 = vector.broadcast %100 : vector<1x32xf32> to vector<56x32xf32>
    %102 = arith.addf %98, %101 : vector<56x32xf32>
    %103 = arith.negf %102 : vector<56x32xf32>
    %104 = math.exp %103 : vector<56x32xf32>
    %cst_72 = arith.constant 1.000000e+00 : f32
    %105 = vector.broadcast %cst_72 : f32 to vector<56x32xf32>
    %106 = arith.addf %105, %104 : vector<56x32xf32>
    %107 = arith.divf %105, %106 : vector<56x32xf32>
    %108 = arith.mulf %102, %107 : vector<56x32xf32>
    %cst_73 = arith.constant dense<0.000000e+00> : vector<8x32xf32>
    %109 = tpu.matmul %0, %108, %cst_73 {dimension_numbers = #tpu.dot_dimension_numbers<[0], [0], [1], [1], [0, 1, 1, 1], [], []>} : vector<56x8xf32>, vector<56x32xf32>, vector<8x32xf32> -> vector<8x32xf32>
    %110 = tpu.concatenate %73, %109 in 1 : vector<8x32xf32>, vector<8x32xf32> -> vector<8x64xf32>
    %c1_74 = arith.constant 1 : index
    %c0_75 = arith.constant 0 : index
    %c0_76 = arith.constant 0 : index
    %111 = vector.load %arg12[%c1_74, %c0_75, %c0_76] : memref<4x64x32xf32, #tpu.memory_space<vmem>>, vector<1x64x32xf32>
    %112 = vector.shape_cast %111 : vector<1x64x32xf32> to vector<64x32xf32>
    %cst_77 = arith.constant dense<0.000000e+00> : vector<8x32xf32>
    %113 = tpu.matmul %110, %112, %cst_77 {dimension_numbers = #tpu.dot_dimension_numbers<[1], [0], [0], [1], [0, 0, 1, 1], [], []>} : vector<8x64xf32>, vector<64x32xf32>, vector<8x32xf32> -> vector<8x32xf32>
    %c1_78 = arith.constant 1 : index
    %c0_79 = arith.constant 0 : index
    %c0_80 = arith.constant 0 : index
    %114 = vector.load %arg13[%c1_78, %c0_79, %c0_80] : memref<4x1x32xf32, #tpu.memory_space<vmem>>, vector<1x1x32xf32>
    %115 = vector.shape_cast %114 : vector<1x1x32xf32> to vector<1x32xf32>
    %116 = vector.broadcast %115 : vector<1x32xf32> to vector<8x32xf32>
    %117 = arith.addf %113, %116 : vector<8x32xf32>
    %118 = arith.negf %117 : vector<8x32xf32>
    %119 = math.exp %118 : vector<8x32xf32>
    %cst_81 = arith.constant 1.000000e+00 : f32
    %120 = vector.broadcast %cst_81 : f32 to vector<8x32xf32>
    %121 = arith.addf %120, %119 : vector<8x32xf32>
    %122 = arith.divf %120, %121 : vector<8x32xf32>
    %123 = arith.mulf %117, %122 : vector<8x32xf32>
    %c1_82 = arith.constant 1 : index
    %c0_83 = arith.constant 0 : index
    %c0_84 = arith.constant 0 : index
    %124 = vector.load %arg14[%c1_82, %c0_83, %c0_84] : memref<4x32x32xf32, #tpu.memory_space<vmem>>, vector<1x32x32xf32>
    %125 = vector.shape_cast %124 : vector<1x32x32xf32> to vector<32x32xf32>
    %cst_85 = arith.constant dense<0.000000e+00> : vector<8x32xf32>
    %126 = tpu.matmul %123, %125, %cst_85 {dimension_numbers = #tpu.dot_dimension_numbers<[1], [0], [0], [1], [0, 0, 1, 1], [], []>} : vector<8x32xf32>, vector<32x32xf32>, vector<8x32xf32> -> vector<8x32xf32>
    %c1_86 = arith.constant 1 : index
    %c0_87 = arith.constant 0 : index
    %c0_88 = arith.constant 0 : index
    %127 = vector.load %arg15[%c1_86, %c0_87, %c0_88] : memref<4x1x32xf32, #tpu.memory_space<vmem>>, vector<1x1x32xf32>
    %128 = vector.shape_cast %127 : vector<1x1x32xf32> to vector<1x32xf32>
    %129 = vector.broadcast %128 : vector<1x32xf32> to vector<8x32xf32>
    %130 = arith.addf %126, %129 : vector<8x32xf32>
    %131 = arith.addf %73, %130 : vector<8x32xf32>
    %cst_89 = arith.constant dense<0.000000e+00> : vector<56x32xf32>
    %132 = tpu.matmul %0, %131, %cst_89 {dimension_numbers = #tpu.dot_dimension_numbers<[1], [0], [0], [1], [0, 0, 1, 1], [], []>} : vector<56x8xf32>, vector<8x32xf32>, vector<56x32xf32> -> vector<56x32xf32>
    %cst_90 = arith.constant dense<0.000000e+00> : vector<56x32xf32>
    %133 = tpu.matmul %1, %131, %cst_90 {dimension_numbers = #tpu.dot_dimension_numbers<[1], [0], [0], [1], [0, 0, 1, 1], [], []>} : vector<56x8xf32>, vector<8x32xf32>, vector<56x32xf32> -> vector<56x32xf32>
    %134 = tpu.concatenate %132, %133 in 1 : vector<56x32xf32>, vector<56x32xf32> -> vector<56x64xf32>
    %c2 = arith.constant 2 : index
    %c0_91 = arith.constant 0 : index
    %c0_92 = arith.constant 0 : index
    %135 = vector.load %arg7[%c2, %c0_91, %c0_92] : memref<4x64x32xf32, #tpu.memory_space<vmem>>, vector<1x64x32xf32>
    %136 = vector.shape_cast %135 : vector<1x64x32xf32> to vector<64x32xf32>
    %cst_93 = arith.constant dense<0.000000e+00> : vector<56x32xf32>
    %137 = tpu.matmul %134, %136, %cst_93 {dimension_numbers = #tpu.dot_dimension_numbers<[1], [0], [0], [1], [0, 0, 1, 1], [], []>} : vector<56x64xf32>, vector<64x32xf32>, vector<56x32xf32> -> vector<56x32xf32>
    %c2_94 = arith.constant 2 : index
    %c0_95 = arith.constant 0 : index
    %c0_96 = arith.constant 0 : index
    %138 = vector.load %arg8[%c2_94, %c0_95, %c0_96] : memref<4x1x32xf32, #tpu.memory_space<vmem>>, vector<1x1x32xf32>
    %139 = vector.shape_cast %138 : vector<1x1x32xf32> to vector<1x32xf32>
    %140 = vector.broadcast %15 : vector<56x1xf32> to vector<56x32xf32>
    %141 = vector.broadcast %139 : vector<1x32xf32> to vector<56x32xf32>
    %142 = arith.mulf %140, %141 : vector<56x32xf32>
    %143 = arith.addf %137, %142 : vector<56x32xf32>
    %c2_97 = arith.constant 2 : index
    %c0_98 = arith.constant 0 : index
    %c0_99 = arith.constant 0 : index
    %144 = vector.load %arg9[%c2_97, %c0_98, %c0_99] : memref<4x1x32xf32, #tpu.memory_space<vmem>>, vector<1x1x32xf32>
    %145 = vector.shape_cast %144 : vector<1x1x32xf32> to vector<1x32xf32>
    %146 = vector.broadcast %145 : vector<1x32xf32> to vector<56x32xf32>
    %147 = arith.addf %143, %146 : vector<56x32xf32>
    %148 = arith.negf %147 : vector<56x32xf32>
    %149 = math.exp %148 : vector<56x32xf32>
    %cst_100 = arith.constant 1.000000e+00 : f32
    %150 = vector.broadcast %cst_100 : f32 to vector<56x32xf32>
    %151 = arith.addf %150, %149 : vector<56x32xf32>
    %152 = arith.divf %150, %151 : vector<56x32xf32>
    %153 = arith.mulf %147, %152 : vector<56x32xf32>
    %c2_101 = arith.constant 2 : index
    %c0_102 = arith.constant 0 : index
    %c0_103 = arith.constant 0 : index
    %154 = vector.load %arg10[%c2_101, %c0_102, %c0_103] : memref<4x32x32xf32, #tpu.memory_space<vmem>>, vector<1x32x32xf32>
    %155 = vector.shape_cast %154 : vector<1x32x32xf32> to vector<32x32xf32>
    %cst_104 = arith.constant dense<0.000000e+00> : vector<56x32xf32>
    %156 = tpu.matmul %153, %155, %cst_104 {dimension_numbers = #tpu.dot_dimension_numbers<[1], [0], [0], [1], [0, 0, 1, 1], [], []>} : vector<56x32xf32>, vector<32x32xf32>, vector<56x32xf32> -> vector<56x32xf32>
    %c2_105 = arith.constant 2 : index
    %c0_106 = arith.constant 0 : index
    %c0_107 = arith.constant 0 : index
    %157 = vector.load %arg11[%c2_105, %c0_106, %c0_107] : memref<4x1x32xf32, #tpu.memory_space<vmem>>, vector<1x1x32xf32>
    %158 = vector.shape_cast %157 : vector<1x1x32xf32> to vector<1x32xf32>
    %159 = vector.broadcast %158 : vector<1x32xf32> to vector<56x32xf32>
    %160 = arith.addf %156, %159 : vector<56x32xf32>
    %161 = arith.negf %160 : vector<56x32xf32>
    %162 = math.exp %161 : vector<56x32xf32>
    %cst_108 = arith.constant 1.000000e+00 : f32
    %163 = vector.broadcast %cst_108 : f32 to vector<56x32xf32>
    %164 = arith.addf %163, %162 : vector<56x32xf32>
    %165 = arith.divf %163, %164 : vector<56x32xf32>
    %166 = arith.mulf %160, %165 : vector<56x32xf32>
    %cst_109 = arith.constant dense<0.000000e+00> : vector<8x32xf32>
    %167 = tpu.matmul %0, %166, %cst_109 {dimension_numbers = #tpu.dot_dimension_numbers<[0], [0], [1], [1], [0, 1, 1, 1], [], []>} : vector<56x8xf32>, vector<56x32xf32>, vector<8x32xf32> -> vector<8x32xf32>
    %168 = tpu.concatenate %131, %167 in 1 : vector<8x32xf32>, vector<8x32xf32> -> vector<8x64xf32>
    %c2_110 = arith.constant 2 : index
    %c0_111 = arith.constant 0 : index
    %c0_112 = arith.constant 0 : index
    %169 = vector.load %arg12[%c2_110, %c0_111, %c0_112] : memref<4x64x32xf32, #tpu.memory_space<vmem>>, vector<1x64x32xf32>
    %170 = vector.shape_cast %169 : vector<1x64x32xf32> to vector<64x32xf32>
    %cst_113 = arith.constant dense<0.000000e+00> : vector<8x32xf32>
    %171 = tpu.matmul %168, %170, %cst_113 {dimension_numbers = #tpu.dot_dimension_numbers<[1], [0], [0], [1], [0, 0, 1, 1], [], []>} : vector<8x64xf32>, vector<64x32xf32>, vector<8x32xf32> -> vector<8x32xf32>
    %c2_114 = arith.constant 2 : index
    %c0_115 = arith.constant 0 : index
    %c0_116 = arith.constant 0 : index
    %172 = vector.load %arg13[%c2_114, %c0_115, %c0_116] : memref<4x1x32xf32, #tpu.memory_space<vmem>>, vector<1x1x32xf32>
    %173 = vector.shape_cast %172 : vector<1x1x32xf32> to vector<1x32xf32>
    %174 = vector.broadcast %173 : vector<1x32xf32> to vector<8x32xf32>
    %175 = arith.addf %171, %174 : vector<8x32xf32>
    %176 = arith.negf %175 : vector<8x32xf32>
    %177 = math.exp %176 : vector<8x32xf32>
    %cst_117 = arith.constant 1.000000e+00 : f32
    %178 = vector.broadcast %cst_117 : f32 to vector<8x32xf32>
    %179 = arith.addf %178, %177 : vector<8x32xf32>
    %180 = arith.divf %178, %179 : vector<8x32xf32>
    %181 = arith.mulf %175, %180 : vector<8x32xf32>
    %c2_118 = arith.constant 2 : index
    %c0_119 = arith.constant 0 : index
    %c0_120 = arith.constant 0 : index
    %182 = vector.load %arg14[%c2_118, %c0_119, %c0_120] : memref<4x32x32xf32, #tpu.memory_space<vmem>>, vector<1x32x32xf32>
    %183 = vector.shape_cast %182 : vector<1x32x32xf32> to vector<32x32xf32>
    %cst_121 = arith.constant dense<0.000000e+00> : vector<8x32xf32>
    %184 = tpu.matmul %181, %183, %cst_121 {dimension_numbers = #tpu.dot_dimension_numbers<[1], [0], [0], [1], [0, 0, 1, 1], [], []>} : vector<8x32xf32>, vector<32x32xf32>, vector<8x32xf32> -> vector<8x32xf32>
    %c2_122 = arith.constant 2 : index
    %c0_123 = arith.constant 0 : index
    %c0_124 = arith.constant 0 : index
    %185 = vector.load %arg15[%c2_122, %c0_123, %c0_124] : memref<4x1x32xf32, #tpu.memory_space<vmem>>, vector<1x1x32xf32>
    %186 = vector.shape_cast %185 : vector<1x1x32xf32> to vector<1x32xf32>
    %187 = vector.broadcast %186 : vector<1x32xf32> to vector<8x32xf32>
    %188 = arith.addf %184, %187 : vector<8x32xf32>
    %189 = arith.addf %131, %188 : vector<8x32xf32>
    %cst_125 = arith.constant dense<0.000000e+00> : vector<56x32xf32>
    %190 = tpu.matmul %0, %189, %cst_125 {dimension_numbers = #tpu.dot_dimension_numbers<[1], [0], [0], [1], [0, 0, 1, 1], [], []>} : vector<56x8xf32>, vector<8x32xf32>, vector<56x32xf32> -> vector<56x32xf32>
    %cst_126 = arith.constant dense<0.000000e+00> : vector<56x32xf32>
    %191 = tpu.matmul %1, %189, %cst_126 {dimension_numbers = #tpu.dot_dimension_numbers<[1], [0], [0], [1], [0, 0, 1, 1], [], []>} : vector<56x8xf32>, vector<8x32xf32>, vector<56x32xf32> -> vector<56x32xf32>
    %192 = tpu.concatenate %190, %191 in 1 : vector<56x32xf32>, vector<56x32xf32> -> vector<56x64xf32>
    %c3 = arith.constant 3 : index
    %c0_127 = arith.constant 0 : index
    %c0_128 = arith.constant 0 : index
    %193 = vector.load %arg7[%c3, %c0_127, %c0_128] : memref<4x64x32xf32, #tpu.memory_space<vmem>>, vector<1x64x32xf32>
    %194 = vector.shape_cast %193 : vector<1x64x32xf32> to vector<64x32xf32>
    %cst_129 = arith.constant dense<0.000000e+00> : vector<56x32xf32>
    %195 = tpu.matmul %192, %194, %cst_129 {dimension_numbers = #tpu.dot_dimension_numbers<[1], [0], [0], [1], [0, 0, 1, 1], [], []>} : vector<56x64xf32>, vector<64x32xf32>, vector<56x32xf32> -> vector<56x32xf32>
    %c3_130 = arith.constant 3 : index
    %c0_131 = arith.constant 0 : index
    %c0_132 = arith.constant 0 : index
    %196 = vector.load %arg8[%c3_130, %c0_131, %c0_132] : memref<4x1x32xf32, #tpu.memory_space<vmem>>, vector<1x1x32xf32>
    %197 = vector.shape_cast %196 : vector<1x1x32xf32> to vector<1x32xf32>
    %198 = vector.broadcast %15 : vector<56x1xf32> to vector<56x32xf32>
    %199 = vector.broadcast %197 : vector<1x32xf32> to vector<56x32xf32>
    %200 = arith.mulf %198, %199 : vector<56x32xf32>
    %201 = arith.addf %195, %200 : vector<56x32xf32>
    %c3_133 = arith.constant 3 : index
    %c0_134 = arith.constant 0 : index
    %c0_135 = arith.constant 0 : index
    %202 = vector.load %arg9[%c3_133, %c0_134, %c0_135] : memref<4x1x32xf32, #tpu.memory_space<vmem>>, vector<1x1x32xf32>
    %203 = vector.shape_cast %202 : vector<1x1x32xf32> to vector<1x32xf32>
    %204 = vector.broadcast %203 : vector<1x32xf32> to vector<56x32xf32>
    %205 = arith.addf %201, %204 : vector<56x32xf32>
    %206 = arith.negf %205 : vector<56x32xf32>
    %207 = math.exp %206 : vector<56x32xf32>
    %cst_136 = arith.constant 1.000000e+00 : f32
    %208 = vector.broadcast %cst_136 : f32 to vector<56x32xf32>
    %209 = arith.addf %208, %207 : vector<56x32xf32>
    %210 = arith.divf %208, %209 : vector<56x32xf32>
    %211 = arith.mulf %205, %210 : vector<56x32xf32>
    %c3_137 = arith.constant 3 : index
    %c0_138 = arith.constant 0 : index
    %c0_139 = arith.constant 0 : index
    %212 = vector.load %arg10[%c3_137, %c0_138, %c0_139] : memref<4x32x32xf32, #tpu.memory_space<vmem>>, vector<1x32x32xf32>
    %213 = vector.shape_cast %212 : vector<1x32x32xf32> to vector<32x32xf32>
    %cst_140 = arith.constant dense<0.000000e+00> : vector<56x32xf32>
    %214 = tpu.matmul %211, %213, %cst_140 {dimension_numbers = #tpu.dot_dimension_numbers<[1], [0], [0], [1], [0, 0, 1, 1], [], []>} : vector<56x32xf32>, vector<32x32xf32>, vector<56x32xf32> -> vector<56x32xf32>
    %c3_141 = arith.constant 3 : index
    %c0_142 = arith.constant 0 : index
    %c0_143 = arith.constant 0 : index
    %215 = vector.load %arg11[%c3_141, %c0_142, %c0_143] : memref<4x1x32xf32, #tpu.memory_space<vmem>>, vector<1x1x32xf32>
    %216 = vector.shape_cast %215 : vector<1x1x32xf32> to vector<1x32xf32>
    %217 = vector.broadcast %216 : vector<1x32xf32> to vector<56x32xf32>
    %218 = arith.addf %214, %217 : vector<56x32xf32>
    %219 = arith.negf %218 : vector<56x32xf32>
    %220 = math.exp %219 : vector<56x32xf32>
    %cst_144 = arith.constant 1.000000e+00 : f32
    %221 = vector.broadcast %cst_144 : f32 to vector<56x32xf32>
    %222 = arith.addf %221, %220 : vector<56x32xf32>
    %223 = arith.divf %221, %222 : vector<56x32xf32>
    %224 = arith.mulf %218, %223 : vector<56x32xf32>
    %c0_145 = arith.constant 0 : index
    %c0_146 = arith.constant 0 : index
    %225 = vector.load %arg16[%c0_145, %c0_146] : memref<32x32xf32, #tpu.memory_space<vmem>>, vector<32x32xf32>
    %cst_147 = arith.constant dense<0.000000e+00> : vector<56x32xf32>
    %226 = tpu.matmul %224, %225, %cst_147 {dimension_numbers = #tpu.dot_dimension_numbers<[1], [0], [0], [1], [0, 0, 1, 1], [], []>} : vector<56x32xf32>, vector<32x32xf32>, vector<56x32xf32> -> vector<56x32xf32>
    %c0_148 = arith.constant 0 : index
    %c0_149 = arith.constant 0 : index
    %227 = vector.load %arg17[%c0_148, %c0_149] : memref<1x32xf32, #tpu.memory_space<vmem>>, vector<1x32xf32>
    %228 = vector.broadcast %227 : vector<1x32xf32> to vector<56x32xf32>
    %229 = arith.addf %226, %228 : vector<56x32xf32>
    %230 = arith.negf %229 : vector<56x32xf32>
    %231 = math.exp %230 : vector<56x32xf32>
    %cst_150 = arith.constant 1.000000e+00 : f32
    %232 = vector.broadcast %cst_150 : f32 to vector<56x32xf32>
    %233 = arith.addf %232, %231 : vector<56x32xf32>
    %234 = arith.divf %232, %233 : vector<56x32xf32>
    %235 = arith.mulf %229, %234 : vector<56x32xf32>
    %c0_151 = arith.constant 0 : index
    %c0_152 = arith.constant 0 : index
    %236 = vector.load %arg18[%c0_151, %c0_152] : memref<1x32xf32, #tpu.memory_space<vmem>>, vector<1x32xf32>
    %237 = vector.broadcast %236 : vector<1x32xf32> to vector<56x32xf32>
    %238 = arith.mulf %235, %237 : vector<56x32xf32>
    %cst_153 = arith.constant dense<0.000000e+00> : vector<56xf32>
    %239 = vector.multi_reduction <add>, %238, %cst_153 [1] : vector<56x32xf32> to vector<56xf32>
    %240 = vector.shape_cast %239 : vector<56xf32> to vector<56x1xf32>
    %241 = vector.broadcast %240 : vector<56x1xf32> to vector<56x8xf32>
    %242 = arith.mulf %12, %241 : vector<56x8xf32>
    %cst_154 = arith.constant dense<0.000000e+00> : vector<8x8xf32>
    %243 = tpu.matmul %0, %242, %cst_154 {dimension_numbers = #tpu.dot_dimension_numbers<[0], [0], [1], [1], [0, 1, 1, 1], [], []>} : vector<56x8xf32>, vector<56x8xf32>, vector<8x8xf32> -> vector<8x8xf32>
    %244 = vector.broadcast %3 : vector<8x1xf32> to vector<8x8xf32>
    %245 = arith.mulf %243, %244 : vector<8x8xf32>
    %246 = arith.addf %2, %245 : vector<8x8xf32>
    %cst_155 = arith.constant dense<0.000000e+00> : vector<8x32xf32>
    %247 = tpu.matmul %0, %224, %cst_155 {dimension_numbers = #tpu.dot_dimension_numbers<[0], [0], [1], [1], [0, 1, 1, 1], [], []>} : vector<56x8xf32>, vector<56x32xf32>, vector<8x32xf32> -> vector<8x32xf32>
    %248 = tpu.concatenate %189, %247 in 1 : vector<8x32xf32>, vector<8x32xf32> -> vector<8x64xf32>
    %c3_156 = arith.constant 3 : index
    %c0_157 = arith.constant 0 : index
    %c0_158 = arith.constant 0 : index
    %249 = vector.load %arg12[%c3_156, %c0_157, %c0_158] : memref<4x64x32xf32, #tpu.memory_space<vmem>>, vector<1x64x32xf32>
    %250 = vector.shape_cast %249 : vector<1x64x32xf32> to vector<64x32xf32>
    %cst_159 = arith.constant dense<0.000000e+00> : vector<8x32xf32>
    %251 = tpu.matmul %248, %250, %cst_159 {dimension_numbers = #tpu.dot_dimension_numbers<[1], [0], [0], [1], [0, 0, 1, 1], [], []>} : vector<8x64xf32>, vector<64x32xf32>, vector<8x32xf32> -> vector<8x32xf32>
    %c3_160 = arith.constant 3 : index
    %c0_161 = arith.constant 0 : index
    %c0_162 = arith.constant 0 : index
    %252 = vector.load %arg13[%c3_160, %c0_161, %c0_162] : memref<4x1x32xf32, #tpu.memory_space<vmem>>, vector<1x1x32xf32>
    %253 = vector.shape_cast %252 : vector<1x1x32xf32> to vector<1x32xf32>
    %254 = vector.broadcast %253 : vector<1x32xf32> to vector<8x32xf32>
    %255 = arith.addf %251, %254 : vector<8x32xf32>
    %256 = arith.negf %255 : vector<8x32xf32>
    %257 = math.exp %256 : vector<8x32xf32>
    %cst_163 = arith.constant 1.000000e+00 : f32
    %258 = vector.broadcast %cst_163 : f32 to vector<8x32xf32>
    %259 = arith.addf %258, %257 : vector<8x32xf32>
    %260 = arith.divf %258, %259 : vector<8x32xf32>
    %261 = arith.mulf %255, %260 : vector<8x32xf32>
    %c3_164 = arith.constant 3 : index
    %c0_165 = arith.constant 0 : index
    %c0_166 = arith.constant 0 : index
    %262 = vector.load %arg14[%c3_164, %c0_165, %c0_166] : memref<4x32x32xf32, #tpu.memory_space<vmem>>, vector<1x32x32xf32>
    %263 = vector.shape_cast %262 : vector<1x32x32xf32> to vector<32x32xf32>
    %cst_167 = arith.constant dense<0.000000e+00> : vector<8x32xf32>
    %264 = tpu.matmul %261, %263, %cst_167 {dimension_numbers = #tpu.dot_dimension_numbers<[1], [0], [0], [1], [0, 0, 1, 1], [], []>} : vector<8x32xf32>, vector<32x32xf32>, vector<8x32xf32> -> vector<8x32xf32>
    %c3_168 = arith.constant 3 : index
    %c0_169 = arith.constant 0 : index
    %c0_170 = arith.constant 0 : index
    %265 = vector.load %arg15[%c3_168, %c0_169, %c0_170] : memref<4x1x32xf32, #tpu.memory_space<vmem>>, vector<1x1x32xf32>
    %266 = vector.shape_cast %265 : vector<1x1x32xf32> to vector<1x32xf32>
    %267 = vector.broadcast %266 : vector<1x32xf32> to vector<8x32xf32>
    %268 = arith.addf %264, %267 : vector<8x32xf32>
    %269 = arith.addf %189, %268 : vector<8x32xf32>
    %c0_171 = arith.constant 0 : index
    %c0_172 = arith.constant 0 : index
    %270 = vector.load %arg19[%c0_171, %c0_172] : memref<8x32xf32, #tpu.memory_space<vmem>>, vector<8x32xf32>
    tpu.vector_store %arg19[%c0_171, %c0_172], %269 {strides = array<i32>} : memref<8x32xf32, #tpu.memory_space<vmem>>, vector<8x32xf32>,
    %c0_173 = arith.constant 0 : index
    %c0_174 = arith.constant 0 : index
    %271 = vector.load %arg20[%c0_173, %c0_174] : memref<8x8xf32, #tpu.memory_space<vmem>>, vector<8x8xf32>
    tpu.vector_store %arg20[%c0_173, %c0_174], %246 {strides = array<i32>} : memref<8x8xf32, #tpu.memory_space<vmem>>, vector<8x8xf32>,
    return
  }
}

</mosaic_0001>

<bundles_post_ra>
// kernel: tpu_custom_call.1
= control target key start
LH: loop header
LB: loop body
LE: loop exit
PB: predicated region body
PF: predicated region fallthrough
CT: control target
= control target key end

     0   :  { %s7564_s0 = inlined_call_operand.vmem [shape: f32[8,4], index: 0, kind: input, shape index: {}]   ;;  %s7565_s1 = inlined_call_operand.vmem [shape: f32[8,8], index: 1, kind: input, shape index: {}]   ;;  %s7566_s2 = inlined_call_operand.vmem [shape: f32[56,8], index: 2, kind: input, shape index: {}]   ;;  %s7567_s3 = inlined_call_operand.vmem [shape: f32[56,8], index: 3, kind: input, shape index: {}]   ;;  %s7568_s4 = inlined_call_operand.vmem [shape: f32[8,1], index: 4, kind: input, shape index: {}]   ;;  %s7569_s5 = inlined_call_operand.vmem [shape: f32[4,32], index: 5, kind: input, shape index: {}]   ;;  %s7570_s6 = inlined_call_operand.vmem [shape: f32[1,32], index: 6, kind: input, shape index: {}]   ;;  %s7571_s7 = inlined_call_operand.vmem [shape: f32[4,64,32], index: 7, kind: input, shape index: {}]   ;;  %s7572_s8 = inlined_call_operand.vmem [shape: f32[4,1,32], index: 8, kind: input, shape index: {}]   ;;  %s7573_s9 = inlined_call_operand.vmem [shape: f32[4,1,32], index: 9, kind: input, shape index: {}]   ;;  %s7574_s10 = inlined_call_operand.vmem [shape: f32[4,32,32], index: 10, kind: input, shape index: {}]   ;;  %s7575_s11 = inlined_call_operand.vmem [shape: f32[4,1,32], index: 11, kind: input, shape index: {}]   ;;  %s7576_s12 = inlined_call_operand.vmem [shape: f32[4,64,32], index: 12, kind: input, shape index: {}]   ;;  %s7577_s13 = inlined_call_operand.vmem [shape: f32[4,1,32], index: 13, kind: input, shape index: {}]   ;;  %s7578_s14 = inlined_call_operand.vmem [shape: f32[4,32,32], index: 14, kind: input, shape index: {}]   ;;  %s7579_s15 = inlined_call_operand.vmem [shape: f32[4,1,32], index: 15, kind: input, shape index: {}]   ;;  %s7580_s16 = inlined_call_operand.vmem [shape: f32[32,32], index: 16, kind: input, shape index: {}]   ;;  %s7581_s17 = inlined_call_operand.vmem [shape: f32[1,32], index: 17, kind: input, shape index: {}]   ;;  %s7582_s18 = inlined_call_operand.vmem [shape: f32[1,32], index: 18, kind: input, shape index: {}]   ;;  %s7583_s19 = inlined_call_operand.hbm [shape: f32[8,32], index: 19, kind: output, shape index: {0}]   ;;  %s7584_s20 = inlined_call_operand.hbm [shape: f32[8,8], index: 20, kind: output, shape index: {1}]  }
   0x1   :  { %7588 = sst [smem:[#allocation8_spill]] %s7564_s0 }
   0x2   :  { %7589 = sst [smem:[#allocation9_spill]] %s7565_s1 }
   0x3   :  { %7590 = sst [smem:[#allocation10_spill]] %s7566_s2 }
   0x4   :  { %7591 = sst [smem:[#allocation11_spill]] %s7567_s3 }
   0x5   :  { %7592 = sst [smem:[#allocation12_spill]] %s7568_s4 }
   0x6   :  { %26 = vsyncpa [#allocation3], 0  ;;  %v83_v0 = vld [vmem:[%s7569_s5] sm:$0xf]  ;;  %vm95_vm0 = vcmask 1043456   ;;  %s7593_s2 = sld [smem:[#allocation8_spill]] }
   0x7   :  { %v6036_v2 = vmov 0.0   ;;  %vm6037_vm1 = vmmov 0   ;;  %vm91_vm2 = vcmask 31744   ;;  %s7594_s26 = sld [smem:[#allocation9_spill]]  ;;  %vm169_vm3 = vcmask 64512  }
   0x8   :  { %4968 = vmatprep.subr.mxu0 %v6036_v2  ;;  %4970 = vmatprep.mubr.msk.f32.mxu0 %vm6037_vm1, %v6036_v2  ;;  %s7595_s28 = sld [smem:[#allocation10_spill]] }
   0x9   :  { %4969 = vmatpush3.msk.msra.mxu0 %vm95_vm0, %v83_v0  ;;  %4973 = vmatprep.subr.mxu1 %v6036_v2  ;;  %s7596_s30 = sld [smem:[#allocation11_spill]] }
   0xa   :  { %4996 = vmatprep.subr.mxu0 %v6036_v2 }
   0xc   :  { %v82_v1 = vld [vmem:[%s7593_s2] sm:$0xff] }
   0xd   :  { %v80_v3 = vld [vmem:[%s7594_s26] sm:$0xff]  ;;  %4971 = vmatmul.mubr.msk.f32.vlgmr.msra.gmra.mxu0 %vm91_vm2, %v82_v1 }
   0xe   :  { %v6164_v4 = vld [vmem:[%s7595_s28] sm:$0xff]  ;;  %4997 = vmatpush3.msra.mxu0 %v80_v3  ;;  %4998 = vmatprep.mubr.msk.f32.mxu0 %vm6037_vm1, %v6036_v2 }
   0xf   :  { %v6171_v5 = vld [vmem:[%s7596_s30] sm:$0xff] }
  0x10   :  { %27 = vsyncpa [#allocation5], 0  ;;  %4974 = vmatpush3.msra.mxu1 %v80_v3  ;;  %4975 = vmatprep.mubr.msk.f32.mxu1 %vm6037_vm1, %v6036_v2  ;;  %v6185_v6 = vld [vmem:[%s7595_s28 + $0x8] sm:$0xff]  ;;  %v6204_v8 = vld [vmem:[%s7595_s28 + $0x10] sm:$0xff]  ;;  %s6038_s21 = smov 32   ;;  %vm675_vm4 = vcmask 261120  }
  0x11   :  { %4976 = vmatmul.mubr.msk.f32.vlgmr.msra.gmra.mxu1 %vm169_vm3, %v6164_v4  ;;  %5019 = vmatprep.subr.mxu1 %v6036_v2  ;;  %v6192_v7 = vld [vmem:[%s7596_s30 + $0x8] sm:$0xff]  ;;  %v6211_v9 = vld [vmem:[%s7596_s30 + $0x10] sm:$0xff]  ;;  %v6224_v10 = vld [vmem:[%s7596_s30 + $0x18] sm:$0xff]  ;;  %vm705_vm5 = vcmask 523264   ;;  %vm1103_vm6 = vcmask 457728   ;;  %s7597_s1 = sld [smem:[#allocation12_spill]] }
  0x12   :  { %4999 = vmatmul.mubr.msk.f32.vlgmr.msra.gmra.mxu0 %vm169_vm3, %v6171_v5  ;;  %4978 = vmatprep.mubr.msk.f32.mxu1 %vm6037_vm1, %v6036_v2  ;;  %v6233_v11 = vld [vmem:[%s7596_s30 + $0x20] sm:$0xff]  ;;  %v6242_v12 = vld [vmem:[%s7596_s30 + $0x28] sm:$0xff]  ;;  %v6251_v13 = vld [vmem:[%s7595_s28 + $0x18] sm:$0xff]  ;;  %s6040_s23 = smov [#allocation4]  }
  0x13   :  { %5001 = vmatprep.mubr.msk.f32.mxu0 %vm6037_vm1, %v6036_v2  ;;  %5042 = vmatprep.subr.mxu0 %v6036_v2  ;;  %v6260_v14 = vld [vmem:[%s7595_s28 + $0x20] sm:$0xff]  ;;  %v6269_v15 = vld [vmem:[%s7595_s28 + $0x28] sm:$0xff]  ;;  %v6276_v16 = vld [vmem:[%s7596_s30 + $0x30] sm:$0xff]  ;;  %s4338_s24 = sshll.u32 %s6040_s23, 4  ;;  %s4339_s24 = int_to_ptr.vmem [resolvable:$true] %s4338_s24 }
  0x14   :  { %v6287_v17 = vld [vmem:[%s7595_s28 + $0x30] sm:$0xff]  ;;  %v4350_v18 = vld [vmem:[%s7570_s6] ss:$0 sm:$0xff]  ;;  %v690_v57 = vld [vmem:[%s7571_s7 + $0x38] sm:$0xff]  ;;  %p5997_p1 = scmp.lt.s32.totalorder %s4339_s24, %s4339_s24 }
  0x15   :  { %4979 = vmatmul.mubr.msk.f32.gmra.mxu1 %vm169_vm3, %v6185_v6  ;;  %v689_v58 = vld [vmem:[%s7571_s7 + $0x30] sm:$0xff]  ;;  %v688_v59 = vld [vmem:[%s7571_s7 + $0x28] sm:$0xff]  ;;  %v687_v60 = vld [vmem:[%s7571_s7 + $0x20] sm:$0xff] }
  0x16   :  { %5002 = vmatmul.mubr.msk.f32.gmra.mxu0 %vm169_vm3, %v6192_v7  ;;  %4981 = vmatprep.mubr.msk.f32.mxu1 %vm6037_vm1, %v6036_v2  ;;  %v686_v61 = vld [vmem:[%s7571_s7 + $0x18] sm:$0xff]  ;;  %v685_v62 = vld [vmem:[%s7571_s7 + $0x10] sm:$0xff]  ;;  %v684_v63 = vld [vmem:[%s7571_s7 + $0x8] sm:$0xff] }
  0x17   :  { %5004 = vmatprep.mubr.msk.f32.mxu0 %vm6037_vm1, %v6036_v2  ;;  %v683_v0 = vld [vmem:[%s7571_s7] sm:$0xff] }
  0x19   :  { %4982 = vmatmul.mubr.msk.f32.gmra.mxu1 %vm169_vm3, %v6204_v8 }
  0x1a   :  { %5005 = vmatmul.mubr.msk.f32.gmra.mxu0 %vm169_vm3, %v6211_v9  ;;  %4984 = vmatprep.mubr.msk.f32.mxu1 %vm6037_vm1, %v6036_v2 }
  0x1b   :  { %5007 = vmatprep.mubr.msk.f32.mxu0 %vm6037_vm1, %v6036_v2 }
  0x1d   :  { %4985 = vmatmul.mubr.msk.f32.gmra.mxu1 %vm169_vm3, %v6251_v13 }
  0x1e   :  { %5008 = vmatmul.mubr.msk.f32.gmra.mxu0 %vm169_vm3, %v6224_v10  ;;  %4987 = vmatprep.mubr.msk.f32.mxu1 %vm6037_vm1, %v6036_v2 }
  0x1f   :  { %5010 = vmatprep.mubr.msk.f32.mxu0 %vm6037_vm1, %v6036_v2 }
  0x21   :  { %4988 = vmatmul.mubr.msk.f32.gmra.mxu1 %vm169_vm3, %v6260_v14 }
  0x22   :  { %5011 = vmatmul.mubr.msk.f32.gmra.mxu0 %vm169_vm3, %v6233_v11  ;;  %4990 = vmatprep.mubr.msk.f32.mxu1 %vm6037_vm1, %v6036_v2 }
  0x23   :  { %5013 = vmatprep.mubr.msk.f32.mxu0 %vm6037_vm1, %v6036_v2 }
  0x25   :  { %4991 = vmatmul.mubr.msk.f32.gmra.mxu1 %vm169_vm3, %v6269_v15 }
  0x26   :  { %5014 = vmatmul.mubr.msk.f32.gmra.mxu0 %vm169_vm3, %v6242_v12  ;;  %4993 = vmatprep.mubr.msk.f32.mxu1 %vm6037_vm1, %v6036_v2 }
  0x27   :  { %5016 = vmatprep.mubr.msk.f32.mxu0 %vm6037_vm1, %v6036_v2 }
  0x29   :  { %4994 = vmatmul.mubr.msk.f32.gmra.mxu1 %vm169_vm3, %v6287_v17 }
  0x2a   :  { %5017 = vmatmul.mubr.msk.f32.gmra.mxu0 %vm169_vm3, %v6276_v16  ;;  %5021 = vmatprep.mubr.msk.f32.mxu1 %vm6037_vm1, %v6036_v2 }
  0x2b   :  { %5044 = vmatprep.mubr.msk.f32.mxu0 %vm6037_vm1, %v6036_v2 }
  0xcd   :  { %v165_v19 = vpop.f32.mrf.mxu0 }
  0xce   :  { %v6296_v20 = vadd.f32 %v4350_v18, %v165_v19 }
  0xcf   :  { %v4972_v21 = vpop.f32.mrf.mxu0 }
  0xd0   :  { %5020 = vmatpush3.msra.mxu1 %v6296_v20  ;;  %5043 = vmatpush3.msra.mxu0 %v6296_v20 }
  0xd1   :  { %v257_v22 = vpop.f32.mrf.mxu1  ;;  %5045 = vmatmul.mubr.msk.f32.vlgmr.msra.gmra.mxu0 %vm169_vm3, %v6171_v5  ;;  %5022 = vmatmul.mubr.msk.f32.vlgmr.msra.gmra.mxu1 %vm169_vm3, %v6164_v4 }
  0xd2   :  { %v378_v23 = vpop.f32.mrf.mxu0  ;;  %5047 = vmatprep.mubr.msk.f32.mxu0 %vm6037_vm1, %v6036_v2  ;;  %5024 = vmatprep.mubr.msk.f32.mxu1 %vm6037_vm1, %v6036_v2 }
  0xd3   :  { %v6308_v24 = vsub.f32 %v257_v22, %v378_v23  ;;  %v4977_v25 = vpop.f32.mrf.mxu1  ;;  %5065 = vmatprep.subr.mxu1 %v6036_v2  ;;  %5102 = vmatprep.subr.mxu0 %v6036_v2 }
  0xd4   :  { %v5000_v26 = vpop.f32.mrf.mxu0  ;;  %5066 = vmatpush3.msra.mxu1 %v690_v57 }
  0xd5   :  { %v262_v27 = vpop.f32.mrf.mxu1  ;;  %5048 = vmatmul.mubr.msk.f32.gmra.mxu0 %vm169_vm3, %v6192_v7  ;;  %5025 = vmatmul.mubr.msk.f32.gmra.mxu1 %vm169_vm3, %v6185_v6 }
  0xd6   :  { %v383_v28 = vpop.f32.mrf.mxu0  ;;  %5050 = vmatprep.mubr.msk.f32.mxu0 %vm6037_vm1, %v6036_v2  ;;  %5027 = vmatprep.mubr.msk.f32.mxu1 %vm6037_vm1, %v6036_v2 }
  0xd7   :  { %v6320_v29 = vsub.f32 %v262_v27, %v383_v28  ;;  %v4980_v30 = vpop.f32.mrf.mxu1  ;;  %5067 = vmatprep.subr.mxu1 %v6036_v2 }
  0xd8   :  { %v5003_v31 = vpop.f32.mrf.mxu0  ;;  %5068 = vmatpush3.msra.mxu1 %v689_v58 }
  0xd9   :  { %v267_v32 = vpop.f32.mrf.mxu1  ;;  %5051 = vmatmul.mubr.msk.f32.gmra.mxu0 %vm169_vm3, %v6211_v9  ;;  %5028 = vmatmul.mubr.msk.f32.gmra.mxu1 %vm169_vm3, %v6204_v8 }
  0xda   :  { %v388_v33 = vpop.f32.mrf.mxu0  ;;  %5053 = vmatprep.mubr.msk.f32.mxu0 %vm6037_vm1, %v6036_v2  ;;  %5030 = vmatprep.mubr.msk.f32.mxu1 %vm6037_vm1, %v6036_v2 }
  0xdb   :  { %v6330_v34 = vsub.f32 %v267_v32, %v388_v33  ;;  %v4983_v35 = vpop.f32.mrf.mxu1  ;;  %5069 = vmatprep.subr.mxu1 %v6036_v2 }
  0xdc   :  { %v5006_v36 = vpop.f32.mrf.mxu0  ;;  %5070 = vmatpush3.msra.mxu1 %v688_v59 }
  0xdd   :  { %5054 = vmatmul.mubr.msk.f32.gmra.mxu0 %vm169_vm3, %v6224_v10  ;;  %5031 = vmatmul.mubr.msk.f32.gmra.mxu1 %vm169_vm3, %v6251_v13  ;;  %v272_v43 = vpop.f32.mrf.mxu1 }
  0xde   :  { %v393_v37 = vpop.f32.mrf.mxu0  ;;  %5056 = vmatprep.mubr.msk.f32.mxu0 %vm6037_vm1, %v6036_v2  ;;  %5033 = vmatprep.mubr.msk.f32.mxu1 %vm6037_vm1, %v6036_v2 }
  0xdf   :  { %v6364_v44 = vsub.f32 %v272_v43, %v393_v37  ;;  %v4986_v45 = vpop.f32.mrf.mxu1  ;;  %5071 = vmatprep.subr.mxu1 %v6036_v2 }
  0xe0   :  { %v5009_v38 = vpop.f32.mrf.mxu0  ;;  %5072 = vmatpush3.msra.mxu1 %v687_v60 }
  0xe1   :  { %5057 = vmatmul.mubr.msk.f32.gmra.mxu0 %vm169_vm3, %v6233_v11  ;;  %5034 = vmatmul.mubr.msk.f32.gmra.mxu1 %vm169_vm3, %v6260_v14  ;;  %v277_v46 = vpop.f32.mrf.mxu1  ;;  %v422_v57 = vmul.f32 %v6364_v44, %v6364_v44 }
  0xe2   :  { %v398_v39 = vpop.f32.mrf.mxu0  ;;  %5059 = vmatprep.mubr.msk.f32.mxu0 %vm6037_vm1, %v6036_v2  ;;  %5036 = vmatprep.mubr.msk.f32.mxu1 %vm6037_vm1, %v6036_v2 }
  0xe3   :  { %v6366_v47 = vsub.f32 %v277_v46, %v398_v39  ;;  %v4989_v48 = vpop.f32.mrf.mxu1  ;;  %5073 = vmatprep.subr.mxu1 %v6036_v2  ;;  %v435_v60 = vsel %vm169_vm3, %v422_v57, 0.0 }
  0xe4   :  { %v5012_v40 = vpop.f32.mrf.mxu0  ;;  %5074 = vmatpush3.msra.mxu1 %v686_v61 }
  0xe5   :  { %5060 = vmatmul.mubr.msk.f32.gmra.mxu0 %vm169_vm3, %v6242_v12  ;;  %5037 = vmatmul.mubr.msk.f32.gmra.mxu1 %vm169_vm3, %v6269_v15  ;;  %v282_v49 = vpop.f32.mrf.mxu1  ;;  %v423_v59 = vmul.f32 %v6366_v47, %v6366_v47 }
  0xe6   :  { %v403_v41 = vpop.f32.mrf.mxu0  ;;  %5062 = vmatprep.mubr.msk.f32.mxu0 %vm6037_vm1, %v6036_v2  ;;  %5039 = vmatprep.mubr.msk.f32.mxu1 %vm6037_vm1, %v6036_v2 }
  0xe7   :  { %v6368_v50 = vsub.f32 %v282_v49, %v403_v41  ;;  %v4992_v52 = vpop.f32.mrf.mxu1  ;;  %5075 = vmatprep.subr.mxu1 %v6036_v2 }
  0xe8   :  { %v5015_v42 = vpop.f32.mrf.mxu0  ;;  %5076 = vmatpush3.msra.mxu1 %v685_v62  ;;  %v419_v52 = vmul.f32 %v6308_v24, %v6308_v24  ;;  %v438_v62 = vsel %vm169_vm3, %v423_v59, 0.0 }
  0xe9   :  { %5063 = vmatmul.mubr.msk.f32.gmra.mxu0 %vm169_vm3, %v6276_v16  ;;  %5040 = vmatmul.mubr.msk.f32.gmra.mxu1 %vm169_vm3, %v6287_v17  ;;  %v287_v54 = vpop.f32.mrf.mxu1  ;;  %v424_v61 = vmul.f32 %v6368_v50, %v6368_v50 }
  0xea   :  { %5081 = vmatprep.mubr.msk.f32.mxu1 %vm6037_vm1, %v6036_v2  ;;  %5110 = vmatprep.mubr.msk.f32.mxu0 %vm6037_vm1, %v6036_v2  ;;  %v408_v51 = vpop.f32.mrf.mxu0 }
  0xeb   :  { %v6370_v55 = vsub.f32 %v287_v54, %v408_v51  ;;  %v4995_v56 = vpop.f32.mrf.mxu1  ;;  %5077 = vmatprep.subr.mxu1 %v6036_v2  ;;  %v420_v51 = vmul.f32 %v6320_v29, %v6320_v29  ;;  %v421_v54 = vmul.f32 %v6330_v34, %v6330_v34 }
  0xec   :  { %v5018_v53 = vpop.f32.mrf.mxu0  ;;  %5078 = vmatpush3.msra.mxu1 %v684_v63  ;;  %v426_v56 = vsel %vm169_vm3, %v419_v52, 0.0 }
  0xed   :  { %5079 = vmatprep.subr.mxu1 %v6036_v2  ;;  %v429_v53 = vsel %vm169_vm3, %v420_v51, 0.0  ;;  %v432_v58 = vsel %vm169_vm3, %v421_v54, 0.0  ;;  %v425_v63 = vmul.f32 %v6370_v55, %v6370_v55 }
  0xee   :  { %5080 = vmatpush3.msra.mxu1 %v683_v0  ;;  %v441_v0 = vsel %vm169_vm3, %v424_v61, 0.0 }
  0xef   :  { %5131 = vmatprep.subr.mxu1 %v6036_v2 }
 0x191   :  { %v613_v1 = vpop.f32.mrf.mxu0  ;;  %v513_v3 = vpop.f32.mrf.mxu1 }
 0x192   :  { %654 = vrot.lane.b32.xlu0 %v613_v1, %s6038_s21  ;;  %v444_v1 = vsel %vm169_vm3, %v425_v63, 0.0 }
 0x193   :  { %v5046_v18 = vpop.f32.mrf.mxu0  ;;  %v5023_v19 = vpop.f32.mrf.mxu1 }
 0x195   :  { %v618_v21 = vpop.f32.mrf.mxu0  ;;  %v518_v22 = vpop.f32.mrf.mxu1 }
 0x196   :  { %656 = vrot.lane.b32.xlu0 %v618_v21, %s6038_s21 }
 0x197   :  { %v5049_v23 = vpop.f32.mrf.mxu0  ;;  %v5026_v25 = vpop.f32.mrf.mxu1 }
 0x199   :  { %v623_v26 = vpop.f32.mrf.mxu0  ;;  %v523_v27 = vpop.f32.mrf.mxu1 }
 0x19a   :  { %658 = vrot.lane.b32.xlu1 %v623_v26, %s6038_s21 }
 0x19b   :  { %v5052_v28 = vpop.f32.mrf.mxu0  ;;  %v5029_v30 = vpop.f32.mrf.mxu1 }
 0x19d   :  { %v628_v31 = vpop.f32.mrf.mxu0  ;;  %v528_v32 = vpop.f32.mrf.mxu1 }
 0x19e   :  { %660 = vrot.lane.b32.xlu1 %v628_v31, %s6038_s21 }
 0x19f   :  { %v5055_v33 = vpop.f32.mrf.mxu0  ;;  %v5032_v35 = vpop.f32.mrf.mxu1 }
 0x1a0   :  { %v893_v35 = vld [vmem:[%s7574_s10 + $0x18] sm:$0xff] }
 0x1a1   :  { %v633_v36 = vpop.f32.mrf.mxu0  ;;  %v533_v37 = vpop.f32.mrf.mxu1  ;;  %5103 = vmatpush3.msra.mxu0 %v893_v35 }
 0x1a2   :  { %662 = vrot.lane.b32.xlu0 %v633_v36, %s6038_s21  ;;  %5104 = vmatprep.subr.mxu0 %v6036_v2  ;;  %v892_v36 = vld [vmem:[%s7574_s10 + $0x10] sm:$0xff] }
 0x1a3   :  { %v5058_v38 = vpop.f32.mrf.mxu0  ;;  %v5035_v39 = vpop.f32.mrf.mxu1  ;;  %5105 = vmatpush3.msra.mxu0 %v892_v36 }
 0x1a4   :  { %5106 = vmatprep.subr.mxu0 %v6036_v2  ;;  %v890_v38 = vld [vmem:[%s7574_s10] sm:$0xff] }
 0x1a5   :  { %v638_v40 = vpop.f32.mrf.mxu0  ;;  %v538_v41 = vpop.f32.mrf.mxu1 }
 0x1a6   :  { %664 = vrot.lane.b32.xlu1 %v638_v40, %s6038_s21  ;;  %v4381_v40 = vld [vmem:[%s7572_s8] ss:$0 sm:$0xff] }
 0x1a7   :  { %v5061_v42 = vpop.f32.mrf.mxu0  ;;  %v5038_v43 = vpop.f32.mrf.mxu1 }
 0x1a9   :  { %v643_v45 = vpop.f32.mrf.mxu0  ;;  %v543_v46 = vpop.f32.mrf.mxu1 }
 0x1aa   :  { %666 = vrot.lane.b32.xlu0 %v643_v45, %s6038_s21  ;;  %v4389_v45 = vld [vmem:[%s7573_s9] ss:$0 sm:$0xff] }
 0x1ab   :  { %v5064_v48 = vpop.f32.mrf.mxu0  ;;  %v5041_v49 = vpop.f32.mrf.mxu1 }
 0x1c9   :  { %430 = vadd.xlane.f32.xlu0 %v429_v53 }
 0x1ca   :  { %427 = vadd.xlane.f32.xlu1 %v426_v56 }
 0x1cd   :  { %433 = vadd.xlane.f32.xlu0 %v432_v58 }
 0x1ce   :  { %436 = vadd.xlane.f32.xlu1 %v435_v60 }
 0x1d1   :  { %439 = vadd.xlane.f32.xlu0 %v438_v62 }
 0x1d2   :  { %442 = vadd.xlane.f32.xlu1 %v441_v0 }
 0x1d5   :  { %445 = vadd.xlane.f32.xlu0 %v444_v1 }
 0x204   :  { %v655_v18 = vpop.permute.xlu0 %654 }
 0x205   :  { %v676_v19 = vsel %vm675_vm4, %v513_v3, %v655_v18  ;;  %1071 = vxpose.xlu1.b32.start [1/7] (short) (narrow) %v6164_v4, 8 }
 0x206   :  { %5082 = vmatmul.mubr.msk.f32.vlgmr.msra.gmra.mxu1 %vm705_vm5, %v676_v19 }
 0x207   :  { %5084 = vmatprep.mubr.msk.f32.mxu1 %vm6037_vm1, %v6036_v2 }
 0x208   :  { %v657_v21 = vpop.permute.xlu0 %656 }
 0x209   :  { %v677_v23 = vsel %vm675_vm4, %v518_v22, %v657_v21  ;;  %1072 = vxpose.xlu1.b32.cont [2/7] (short) (narrow) %v6185_v6, 8 }
 0x20a   :  { %5085 = vmatmul.mubr.msk.f32.gmra.mxu1 %vm705_vm5, %v677_v23 }
 0x20b   :  { %5087 = vmatprep.mubr.msk.f32.mxu1 %vm6037_vm1, %v6036_v2 }
 0x20c   :  { %v659_v25 = vpop.permute.xlu1 %658 }
 0x20d   :  { %v678_v3 = vsel %vm675_vm4, %v523_v27, %v659_v25  ;;  %1073 = vxpose.xlu1.b32.cont [3/7] (short) (narrow) %v6204_v8, 8 }
 0x20e   :  { %5088 = vmatmul.mubr.msk.f32.gmra.mxu1 %vm705_vm5, %v678_v3 }
 0x20f   :  { %5090 = vmatprep.mubr.msk.f32.mxu1 %vm6037_vm1, %v6036_v2 }
 0x210   :  { %v661_v26 = vpop.permute.xlu1 %660 }
 0x211   :  { %v679_v22 = vsel %vm675_vm4, %v528_v32, %v661_v26  ;;  %1074 = vxpose.xlu1.b32.cont [4/7] (short) (narrow) %v6251_v13, 8 }
 0x212   :  { %5091 = vmatmul.mubr.msk.f32.gmra.mxu1 %vm705_vm5, %v679_v22 }
 0x213   :  { %5093 = vmatprep.mubr.msk.f32.mxu1 %vm6037_vm1, %v6036_v2 }
 0x214   :  { %v663_v28 = vpop.permute.xlu0 %662 }
 0x215   :  { %v680_v27 = vsel %vm675_vm4, %v533_v37, %v663_v28  ;;  %1075 = vxpose.xlu1.b32.cont [5/7] (short) (narrow) %v6260_v14, 8  ;;  %v891_v37 = vld [vmem:[%s7574_s10 + $0x8] sm:$0xff] }
 0x216   :  { %5094 = vmatmul.mubr.msk.f32.gmra.mxu1 %vm705_vm5, %v680_v27  ;;  %5107 = vmatpush3.msra.mxu0 %v891_v37 }
 0x217   :  { %5096 = vmatprep.mubr.msk.f32.mxu1 %vm6037_vm1, %v6036_v2  ;;  %5108 = vmatprep.subr.mxu0 %v6036_v2 }
 0x218   :  { %v665_v30 = vpop.permute.xlu1 %664  ;;  %5109 = vmatpush3.msra.mxu0 %v890_v38 }
 0x219   :  { %v681_v31 = vsel %vm675_vm4, %v538_v41, %v665_v30  ;;  %1076 = vxpose.xlu1.b32.cont [6/7] (short) (narrow) %v6269_v15, 8  ;;  %5148 = vmatprep.subr.mxu0 %v6036_v2 }
 0x21a   :  { %5097 = vmatmul.mubr.msk.f32.gmra.mxu1 %vm705_vm5, %v681_v31 }
 0x21b   :  { %5099 = vmatprep.mubr.msk.f32.mxu1 %vm6037_vm1, %v6036_v2 }
 0x21c   :  { %v667_v32 = vpop.permute.xlu0 %666 }
 0x21d   :  { %v682_v33 = vsel %vm675_vm4, %v543_v46, %v667_v32  ;;  %1077 = vxpose.xlu1.b32.end [7/7] (short) (narrow) %v6287_v17, 8 }
 0x21e   :  { %5100 = vmatmul.mubr.msk.f32.gmra.mxu1 %vm705_vm5, %v682_v33 }
 0x21f   :  { %5145 = vmatprep.mubr.msk.f32.mxu1 %vm6037_vm1, %v6036_v2 }
 0x252   :  { %v6488_v41 = vpop.xlane.xlu0 %430 }
 0x253   :  { %v6483_v39 = vpop.xlane.xlu1 %427  ;;  %v699_v51 = vmul.f32 %v4381_v40, %v6488_v41 }
 0x254   :  { %v698_v42 = vmul.f32 %v4381_v40, %v6483_v39 }
 0x256   :  { %v6497_v52 = vpop.xlane.xlu0 %433 }
 0x257   :  { %v700_v59 = vmul.f32 %v4381_v40, %v6497_v52  ;;  %v6503_v60 = vpop.xlane.xlu1 %436 }
 0x258   :  { %v701_v18 = vmul.f32 %v4381_v40, %v6503_v60 }
 0x25a   :  { %v6507_v19 = vpop.xlane.xlu0 %439 }
 0x25b   :  { %v702_v22 = vmul.f32 %v4381_v40, %v6507_v19  ;;  %v6510_v28 = vpop.xlane.xlu1 %442 }
 0x25c   :  { %v703_v35 = vmul.f32 %v4381_v40, %v6510_v28 }
 0x25e   :  { %v6513_v37 = vpop.xlane.xlu0 %445 }
 0x2c6   :  { %v793_v43 = vpop.f32.mrf.mxu1 }
 0x2c7   :  { %v794_v46 = vadd.f32 %v793_v43, %v698_v42 }
 0x2c8   :  { %v5083_v48 = vpop.f32.mrf.mxu1 }
 0x2c9   :  { %v6494_v49 = vadd.f32 %v4389_v45, %v794_v46 }
 0x2ca   :  { %v798_v53 = vpop.f32.mrf.mxu1 }
 0x2cb   :  { %v4390_v54 = vmul.f32 -1.442695, %v6494_v49  ;;  %v799_v56 = vadd.f32 %v798_v53, %v699_v51  ;;  %v704_v53 = vmul.f32 %v4381_v40, %v6513_v37 }
 0x2cc   :  { %v5086_v57 = vpop.f32.mrf.mxu1 }
 0x2cd   :  { %5709 = vpow2.f32 %v4390_v54  ;;  %v6500_v58 = vadd.f32 %v4389_v45, %v799_v56 }
 0x2ce   :  { %v803_v61 = vpop.f32.mrf.mxu1 }
 0x2cf   :  { %v4391_v62 = vmul.f32 -1.442695, %v6500_v58  ;;  %v804_v63 = vadd.f32 %v803_v61, %v700_v59 }
 0x2d0   :  { %v5089_v0 = vpop.f32.mrf.mxu1 }
 0x2d1   :  { %5711 = vpow2.f32 %v4391_v62  ;;  %v836_v1 = vadd.f32 %v4389_v45, %v804_v63 }
 0x2d2   :  { %v808_v21 = vpop.f32.mrf.mxu1 }
 0x2d3   :  { %v4392_v23 = vmul.f32 -1.442695, %v836_v1  ;;  %v809_v25 = vadd.f32 %v808_v21, %v701_v18 }
 0x2d4   :  { %v5092_v3 = vpop.f32.mrf.mxu1 }
 0x2d5   :  { %5713 = vpow2.f32 %v4392_v23  ;;  %v837_v26 = vadd.f32 %v4389_v45, %v809_v25 }
 0x2d6   :  { %v813_v27 = vpop.f32.mrf.mxu1 }
 0x2d7   :  { %v4393_v30 = vmul.f32 -1.442695, %v837_v26  ;;  %v814_v31 = vadd.f32 %v813_v27, %v702_v22 }
 0x2d8   :  { %v5095_v32 = vpop.f32.mrf.mxu1 }
 0x2d9   :  { %5715 = vpow2.f32 %v4393_v30  ;;  %v838_v33 = vadd.f32 %v4389_v45, %v814_v31 }
 0x2da   :  { %v5710_v36 = vpop.eup %5709  ;;  %v818_v38 = vpop.f32.mrf.mxu1 }
 0x2db   :  { %v862_v42 = vadd.f32 1.0, %v5710_v36  ;;  %v4394_v43 = vmul.f32 -1.442695, %v838_v33  ;;  %v819_v46 = vadd.f32 %v818_v38, %v703_v35 }
 0x2dc   :  { %v5098_v48 = vpop.f32.mrf.mxu1 }
 0x2dd   :  { %5717 = vrcp.f32 %v862_v42  ;;  %v839_v51 = vadd.f32 %v4389_v45, %v819_v46 }
 0x2de   :  { %v5712_v54 = vpop.eup %5711  ;;  %5719 = vpow2.f32 %v4394_v43  ;;  %v823_v56 = vpop.f32.mrf.mxu1 }
 0x2df   :  { %v863_v57 = vadd.f32 1.0, %v5712_v54  ;;  %v4395_v59 = vmul.f32 -1.442695, %v839_v51  ;;  %v824_v61 = vadd.f32 %v823_v56, %v704_v53 }
 0x2e0   :  { %v5101_v62 = vpop.f32.mrf.mxu1 }
 0x2e1   :  { %5721 = vrcp.f32 %v863_v57  ;;  %v840_v63 = vadd.f32 %v4389_v45, %v824_v61 }
 0x2e2   :  { %v5714_v0 = vpop.eup %5713  ;;  %5723 = vpow2.f32 %v4395_v59 }
 0x2e3   :  { %v864_v18 = vadd.f32 1.0, %v5714_v0  ;;  %v4396_v21 = vmul.f32 -1.442695, %v840_v63 }
 0x2e5   :  { %5725 = vrcp.f32 %v864_v18  ;;  %v4397_v18 = vld [vmem:[%s7575_s11] ss:$0 sm:$0xff] }
 0x2e6   :  { %v5716_v23 = vpop.eup %5715  ;;  %5727 = vpow2.f32 %v4396_v21 }
 0x2e7   :  { %v865_v25 = vadd.f32 1.0, %v5716_v23 }
 0x2e9   :  { %5729 = vrcp.f32 %v865_v25 }
 0x2ea   :  { %v5718_v3 = vpop.eup %5717 }
 0x2eb   :  { %v5720_v40 = vpop.eup %5719  ;;  %v883_v22 = vmul.f32 %v5718_v3, %v6494_v49 }
 0x2ec   :  { %v866_v27 = vadd.f32 1.0, %v5720_v40 }
 0x2ed   :  { %5111 = vmatmul.mubr.msk.f32.vlgmr.msra.gmra.mxu0 %vm675_vm4, %v883_v22 }
 0x2ee   :  { %v5722_v30 = vpop.eup %5721  ;;  %5731 = vrcp.f32 %v866_v27  ;;  %5113 = vmatprep.mubr.msk.f32.mxu0 %vm6037_vm1, %v6036_v2 }
 0x2ef   :  { %v5724_v45 = vpop.eup %5723  ;;  %v884_v31 = vmul.f32 %v5722_v30, %v6500_v58 }
 0x2f0   :  { %v867_v32 = vadd.f32 1.0, %v5724_v45 }
 0x2f1   :  { %5114 = vmatmul.mubr.msk.f32.gmra.mxu0 %vm675_vm4, %v884_v31 }
 0x2f2   :  { %v5726_v35 = vpop.eup %5725  ;;  %5733 = vrcp.f32 %v867_v32  ;;  %5116 = vmatprep.mubr.msk.f32.mxu0 %vm6037_vm1, %v6036_v2 }
 0x2f3   :  { %v5728_v49 = vpop.eup %5727  ;;  %v885_v36 = vmul.f32 %v5726_v35, %v836_v1 }
 0x2f4   :  { %v868_v38 = vadd.f32 1.0, %v5728_v49 }
 0x2f5   :  { %5117 = vmatmul.mubr.msk.f32.gmra.mxu0 %vm675_vm4, %v885_v36 }
 0x2f6   :  { %v5730_v42 = vpop.eup %5729  ;;  %5735 = vrcp.f32 %v868_v38  ;;  %5119 = vmatprep.mubr.msk.f32.mxu0 %vm6037_vm1, %v6036_v2 }
 0x2f7   :  { %v886_v43 = vmul.f32 %v5730_v42, %v837_v26 }
 0x2f9   :  { %5120 = vmatmul.mubr.msk.f32.gmra.mxu0 %vm675_vm4, %v886_v43 }
 0x2fa   :  { %5122 = vmatprep.mubr.msk.f32.mxu0 %vm6037_vm1, %v6036_v2 }
 0x2fb   :  { %v5732_v58 = vpop.eup %5731 }
 0x2fc   :  { %v887_v46 = vmul.f32 %v5732_v58, %v838_v33 }
 0x2fe   :  { %5123 = vmatmul.mubr.msk.f32.gmra.mxu0 %vm675_vm4, %v887_v46 }
 0x2ff   :  { %v5734_v48 = vpop.eup %5733  ;;  %5125 = vmatprep.mubr.msk.f32.mxu0 %vm6037_vm1, %v6036_v2 }
 0x300   :  { %v888_v1 = vmul.f32 %v5734_v48, %v839_v51 }
 0x302   :  { %5126 = vmatmul.mubr.msk.f32.gmra.mxu0 %vm675_vm4, %v888_v1 }
 0x303   :  { %v5736_v53 = vpop.eup %5735  ;;  %5128 = vmatprep.mubr.msk.f32.mxu0 %vm6037_vm1, %v6036_v2 }
 0x304   :  { %v889_v26 = vmul.f32 %v5736_v53, %v840_v63 }
 0x306   :  { %5129 = vmatmul.mubr.msk.f32.gmra.mxu0 %vm675_vm4, %v889_v26 }
 0x307   :  { %5164 = vmatprep.mubr.msk.f32.mxu0 %vm6037_vm1, %v6036_v2 }
 0x3ad   :  { %v988_v33 = vpop.f32.mrf.mxu0 }
 0x3ae   :  { %v989_v36 = vadd.f32 %v4397_v18, %v988_v33 }
 0x3af   :  { %v5112_v54 = vpop.f32.mrf.mxu0 }
 0x3b0   :  { %v4405_v58 = vmul.f32 -1.442695, %v989_v36 }
 0x3b1   :  { %v993_v56 = vpop.f32.mrf.mxu0 }
 0x3b2   :  { %v994_v32 = vadd.f32 %v4397_v18, %v993_v56 }
 0x3b3   :  { %v5115_v57 = vpop.f32.mrf.mxu0 }
 0x3b4   :  { %v4406_v43 = vmul.f32 -1.442695, %v994_v32 }
 0x3b5   :  { %v998_v59 = vpop.f32.mrf.mxu0 }
 0x3b6   :  { %v999_v22 = vadd.f32 %v4397_v18, %v998_v59 }
 0x3b7   :  { %v5118_v61 = vpop.f32.mrf.mxu0 }
 0x3b8   :  { %v4407_v38 = vmul.f32 -1.442695, %v999_v22 }
 0x3b9   :  { %v1003_v62 = vpop.f32.mrf.mxu0 }
 0x3ba   :  { %v1004_v23 = vadd.f32 %v4397_v18, %v1003_v62 }
 0x3bb   :  { %v5121_v51 = vpop.f32.mrf.mxu0 }
 0x3bc   :  { %v4408_v45 = vmul.f32 -1.442695, %v1004_v23 }
 0x3be   :  { %v1008_v0 = vpop.f32.mrf.mxu0 }
 0x3bf   :  { %v1009_v63 = vadd.f32 %v4397_v18, %v1008_v0 }
 0x3c0   :  { %v5124_v21 = vpop.f32.mrf.mxu0 }
 0x3c1   :  { %v4409_v27 = vmul.f32 -1.442695, %v1009_v63 }
 0x3c2   :  { %v1013_v25 = vpop.f32.mrf.mxu0 }
 0x3c3   :  { %v1014_v3 = vadd.f32 %v4397_v18, %v1013_v25 }
 0x3c4   :  { %v5127_v40 = vpop.f32.mrf.mxu0 }
 0x3c5   :  { %v4410_v30 = vmul.f32 -1.442695, %v1014_v3 }
 0x3c6   :  { %v1018_v31 = vpop.f32.mrf.mxu0 }
 0x3c7   :  { %5737 = vpow2.f32 %v4410_v30  ;;  %v1019_v35 = vadd.f32 %v4397_v18, %v1018_v31 }
 0x3c8   :  { %v5130_v49 = vpop.f32.mrf.mxu0  ;;  %5739 = vpow2.f32 %v4409_v27 }
 0x3c9   :  { %v4411_v42 = vmul.f32 -1.442695, %v1019_v35  ;;  %5741 = vpow2.f32 %v4408_v45 }
 0x3cb   :  { %5743 = vpow2.f32 %v4411_v42 }
 0x3cc   :  { %5745 = vpow2.f32 %v4407_v38 }
 0x3cd   :  { %5747 = vpow2.f32 %v4406_v43 }
 0x3ce   :  { %5749 = vpow2.f32 %v4405_v58  ;;  %v1185_v58 = vld [vmem:[%s7576_s12 + $0x18] sm:$0xff] }
 0x3d4   :  { %v5738_v46 = vpop.eup %5737 }
 0x3d5   :  { %v5740_v48 = vpop.eup %5739  ;;  %v1048_v1 = vadd.f32 1.0, %v5738_v46  ;;  %v1184_v46 = vld [vmem:[%s7576_s12 + $0x10] sm:$0xff] }
 0x3d6   :  { %v5742_v53 = vpop.eup %5741  ;;  %v1047_v54 = vadd.f32 1.0, %v5740_v48  ;;  %v1183_v48 = vld [vmem:[%s7576_s12 + $0x8] sm:$0xff] }
 0x3d7   :  { %5751 = vrcp.f32 %v1048_v1  ;;  %v1046_v33 = vadd.f32 1.0, %v5742_v53  ;;  %v1182_v1 = vld [vmem:[%s7576_s12] sm:$0xff] }
 0x3d8   :  { %v5744_v26 = vpop.eup %5743 }
 0x3d9   :  { %v1049_v56 = vadd.f32 1.0, %v5744_v26  ;;  %v5746_v57 = vpop.eup %5745 }
 0x3da   :  { %v5748_v59 = vpop.eup %5747  ;;  %v1045_v61 = vadd.f32 1.0, %v5746_v57  ;;  %v1280_v57 = vld [vmem:[%s7578_s14 + $0x18] sm:$0xff] }
 0x3db   :  { %5753 = vrcp.f32 %v1049_v56  ;;  %v5750_v62 = vpop.eup %5749  ;;  %v1044_v51 = vadd.f32 1.0, %v5748_v59  ;;  %v1278_v59 = vld [vmem:[%s7578_s14 + $0x8] sm:$0xff] }
 0x3dc   :  { %5755 = vrcp.f32 %v1047_v54  ;;  %v1043_v0 = vadd.f32 1.0, %v5750_v62  ;;  %v4413_v62 = vld [vmem:[%s7577_s13] ss:$0 sm:$0xff] }
 0x3dd   :  { %5757 = vrcp.f32 %v1046_v33  ;;  %v1279_v33 = vld [vmem:[%s7578_s14 + $0x10] sm:$0xff] }
 0x3de   :  { %5759 = vrcp.f32 %v1045_v61  ;;  %v1277_v61 = vld [vmem:[%s7578_s14] sm:$0xff] }
 0x3df   :  { %5761 = vrcp.f32 %v1044_v51 }
 0x3e0   :  { %5763 = vrcp.f32 %v1043_v0 }
 0x3e4   :  { %v5752_v18 = vpop.eup %5751 }
 0x3e5   :  { %v1069_v27 = vmul.f32 %v5752_v18, %v1014_v3 }
 0x3e8   :  { %v5754_v21 = vpop.eup %5753 }
 0x3e9   :  { %v1070_v25 = vmul.f32 %v5754_v21, %v1019_v35  ;;  %v5756_v40 = vpop.eup %5755 }
 0x3ea   :  { %v5758_v30 = vpop.eup %5757  ;;  %v1068_v45 = vmul.f32 %v5756_v40, %v1009_v63  ;;  %v6547_v63 = vpop.trf.xlu1 }
 0x3eb   :  { %5132 = vmatpush3.msra.mxu1 %v1070_v25  ;;  %v5760_v31 = vpop.eup %5759  ;;  %v1067_v49 = vmul.f32 %v5758_v30, %v1004_v23  ;;  %v1189_v23 = vld [vmem:[%s7576_s12 + $0x38] sm:$0xff] }
 0x3ec   :  { %5133 = vmatprep.subr.mxu1 %v6036_v2  ;;  %v5762_v38 = vpop.eup %5761  ;;  %v1066_v42 = vmul.f32 %v5760_v31, %v999_v22  ;;  %v1188_v22 = vld [vmem:[%s7576_s12 + $0x30] sm:$0xff]  ;;  %5149 = vmatpush3.msra.mxu0 %v1189_v23 }
 0x3ed   :  { %5134 = vmatpush3.msra.mxu1 %v1069_v27  ;;  %v5764_v43 = vpop.eup %5763  ;;  %v1065_v3 = vmul.f32 %v5762_v38, %v994_v32  ;;  %5150 = vmatprep.subr.mxu0 %v6036_v2  ;;  %v1187_v32 = vld [vmem:[%s7576_s12 + $0x28] sm:$0xff] }
 0x3ee   :  { %5135 = vmatprep.subr.mxu1 %v6036_v2  ;;  %v1064_v35 = vmul.f32 %v5764_v43, %v989_v36  ;;  %5151 = vmatpush3.msra.mxu0 %v1188_v22  ;;  %v1186_v36 = vld [vmem:[%s7576_s12 + $0x20] sm:$0xff] }
 0x3ef   :  { %5136 = vmatpush3.msra.mxu1 %v1068_v45  ;;  %5152 = vmatprep.subr.mxu0 %v6036_v2  ;;  %v4416_v45 = vld [vmem:[%s7579_s15] ss:$0 sm:$0xff] }
 0x3f0   :  { %5137 = vmatprep.subr.mxu1 %v6036_v2  ;;  %5153 = vmatpush3.msra.mxu0 %v1187_v32 }
 0x3f1   :  { %5138 = vmatpush3.msra.mxu1 %v1067_v49  ;;  %5154 = vmatprep.subr.mxu0 %v6036_v2 }
 0x3f2   :  { %5139 = vmatprep.subr.mxu1 %v6036_v2  ;;  %5155 = vmatpush3.msra.mxu0 %v1186_v36 }
 0x3f3   :  { %5140 = vmatpush3.msra.mxu1 %v1066_v42  ;;  %5156 = vmatprep.subr.mxu0 %v6036_v2 }
 0x3f4   :  { %5141 = vmatprep.subr.mxu1 %v6036_v2  ;;  %5157 = vmatpush3.msra.mxu0 %v1185_v58 }
 0x3f5   :  { %5142 = vmatpush3.msra.mxu1 %v1065_v3  ;;  %5158 = vmatprep.subr.mxu0 %v6036_v2 }
 0x3f6   :  { %5143 = vmatprep.subr.mxu1 %v6036_v2  ;;  %5159 = vmatpush3.msra.mxu0 %v1184_v46 }
 0x3f7   :  { %5144 = vmatpush3.msra.mxu1 %v1064_v35  ;;  %5160 = vmatprep.subr.mxu0 %v6036_v2 }
 0x3f8   :  { %5146 = vmatmul.mubr.msk.f32.vlgmr.msra.gmra.mxu1 %vm1103_vm6, %v6547_v63  ;;  %5167 = vmatprep.subr.mxu1 %v6036_v2 }
 0x3f9   :  { %5175 = vmatprep.mubr.msk.f32.mxu1 %vm6037_vm1, %v6036_v2  ;;  %5161 = vmatpush3.msra.mxu0 %v1183_v48 }
 0x3fa   :  { %5162 = vmatprep.subr.mxu0 %v6036_v2  ;;  %5168 = vmatpush3.msra.mxu1 %v1280_v57 }
 0x3fb   :  { %5163 = vmatpush3.msra.mxu0 %v1182_v1  ;;  %5169 = vmatprep.subr.mxu1 %v6036_v2 }
 0x3fc   :  { %5178 = vmatprep.subr.mxu0 %v6036_v2  ;;  %5170 = vmatpush3.msra.mxu1 %v1279_v33 }
 0x3fd   :  { %5171 = vmatprep.subr.mxu1 %v6036_v2 }
 0x3fe   :  { %5172 = vmatpush3.msra.mxu1 %v1278_v59 }
 0x3ff   :  { %5173 = vmatprep.subr.mxu1 %v6036_v2 }
 0x400   :  { %5174 = vmatpush3.msra.mxu1 %v1277_v61 }
 0x401   :  { %5201 = vmatprep.subr.mxu1 %v6036_v2 }
 0x4b8   :  { %v1173_v53 = vpop.f32.mrf.mxu1 }
 0x4b9   :  { %1178 = vrot.lane.b32.xlu0 %v1173_v53, %s6038_s21 }
 0x4ba   :  { %v5147_v26 = vpop.f32.mrf.mxu1 }
 0x52b   :  { %v1179_v54 = vpop.permute.xlu0 %1178 }
 0x52c   :  { %v1181_v56 = vsel %vm675_vm4, %v6296_v20, %v1179_v54 }
 0x52d   :  { %5165 = vmatmul.mubr.msk.f32.vlgmr.msra.gmra.mxu0 %vm705_vm5, %v1181_v56 }
 0x52e   :  { %5180 = vmatprep.mubr.msk.f32.mxu0 %vm6037_vm1, %v6036_v2 }
 0x5ed   :  { %v1266_v51 = vpop.f32.mrf.mxu0 }
 0x5ee   :  { %v1267_v0 = vadd.f32 %v4413_v62, %v1266_v51 }
 0x5ef   :  { %v5166_v18 = vpop.f32.mrf.mxu0 }
 0x5f0   :  { %v4415_v21 = vmul.f32 -1.442695, %v1267_v0 }
 0x5f2   :  { %5765 = vpow2.f32 %v4415_v21 }
 0x5ff   :  { %v5766_v25 = vpop.eup %5765 }
 0x600   :  { %v1273_v40 = vadd.f32 1.0, %v5766_v25 }
 0x602   :  { %5767 = vrcp.f32 %v1273_v40 }
 0x60f   :  { %v5768_v27 = vpop.eup %5767 }
 0x610   :  { %v1276_v30 = vmul.f32 %v5768_v27, %v1267_v0 }
 0x612   :  { %5176 = vmatmul.mubr.msk.f32.vlgmr.msra.gmra.mxu1 %vm675_vm4, %v1276_v30 }
 0x613   :  { %5203 = vmatprep.mubr.msk.f32.mxu1 %vm6037_vm1, %v6036_v2 }
 0x6d2   :  { %v1357_v31 = vpop.f32.mrf.mxu1 }
 0x6d3   :  { %v1358_v49 = vadd.f32 %v4416_v45, %v1357_v31 }
 0x6d4   :  { %v5177_v38 = vpop.f32.mrf.mxu1 }
 0x6d5   :  { %v6619_v42 = vadd.f32 %v1358_v49, %v6296_v20 }
 0x6d7   :  { %5179 = vmatpush3.msra.mxu0 %v6619_v42  ;;  %5202 = vmatpush3.msra.mxu1 %v6619_v42 }
 0x6d8   :  { %5204 = vmatmul.mubr.msk.f32.vlgmr.msra.gmra.mxu1 %vm169_vm3, %v6171_v5  ;;  %5181 = vmatmul.mubr.msk.f32.vlgmr.msra.gmra.mxu0 %vm169_vm3, %v6164_v4  ;;  %v4439_v4 = vld [vmem:[%s7571_s7 + $0x78] sm:$0xff]  ;;  %v4438_v5 = vld [vmem:[%s7571_s7 + $0x70] sm:$0xff] }
 0x6d9   :  { %5206 = vmatprep.mubr.msk.f32.mxu1 %vm6037_vm1, %v6036_v2  ;;  %5183 = vmatprep.mubr.msk.f32.mxu0 %vm6037_vm1, %v6036_v2 }
 0x6da   :  { %5224 = vmatprep.subr.mxu0 %v6036_v2  ;;  %5261 = vmatprep.subr.mxu1 %v6036_v2 }
 0x6db   :  { %5225 = vmatpush3.msra.mxu0 %v4439_v4 }
 0x6dc   :  { %5207 = vmatmul.mubr.msk.f32.gmra.mxu1 %vm169_vm3, %v6192_v7  ;;  %5184 = vmatmul.mubr.msk.f32.gmra.mxu0 %vm169_vm3, %v6185_v6  ;;  %v4437_v6 = vld [vmem:[%s7571_s7 + $0x68] sm:$0xff]  ;;  %v4436_v7 = vld [vmem:[%s7571_s7 + $0x60] sm:$0xff] }
 0x6dd   :  { %5209 = vmatprep.mubr.msk.f32.mxu1 %vm6037_vm1, %v6036_v2  ;;  %5186 = vmatprep.mubr.msk.f32.mxu0 %vm6037_vm1, %v6036_v2 }
 0x6de   :  { %5226 = vmatprep.subr.mxu0 %v6036_v2 }
 0x6df   :  { %5227 = vmatpush3.msra.mxu0 %v4438_v5 }
 0x6e0   :  { %5210 = vmatmul.mubr.msk.f32.gmra.mxu1 %vm169_vm3, %v6211_v9  ;;  %5187 = vmatmul.mubr.msk.f32.gmra.mxu0 %vm169_vm3, %v6204_v8  ;;  %v4435_v8 = vld [vmem:[%s7571_s7 + $0x58] sm:$0xff]  ;;  %v4434_v9 = vld [vmem:[%s7571_s7 + $0x50] sm:$0xff] }
 0x6e1   :  { %5212 = vmatprep.mubr.msk.f32.mxu1 %vm6037_vm1, %v6036_v2  ;;  %5189 = vmatprep.mubr.msk.f32.mxu0 %vm6037_vm1, %v6036_v2 }
 0x6e2   :  { %5228 = vmatprep.subr.mxu0 %v6036_v2 }
 0x6e3   :  { %5229 = vmatpush3.msra.mxu0 %v4437_v6 }
 0x6e4   :  { %5213 = vmatmul.mubr.msk.f32.gmra.mxu1 %vm169_vm3, %v6224_v10  ;;  %5190 = vmatmul.mubr.msk.f32.gmra.mxu0 %vm169_vm3, %v6251_v13  ;;  %v4433_v10 = vld [vmem:[%s7571_s7 + $0x48] sm:$0xff] }
 0x6e5   :  { %5215 = vmatprep.mubr.msk.f32.mxu1 %vm6037_vm1, %v6036_v2  ;;  %5192 = vmatprep.mubr.msk.f32.mxu0 %vm6037_vm1, %v6036_v2 }
 0x6e6   :  { %5230 = vmatprep.subr.mxu0 %v6036_v2 }
 0x6e7   :  { %5231 = vmatpush3.msra.mxu0 %v4436_v7  ;;  %v4461_v7 = vld [vmem:[%s7574_s10 + $0x38] sm:$0xff] }
 0x6e8   :  { %5216 = vmatmul.mubr.msk.f32.gmra.mxu1 %vm169_vm3, %v6233_v11  ;;  %5193 = vmatmul.mubr.msk.f32.gmra.mxu0 %vm169_vm3, %v6260_v14  ;;  %v4432_v11 = vld [vmem:[%s7571_s7 + $0x40] sm:$0xff] }
 0x6e9   :  { %5218 = vmatprep.mubr.msk.f32.mxu1 %vm6037_vm1, %v6036_v2  ;;  %5195 = vmatprep.mubr.msk.f32.mxu0 %vm6037_vm1, %v6036_v2 }
 0x6ea   :  { %5232 = vmatprep.subr.mxu0 %v6036_v2  ;;  %5262 = vmatpush3.msra.mxu1 %v4461_v7 }
 0x6eb   :  { %5233 = vmatpush3.msra.mxu0 %v4435_v8  ;;  %5263 = vmatprep.subr.mxu1 %v6036_v2  ;;  %v4460_v8 = vld [vmem:[%s7574_s10 + $0x30] sm:$0xff] }
 0x6ec   :  { %5219 = vmatmul.mubr.msk.f32.gmra.mxu1 %vm169_vm3, %v6242_v12  ;;  %5196 = vmatmul.mubr.msk.f32.gmra.mxu0 %vm169_vm3, %v6269_v15 }
 0x6ed   :  { %5221 = vmatprep.mubr.msk.f32.mxu1 %vm6037_vm1, %v6036_v2  ;;  %5198 = vmatprep.mubr.msk.f32.mxu0 %vm6037_vm1, %v6036_v2 }
 0x6ee   :  { %5234 = vmatprep.subr.mxu0 %v6036_v2  ;;  %5264 = vmatpush3.msra.mxu1 %v4460_v8 }
 0x6ef   :  { %5235 = vmatpush3.msra.mxu0 %v4434_v9  ;;  %5265 = vmatprep.subr.mxu1 %v6036_v2  ;;  %v4459_v9 = vld [vmem:[%s7574_s10 + $0x28] sm:$0xff] }
 0x6f0   :  { %5222 = vmatmul.mubr.msk.f32.gmra.mxu1 %vm169_vm3, %v6276_v16  ;;  %5199 = vmatmul.mubr.msk.f32.gmra.mxu0 %vm169_vm3, %v6287_v17 }
 0x6f1   :  { %5240 = vmatprep.mubr.msk.f32.mxu0 %vm6037_vm1, %v6036_v2  ;;  %5269 = vmatprep.mubr.msk.f32.mxu1 %vm6037_vm1, %v6036_v2 }
 0x6f2   :  { %5236 = vmatprep.subr.mxu0 %v6036_v2  ;;  %5266 = vmatpush3.msra.mxu1 %v4459_v9 }
 0x6f3   :  { %5237 = vmatpush3.msra.mxu0 %v4433_v10  ;;  %5267 = vmatprep.subr.mxu1 %v6036_v2  ;;  %v4458_v10 = vld [vmem:[%s7574_s10 + $0x20] sm:$0xff] }
 0x6f4   :  { %5238 = vmatprep.subr.mxu0 %v6036_v2  ;;  %5268 = vmatpush3.msra.mxu1 %v4458_v10 }
 0x6f5   :  { %5239 = vmatpush3.msra.mxu0 %v4432_v11  ;;  %5307 = vmatprep.subr.mxu1 %v6036_v2  ;;  %v4441_v11 = vld [vmem:[%s7572_s8 + $0x1] ss:$0 sm:$0xff] }
 0x6f6   :  { %5290 = vmatprep.subr.mxu0 %v6036_v2 }
 0x798   :  { %v1528_v12 = vpop.f32.mrf.mxu1  ;;  %v1428_v13 = vpop.f32.mrf.mxu0 }
 0x799   :  { %1569 = vrot.lane.b32.xlu0 %v1528_v12, %s6038_s21  ;;  %v1614_v12 = vmul.f32 %v4441_v11, %v6483_v39 }
 0x79a   :  { %v5205_v14 = vpop.f32.mrf.mxu1  ;;  %v5182_v15 = vpop.f32.mrf.mxu0 }
 0x79b   :  { %v4450_v14 = vld [vmem:[%s7573_s9 + $0x1] ss:$0 sm:$0xff] }
 0x79c   :  { %v1533_v16 = vpop.f32.mrf.mxu1  ;;  %v1433_v17 = vpop.f32.mrf.mxu0 }
 0x79d   :  { %1571 = vrot.lane.b32.xlu0 %v1533_v16, %s6038_s21 }
 0x79e   :  { %v5208_v20 = vpop.f32.mrf.mxu1  ;;  %v5185_v43 = vpop.f32.mrf.mxu0 }
 0x79f   :  { %v1615_v20 = vmul.f32 %v4441_v11, %v6488_v41 }
 0x7a0   :  { %v1538_v3 = vpop.f32.mrf.mxu1  ;;  %v1438_v35 = vpop.f32.mrf.mxu0 }
 0x7a1   :  { %1573 = vrot.lane.b32.xlu0 %v1538_v3, %s6038_s21 }
 0x7a2   :  { %v5211_v23 = vpop.f32.mrf.mxu1  ;;  %v5188_v22 = vpop.f32.mrf.mxu0 }
 0x7a4   :  { %v1543_v32 = vpop.f32.mrf.mxu1  ;;  %v1443_v36 = vpop.f32.mrf.mxu0 }
 0x7a5   :  { %1575 = vrot.lane.b32.xlu0 %v1543_v32, %s6038_s21  ;;  %v1616_v32 = vmul.f32 %v4441_v11, %v6497_v52 }
 0x7a6   :  { %v5214_v58 = vpop.f32.mrf.mxu1  ;;  %v5191_v46 = vpop.f32.mrf.mxu0 }
 0x7a8   :  { %v1548_v48 = vpop.f32.mrf.mxu1  ;;  %v1448_v1 = vpop.f32.mrf.mxu0 }
 0x7a9   :  { %1577 = vrot.lane.b32.xlu0 %v1548_v48, %s6038_s21 }
 0x7aa   :  { %v5217_v53 = vpop.f32.mrf.mxu1  ;;  %v5194_v26 = vpop.f32.mrf.mxu0 }
 0x7ab   :  { %v1617_v53 = vmul.f32 %v4441_v11, %v6503_v60 }
 0x7ac   :  { %v1553_v54 = vpop.f32.mrf.mxu1  ;;  %v1453_v56 = vpop.f32.mrf.mxu0 }
 0x7ad   :  { %1579 = vrot.lane.b32.xlu0 %v1553_v54, %s6038_s21 }
 0x7ae   :  { %v5220_v57 = vpop.f32.mrf.mxu1  ;;  %v5197_v33 = vpop.f32.mrf.mxu0 }
 0x7b0   :  { %v1558_v59 = vpop.f32.mrf.mxu1  ;;  %v1458_v61 = vpop.f32.mrf.mxu0 }
 0x7b1   :  { %1581 = vrot.lane.b32.xlu0 %v1558_v59, %s6038_s21  ;;  %v1618_v59 = vmul.f32 %v4441_v11, %v6507_v19 }
 0x7b2   :  { %v5223_v62 = vpop.f32.mrf.mxu1  ;;  %v5200_v51 = vpop.f32.mrf.mxu0 }
 0x80b   :  { %v1570_v0 = vpop.permute.xlu0 %1569 }
 0x80c   :  { %v1590_v18 = vsel %vm675_vm4, %v1428_v13, %v1570_v0 }
 0x80d   :  { %5241 = vmatmul.mubr.msk.f32.vlgmr.msra.gmra.mxu0 %vm705_vm5, %v1590_v18 }
 0x80e   :  { %5243 = vmatprep.mubr.msk.f32.mxu0 %vm6037_vm1, %v6036_v2 }
 0x80f   :  { %v1572_v21 = vpop.permute.xlu0 %1571 }
 0x810   :  { %v1591_v25 = vsel %vm675_vm4, %v1433_v17, %v1572_v21  ;;  %v1619_v21 = vmul.f32 %v4441_v11, %v6510_v28 }
 0x811   :  { %5244 = vmatmul.mubr.msk.f32.gmra.mxu0 %vm705_vm5, %v1591_v25 }
 0x812   :  { %5246 = vmatprep.mubr.msk.f32.mxu0 %vm6037_vm1, %v6036_v2 }
 0x813   :  { %v1574_v40 = vpop.permute.xlu0 %1573 }
 0x814   :  { %v1592_v27 = vsel %vm675_vm4, %v1438_v35, %v1574_v40 }
 0x815   :  { %5247 = vmatmul.mubr.msk.f32.gmra.mxu0 %vm705_vm5, %v1592_v27 }
 0x816   :  { %5249 = vmatprep.mubr.msk.f32.mxu0 %vm6037_vm1, %v6036_v2 }
 0x817   :  { %v1576_v30 = vpop.permute.xlu0 %1575 }
 0x818   :  { %v1593_v45 = vsel %vm675_vm4, %v1443_v36, %v1576_v30 }
 0x819   :  { %5250 = vmatmul.mubr.msk.f32.gmra.mxu0 %vm705_vm5, %v1593_v45 }
 0x81a   :  { %5252 = vmatprep.mubr.msk.f32.mxu0 %vm6037_vm1, %v6036_v2 }
 0x81b   :  { %v1578_v31 = vpop.permute.xlu0 %1577 }
 0x81c   :  { %v1594_v49 = vsel %vm675_vm4, %v1448_v1, %v1578_v31 }
 0x81d   :  { %5253 = vmatmul.mubr.msk.f32.gmra.mxu0 %vm705_vm5, %v1594_v49 }
 0x81e   :  { %5255 = vmatprep.mubr.msk.f32.mxu0 %vm6037_vm1, %v6036_v2 }
 0x81f   :  { %v1580_v38 = vpop.permute.xlu0 %1579 }
 0x820   :  { %v1595_v4 = vsel %vm675_vm4, %v1453_v56, %v1580_v38  ;;  %v1620_v38 = vmul.f32 %v4441_v11, %v6513_v37 }
 0x821   :  { %5256 = vmatmul.mubr.msk.f32.gmra.mxu0 %vm705_vm5, %v1595_v4 }
 0x822   :  { %5258 = vmatprep.mubr.msk.f32.mxu0 %vm6037_vm1, %v6036_v2 }
 0x823   :  { %v1582_v5 = vpop.permute.xlu0 %1581 }
 0x824   :  { %v1596_v6 = vsel %vm675_vm4, %v1458_v61, %v1582_v5 }
 0x825   :  { %5259 = vmatmul.mubr.msk.f32.gmra.mxu0 %vm705_vm5, %v1596_v6 }
 0x826   :  { %5304 = vmatprep.mubr.msk.f32.mxu0 %vm6037_vm1, %v6036_v2 }
 0x8cd   :  { %v1708_v13 = vpop.f32.mrf.mxu0 }
 0x8ce   :  { %v1709_v15 = vadd.f32 %v1708_v13, %v1614_v12 }
 0x8cf   :  { %v5242_v16 = vpop.f32.mrf.mxu0 }
 0x8d0   :  { %v1750_v17 = vadd.f32 %v4450_v14, %v1709_v15 }
 0x8d1   :  { %v1713_v43 = vpop.f32.mrf.mxu0 }
 0x8d2   :  { %v4451_v3 = vmul.f32 -1.442695, %v1750_v17  ;;  %v1714_v35 = vadd.f32 %v1713_v43, %v1615_v20 }
 0x8d3   :  { %v5245_v23 = vpop.f32.mrf.mxu0 }
 0x8d4   :  { %5769 = vpow2.f32 %v4451_v3  ;;  %v1751_v22 = vadd.f32 %v4450_v14, %v1714_v35 }
 0x8d5   :  { %v1718_v36 = vpop.f32.mrf.mxu0 }
 0x8d6   :  { %v4452_v58 = vmul.f32 -1.442695, %v1751_v22  ;;  %v1719_v46 = vadd.f32 %v1718_v36, %v1616_v32 }
 0x8d7   :  { %v5248_v48 = vpop.f32.mrf.mxu0 }
 0x8d8   :  { %5771 = vpow2.f32 %v4452_v58  ;;  %v1752_v1 = vadd.f32 %v4450_v14, %v1719_v46 }
 0x8d9   :  { %v1723_v26 = vpop.f32.mrf.mxu0 }
 0x8da   :  { %v4453_v54 = vmul.f32 -1.442695, %v1752_v1  ;;  %v1724_v56 = vadd.f32 %v1723_v26, %v1617_v53 }
 0x8db   :  { %v5251_v57 = vpop.f32.mrf.mxu0 }
 0x8dc   :  { %5773 = vpow2.f32 %v4453_v54  ;;  %v1753_v33 = vadd.f32 %v4450_v14, %v1724_v56 }
 0x8dd   :  { %v1728_v61 = vpop.f32.mrf.mxu0 }
 0x8de   :  { %v4454_v62 = vmul.f32 -1.442695, %v1753_v33  ;;  %v1729_v51 = vadd.f32 %v1728_v61, %v1618_v59 }
 0x8df   :  { %v5254_v0 = vpop.f32.mrf.mxu0 }
 0x8e0   :  { %5775 = vpow2.f32 %v4454_v62  ;;  %v1754_v18 = vadd.f32 %v4450_v14, %v1729_v51 }
 0x8e1   :  { %v5770_v25 = vpop.eup %5769  ;;  %v1733_v40 = vpop.f32.mrf.mxu0 }
 0x8e2   :  { %v1778_v27 = vadd.f32 1.0, %v5770_v25  ;;  %v4455_v30 = vmul.f32 -1.442695, %v1754_v18  ;;  %v1734_v45 = vadd.f32 %v1733_v40, %v1619_v21 }
 0x8e3   :  { %v5257_v31 = vpop.f32.mrf.mxu0 }
 0x8e4   :  { %5777 = vrcp.f32 %v1778_v27  ;;  %v1755_v49 = vadd.f32 %v4450_v14, %v1734_v45  ;;  %v4463_v27 = vld [vmem:[%s7575_s11 + $0x1] ss:$0 sm:$0xff] }
 0x8e5   :  { %v5772_v4 = vpop.eup %5771  ;;  %5779 = vpow2.f32 %v4455_v30  ;;  %v1738_v5 = vpop.f32.mrf.mxu0 }
 0x8e6   :  { %v1779_v6 = vadd.f32 1.0, %v5772_v4  ;;  %v4456_v7 = vmul.f32 -1.442695, %v1755_v49  ;;  %v1739_v8 = vadd.f32 %v1738_v5, %v1620_v38 }
 0x8e7   :  { %v5260_v9 = vpop.f32.mrf.mxu0 }
 0x8e8   :  { %5781 = vrcp.f32 %v1779_v6  ;;  %v1756_v10 = vadd.f32 %v4450_v14, %v1739_v8 }
 0x8e9   :  { %v5774_v12 = vpop.eup %5773  ;;  %5783 = vpow2.f32 %v4456_v7 }
 0x8ea   :  { %v1780_v13 = vadd.f32 1.0, %v5774_v12  ;;  %v4457_v15 = vmul.f32 -1.442695, %v1756_v10 }
 0x8ec   :  { %5785 = vrcp.f32 %v1780_v13 }
 0x8ed   :  { %v5776_v16 = vpop.eup %5775  ;;  %5787 = vpow2.f32 %v4457_v15 }
 0x8ee   :  { %v1781_v20 = vadd.f32 1.0, %v5776_v16 }
 0x8f0   :  { %5789 = vrcp.f32 %v1781_v20 }
 0x8f1   :  { %v5778_v43 = vpop.eup %5777 }
 0x8f2   :  { %v5780_v11 = vpop.eup %5779  ;;  %v1799_v3 = vmul.f32 %v5778_v43, %v1750_v17 }
 0x8f3   :  { %v1782_v35 = vadd.f32 1.0, %v5780_v11 }
 0x8f4   :  { %5270 = vmatmul.mubr.msk.f32.vlgmr.msra.gmra.mxu1 %vm675_vm4, %v1799_v3 }
 0x8f5   :  { %v5782_v23 = vpop.eup %5781  ;;  %5791 = vrcp.f32 %v1782_v35  ;;  %5272 = vmatprep.mubr.msk.f32.mxu1 %vm6037_vm1, %v6036_v2 }
 0x8f6   :  { %v5784_v14 = vpop.eup %5783  ;;  %v1800_v32 = vmul.f32 %v5782_v23, %v1751_v22 }
 0x8f7   :  { %v1783_v36 = vadd.f32 1.0, %v5784_v14 }
 0x8f8   :  { %5273 = vmatmul.mubr.msk.f32.gmra.mxu1 %vm675_vm4, %v1800_v32 }
 0x8f9   :  { %v5786_v58 = vpop.eup %5785  ;;  %5793 = vrcp.f32 %v1783_v36  ;;  %5275 = vmatprep.mubr.msk.f32.mxu1 %vm6037_vm1, %v6036_v2 }
 0x8fa   :  { %v5788_v46 = vpop.eup %5787  ;;  %v1801_v17 = vmul.f32 %v5786_v58, %v1752_v1 }
 0x8fb   :  { %v1784_v48 = vadd.f32 1.0, %v5788_v46 }
 0x8fc   :  { %5276 = vmatmul.mubr.msk.f32.gmra.mxu1 %vm675_vm4, %v1801_v17 }
 0x8fd   :  { %v5790_v53 = vpop.eup %5789  ;;  %5795 = vrcp.f32 %v1784_v48  ;;  %5278 = vmatprep.mubr.msk.f32.mxu1 %vm6037_vm1, %v6036_v2 }
 0x8fe   :  { %v1802_v26 = vmul.f32 %v5790_v53, %v1753_v33 }
 0x900   :  { %5279 = vmatmul.mubr.msk.f32.gmra.mxu1 %vm675_vm4, %v1802_v26 }
 0x901   :  { %5281 = vmatprep.mubr.msk.f32.mxu1 %vm6037_vm1, %v6036_v2 }
 0x902   :  { %v5792_v22 = vpop.eup %5791 }
 0x903   :  { %v1803_v54 = vmul.f32 %v5792_v22, %v1754_v18 }
 0x905   :  { %5282 = vmatmul.mubr.msk.f32.gmra.mxu1 %vm675_vm4, %v1803_v54 }
 0x906   :  { %v5794_v56 = vpop.eup %5793  ;;  %5284 = vmatprep.mubr.msk.f32.mxu1 %vm6037_vm1, %v6036_v2 }
 0x907   :  { %v1804_v1 = vmul.f32 %v5794_v56, %v1755_v49 }
 0x909   :  { %5285 = vmatmul.mubr.msk.f32.gmra.mxu1 %vm675_vm4, %v1804_v1 }
 0x90a   :  { %v5796_v57 = vpop.eup %5795  ;;  %5287 = vmatprep.mubr.msk.f32.mxu1 %vm6037_vm1, %v6036_v2 }
 0x90b   :  { %v1805_v33 = vmul.f32 %v5796_v57, %v1756_v10 }
 0x90d   :  { %5288 = vmatmul.mubr.msk.f32.gmra.mxu1 %vm675_vm4, %v1805_v33 }
 0x90e   :  { %5323 = vmatprep.mubr.msk.f32.mxu1 %vm6037_vm1, %v6036_v2 }
 0x9b4   :  { %v1906_v59 = vpop.f32.mrf.mxu1 }
 0x9b5   :  { %v1907_v15 = vadd.f32 %v4463_v27, %v1906_v59 }
 0x9b6   :  { %v5271_v61 = vpop.f32.mrf.mxu1 }
 0x9b7   :  { %v4471_v11 = vmul.f32 -1.442695, %v1907_v15 }
 0x9b8   :  { %v1911_v62 = vpop.f32.mrf.mxu1 }
 0x9b9   :  { %v1912_v10 = vadd.f32 %v4463_v27, %v1911_v62 }
 0x9ba   :  { %v5274_v51 = vpop.f32.mrf.mxu1 }
 0x9bb   :  { %v4472_v43 = vmul.f32 -1.442695, %v1912_v10 }
 0x9bc   :  { %v1916_v0 = vpop.f32.mrf.mxu1 }
 0x9bd   :  { %v1917_v5 = vadd.f32 %v4463_v27, %v1916_v0 }
 0x9be   :  { %v5277_v18 = vpop.f32.mrf.mxu1 }
 0x9bf   :  { %v4473_v16 = vmul.f32 -1.442695, %v1917_v5 }
 0x9c0   :  { %v1921_v21 = vpop.f32.mrf.mxu1 }
 0x9c1   :  { %v1922_v31 = vadd.f32 %v4463_v27, %v1921_v21 }
 0x9c2   :  { %v5280_v25 = vpop.f32.mrf.mxu1 }
 0x9c3   :  { %v4474_v8 = vmul.f32 -1.442695, %v1922_v31 }
 0x9c5   :  { %v1926_v40 = vpop.f32.mrf.mxu1 }
 0x9c6   :  { %v1927_v45 = vadd.f32 %v4463_v27, %v1926_v40 }
 0x9c7   :  { %v5283_v30 = vpop.f32.mrf.mxu1 }
 0x9c8   :  { %v4475_v6 = vmul.f32 -1.442695, %v1927_v45  ;;  %v4486_v30 = vld [vmem:[%s7576_s12 + $0x78] sm:$0xff] }
 0x9c9   :  { %v1931_v49 = vpop.f32.mrf.mxu1  ;;  %5308 = vmatpush3.msra.mxu1 %v4486_v30  ;;  %v4515_v30 = vld [vmem:[%s7571_s7 + $0x98] sm:$0xff] }
 0x9ca   :  { %v1932_v38 = vadd.f32 %v4463_v27, %v1931_v49  ;;  %5309 = vmatprep.subr.mxu1 %v6036_v2  ;;  %v4483_v49 = vld [vmem:[%s7576_s12 + $0x60] sm:$0xff] }
 0x9cb   :  { %v5286_v4 = vpop.f32.mrf.mxu1 }
 0x9cc   :  { %v4476_v7 = vmul.f32 -1.442695, %v1932_v38  ;;  %v4481_v4 = vld [vmem:[%s7576_s12 + $0x50] sm:$0xff] }
 0x9cd   :  { %v1936_v9 = vpop.f32.mrf.mxu1 }
 0x9ce   :  { %5797 = vpow2.f32 %v4476_v7  ;;  %v1937_v12 = vadd.f32 %v4463_v27, %v1936_v9 }
 0x9cf   :  { %v5289_v13 = vpop.f32.mrf.mxu1  ;;  %5799 = vpow2.f32 %v4475_v6  ;;  %v4479_v6 = vld [vmem:[%s7576_s12 + $0x40] sm:$0xff] }
 0x9d0   :  { %v4477_v20 = vmul.f32 -1.442695, %v1937_v12  ;;  %5801 = vpow2.f32 %v4474_v8  ;;  %v4493_v13 = vld [vmem:[%s7578_s14 + $0x30] sm:$0xff] }
 0x9d2   :  { %5803 = vpow2.f32 %v4477_v20  ;;  %v4488_v20 = vld [vmem:[%s7577_s13 + $0x1] ss:$0 sm:$0xff] }
 0x9d3   :  { %5805 = vpow2.f32 %v4473_v16  ;;  %v4491_v16 = vld [vmem:[%s7578_s14 + $0x20] sm:$0xff] }
 0x9d4   :  { %5807 = vpow2.f32 %v4472_v43 }
 0x9d5   :  { %5809 = vpow2.f32 %v4471_v11 }
 0x9db   :  { %v5798_v3 = vpop.eup %5797 }
 0x9dc   :  { %v5800_v35 = vpop.eup %5799  ;;  %v1966_v23 = vadd.f32 1.0, %v5798_v3 }
 0x9dd   :  { %v5802_v14 = vpop.eup %5801  ;;  %v1965_v36 = vadd.f32 1.0, %v5800_v35 }
 0x9de   :  { %5811 = vrcp.f32 %v1966_v23  ;;  %v1964_v17 = vadd.f32 1.0, %v5802_v14 }
 0x9df   :  { %v5804_v32 = vpop.eup %5803 }
 0x9e0   :  { %v1967_v58 = vadd.f32 1.0, %v5804_v32  ;;  %v5806_v46 = vpop.eup %5805 }
 0x9e1   :  { %v5808_v48 = vpop.eup %5807  ;;  %v1963_v53 = vadd.f32 1.0, %v5806_v46 }
 0x9e2   :  { %5813 = vrcp.f32 %v1967_v58  ;;  %v5810_v26 = vpop.eup %5809  ;;  %v1962_v22 = vadd.f32 1.0, %v5808_v48  ;;  %v4496_v58 = vld [vmem:[%s7579_s15 + $0x1] ss:$0 sm:$0xff] }
 0x9e3   :  { %5815 = vrcp.f32 %v1965_v36  ;;  %v1961_v54 = vadd.f32 1.0, %v5810_v26  ;;  %v6883_v26 = vld [vmem:[%s7596_s30] sm:$0xff] }
 0x9e4   :  { %5817 = vrcp.f32 %v1964_v17 }
 0x9e5   :  { %5819 = vrcp.f32 %v1963_v53 }
 0x9e6   :  { %5821 = vrcp.f32 %v1962_v22  ;;  %v6890_v22 = vld [vmem:[%s7595_s28] sm:$0xff] }
 0x9e7   :  { %5823 = vrcp.f32 %v1961_v54  ;;  %v6910_v54 = vld [vmem:[%s7595_s28 + $0x8] sm:$0xff] }
 0x9eb   :  { %v5812_v56 = vpop.eup %5811 }
 0x9ec   :  { %v1987_v59 = vmul.f32 %v5812_v56, %v1932_v38  ;;  %v4482_v38 = vld [vmem:[%s7576_s12 + $0x58] sm:$0xff]  ;;  %v6921_v56 = vld [vmem:[%s7596_s30 + $0x10] sm:$0xff] }
 0x9ef   :  { %v5814_v1 = vpop.eup %5813 }
 0x9f0   :  { %v1988_v57 = vmul.f32 %v5814_v1, %v1937_v12  ;;  %v5816_v33 = vpop.eup %5815  ;;  %v4494_v12 = vld [vmem:[%s7578_s14 + $0x38] sm:$0xff]  ;;  %v6928_v1 = vld [vmem:[%s7595_s28 + $0x10] sm:$0xff] }
 0x9f1   :  { %v5818_v61 = vpop.eup %5817  ;;  %v1986_v62 = vmul.f32 %v5816_v33, %v1927_v45  ;;  %v4485_v45 = vld [vmem:[%s7576_s12 + $0x70] sm:$0xff]  ;;  %v6946_v33 = vld [vmem:[%s7595_s28 + $0x18] sm:$0xff] }
 0x9f2   :  { %5291 = vmatpush3.msra.mxu0 %v1988_v57  ;;  %v5820_v51 = vpop.eup %5819  ;;  %v1985_v0 = vmul.f32 %v5818_v61, %v1922_v31  ;;  %v4484_v31 = vld [vmem:[%s7576_s12 + $0x68] sm:$0xff]  ;;  %5310 = vmatpush3.msra.mxu1 %v4485_v45  ;;  %v6939_v57 = vld [vmem:[%s7596_s30 + $0x18] sm:$0xff]  ;;  %v6964_v61 = vld [vmem:[%s7595_s28 + $0x20] sm:$0xff] }
 0x9f3   :  { %5292 = vmatprep.subr.mxu0 %v6036_v2  ;;  %v5822_v18 = vpop.eup %5821  ;;  %v1984_v21 = vmul.f32 %v5820_v51, %v1917_v5  ;;  %5311 = vmatprep.subr.mxu1 %v6036_v2  ;;  %v4480_v5 = vld [vmem:[%s7576_s12 + $0x48] sm:$0xff]  ;;  %v4514_v45 = vld [vmem:[%s7571_s7 + $0x90] sm:$0xff] }
 0x9f4   :  { %5293 = vmatpush3.msra.mxu0 %v1987_v59  ;;  %v5824_v25 = vpop.eup %5823  ;;  %v1983_v40 = vmul.f32 %v5822_v18, %v1912_v10  ;;  %5312 = vmatpush3.msra.mxu1 %v4484_v31  ;;  %v6957_v59 = vld [vmem:[%s7596_s30 + $0x20] sm:$0xff]  ;;  %v6982_v51 = vld [vmem:[%s7595_s28 + $0x28] sm:$0xff]  ;;  %v7000_v18 = vld [vmem:[%s7595_s28 + $0x30] sm:$0xff] }
 0x9f5   :  { %5294 = vmatprep.subr.mxu0 %v6036_v2  ;;  %v1982_v27 = vmul.f32 %v5824_v25, %v1907_v15  ;;  %5313 = vmatprep.subr.mxu1 %v6036_v2  ;;  %v4492_v15 = vld [vmem:[%s7578_s14 + $0x28] sm:$0xff]  ;;  %v4518_v25 = vld [vmem:[%s7571_s7 + $0xb0] sm:$0xff] }
 0x9f6   :  { %5295 = vmatpush3.msra.mxu0 %v1986_v62  ;;  %5314 = vmatpush3.msra.mxu1 %v4483_v49  ;;  %v6975_v62 = vld [vmem:[%s7596_s30 + $0x28] sm:$0xff]  ;;  %v4512_v49 = vld [vmem:[%s7571_s7 + $0x80] sm:$0xff] }
 0x9f7   :  { %5296 = vmatprep.subr.mxu0 %v6036_v2  ;;  %5315 = vmatprep.subr.mxu1 %v6036_v2  ;;  %v4513_v31 = vld [vmem:[%s7571_s7 + $0x88] sm:$0xff] }
 0x9f8   :  { %5297 = vmatpush3.msra.mxu0 %v1985_v0  ;;  %5316 = vmatpush3.msra.mxu1 %v4482_v38  ;;  %v6993_v0 = vld [vmem:[%s7596_s30 + $0x30] sm:$0xff] }
 0x9f9   :  { %5298 = vmatprep.subr.mxu0 %v6036_v2  ;;  %5317 = vmatprep.subr.mxu1 %v6036_v2 }
 0x9fa   :  { %5299 = vmatpush3.msra.mxu0 %v1984_v21  ;;  %5318 = vmatpush3.msra.mxu1 %v4481_v4  ;;  %v4519_v21 = vld [vmem:[%s7571_s7 + $0xb8] sm:$0xff] }
 0x9fb   :  { %5300 = vmatprep.subr.mxu0 %v6036_v2  ;;  %5319 = vmatprep.subr.mxu1 %v6036_v2 }
 0x9fc   :  { %5301 = vmatpush3.msra.mxu0 %v1983_v40  ;;  %5320 = vmatpush3.msra.mxu1 %v4480_v5  ;;  %v4517_v40 = vld [vmem:[%s7571_s7 + $0xa8] sm:$0xff] }
 0x9fd   :  { %5302 = vmatprep.subr.mxu0 %v6036_v2  ;;  %5321 = vmatprep.subr.mxu1 %v6036_v2 }
 0x9fe   :  { %5303 = vmatpush3.msra.mxu0 %v1982_v27  ;;  %5322 = vmatpush3.msra.mxu1 %v4479_v6  ;;  %v4516_v27 = vld [vmem:[%s7571_s7 + $0xa0] sm:$0xff] }
 0x9ff   :  { %5305 = vmatmul.mubr.msk.f32.vlgmr.msra.gmra.mxu0 %vm1103_vm6, %v6547_v63  ;;  %5326 = vmatprep.subr.mxu0 %v6036_v2 }
 0xa00   :  { %5334 = vmatprep.mubr.msk.f32.mxu0 %vm6037_vm1, %v6036_v2  ;;  %5337 = vmatprep.subr.mxu1 %v6036_v2 }
 0xa01   :  { %5327 = vmatpush3.msra.mxu0 %v4494_v12 }
 0xa02   :  { %5328 = vmatprep.subr.mxu0 %v6036_v2 }
 0xa03   :  { %5329 = vmatpush3.msra.mxu0 %v4493_v13 }
 0xa04   :  { %5330 = vmatprep.subr.mxu0 %v6036_v2 }
 0xa05   :  { %5331 = vmatpush3.msra.mxu0 %v4492_v15 }
 0xa06   :  { %5332 = vmatprep.subr.mxu0 %v6036_v2 }
 0xa07   :  { %5333 = vmatpush3.msra.mxu0 %v4491_v16 }
 0xa08   :  { %5360 = vmatprep.subr.mxu0 %v6036_v2 }
 0xabf   :  { %v2055_v7 = vpop.f32.mrf.mxu0 }
 0xac0   :  { %2060 = vrot.lane.b32.xlu0 %v2055_v7, %s6038_s21 }
 0xac1   :  { %v5306_v8 = vpop.f32.mrf.mxu0 }
 0xb32   :  { %v2061_v9 = vpop.permute.xlu0 %2060 }
 0xb33   :  { %v2063_v10 = vsel %vm675_vm4, %v6619_v42, %v2061_v9 }
 0xb34   :  { %5324 = vmatmul.mubr.msk.f32.vlgmr.msra.gmra.mxu1 %vm705_vm5, %v2063_v10 }
 0xb35   :  { %5339 = vmatprep.mubr.msk.f32.mxu1 %vm6037_vm1, %v6036_v2 }
 0xbf4   :  { %v2150_v43 = vpop.f32.mrf.mxu1 }
 0xbf5   :  { %v2151_v11 = vadd.f32 %v4488_v20, %v2150_v43 }
 0xbf6   :  { %v5325_v3 = vpop.f32.mrf.mxu1 }
 0xbf7   :  { %v4490_v35 = vmul.f32 -1.442695, %v2151_v11 }
 0xbf9   :  { %5825 = vpow2.f32 %v4490_v35 }
 0xc06   :  { %v5826_v23 = vpop.eup %5825 }
 0xc07   :  { %v2157_v14 = vadd.f32 1.0, %v5826_v23 }
 0xc09   :  { %5827 = vrcp.f32 %v2157_v14 }
 0xc16   :  { %v5828_v32 = vpop.eup %5827 }
 0xc17   :  { %v2160_v36 = vmul.f32 %v5828_v32, %v2151_v11 }
 0xc19   :  { %5335 = vmatmul.mubr.msk.f32.vlgmr.msra.gmra.mxu0 %vm675_vm4, %v2160_v36 }
 0xc1a   :  { %5362 = vmatprep.mubr.msk.f32.mxu0 %vm6037_vm1, %v6036_v2 }
 0xcd9   :  { %v2243_v46 = vpop.f32.mrf.mxu0 }
 0xcda   :  { %v2244_v17 = vadd.f32 %v4496_v58, %v2243_v46 }
 0xcdb   :  { %v5336_v48 = vpop.f32.mrf.mxu0 }
 0xcdc   :  { %v6876_v53 = vadd.f32 %v2244_v17, %v6619_v42  ;;  %v6903_v42 = vld [vmem:[%s7596_s30 + $0x8] sm:$0xff] }
 0xcde   :  { %5338 = vmatpush3.msra.mxu1 %v6876_v53  ;;  %5361 = vmatpush3.msra.mxu0 %v6876_v53 }
 0xcdf   :  { %5363 = vmatmul.mubr.msk.f32.vlgmr.msra.gmra.mxu0 %vm169_vm3, %v6883_v26  ;;  %5340 = vmatmul.mubr.msk.f32.vlgmr.msra.gmra.mxu1 %vm169_vm3, %v6890_v22 }
 0xce0   :  { %5365 = vmatprep.mubr.msk.f32.mxu0 %vm6037_vm1, %v6036_v2  ;;  %5342 = vmatprep.mubr.msk.f32.mxu1 %vm6037_vm1, %v6036_v2 }
 0xce1   :  { %5383 = vmatprep.subr.mxu1 %v6036_v2  ;;  %5420 = vmatprep.subr.mxu0 %v6036_v2 }
 0xce2   :  { %5384 = vmatpush3.msra.mxu1 %v4519_v21 }
 0xce3   :  { %5366 = vmatmul.mubr.msk.f32.gmra.mxu0 %vm169_vm3, %v6903_v42  ;;  %5343 = vmatmul.mubr.msk.f32.gmra.mxu1 %vm169_vm3, %v6910_v54 }
 0xce4   :  { %5368 = vmatprep.mubr.msk.f32.mxu0 %vm6037_vm1, %v6036_v2  ;;  %5345 = vmatprep.mubr.msk.f32.mxu1 %vm6037_vm1, %v6036_v2 }
 0xce5   :  { %5385 = vmatprep.subr.mxu1 %v6036_v2 }
 0xce6   :  { %5386 = vmatpush3.msra.mxu1 %v4518_v25 }
 0xce7   :  { %5369 = vmatmul.mubr.msk.f32.gmra.mxu0 %vm169_vm3, %v6921_v56  ;;  %5346 = vmatmul.mubr.msk.f32.gmra.mxu1 %vm169_vm3, %v6928_v1 }
 0xce8   :  { %5371 = vmatprep.mubr.msk.f32.mxu0 %vm6037_vm1, %v6036_v2  ;;  %5348 = vmatprep.mubr.msk.f32.mxu1 %vm6037_vm1, %v6036_v2 }
 0xce9   :  { %5387 = vmatprep.subr.mxu1 %v6036_v2 }
 0xcea   :  { %5388 = vmatpush3.msra.mxu1 %v4517_v40 }
 0xceb   :  { %5372 = vmatmul.mubr.msk.f32.gmra.mxu0 %vm169_vm3, %v6939_v57  ;;  %5349 = vmatmul.mubr.msk.f32.gmra.mxu1 %vm169_vm3, %v6946_v33 }
 0xcec   :  { %5374 = vmatprep.mubr.msk.f32.mxu0 %vm6037_vm1, %v6036_v2  ;;  %5351 = vmatprep.mubr.msk.f32.mxu1 %vm6037_vm1, %v6036_v2 }
 0xced   :  { %5389 = vmatprep.subr.mxu1 %v6036_v2 }
 0xcee   :  { %5390 = vmatpush3.msra.mxu1 %v4516_v27 }
 0xcef   :  { %5375 = vmatmul.mubr.msk.f32.gmra.mxu0 %vm169_vm3, %v6957_v59  ;;  %5352 = vmatmul.mubr.msk.f32.gmra.mxu1 %vm169_vm3, %v6964_v61 }
 0xcf0   :  { %5377 = vmatprep.mubr.msk.f32.mxu0 %vm6037_vm1, %v6036_v2  ;;  %5354 = vmatprep.mubr.msk.f32.mxu1 %vm6037_vm1, %v6036_v2 }
 0xcf1   :  { %5391 = vmatprep.subr.mxu1 %v6036_v2 }
 0xcf2   :  { %5392 = vmatpush3.msra.mxu1 %v4515_v30 }
 0xcf3   :  { %5378 = vmatmul.mubr.msk.f32.gmra.mxu0 %vm169_vm3, %v6975_v62  ;;  %5355 = vmatmul.mubr.msk.f32.gmra.mxu1 %vm169_vm3, %v6982_v51 }
 0xcf4   :  { %5380 = vmatprep.mubr.msk.f32.mxu0 %vm6037_vm1, %v6036_v2  ;;  %5357 = vmatprep.mubr.msk.f32.mxu1 %vm6037_vm1, %v6036_v2 }
 0xcf5   :  { %5393 = vmatprep.subr.mxu1 %v6036_v2 }
 0xcf6   :  { %5394 = vmatpush3.msra.mxu1 %v4514_v45 }
 0xcf7   :  { %5381 = vmatmul.mubr.msk.f32.gmra.mxu0 %vm169_vm3, %v6993_v0  ;;  %5358 = vmatmul.mubr.msk.f32.gmra.mxu1 %vm169_vm3, %v7000_v18 }
 0xcf8   :  { %5399 = vmatprep.mubr.msk.f32.mxu1 %vm6037_vm1, %v6036_v2  ;;  %5428 = vmatprep.mubr.msk.f32.mxu0 %vm6037_vm1, %v6036_v2 }
 0xcf9   :  { %5395 = vmatprep.subr.mxu1 %v6036_v2 }
 0xcfa   :  { %5396 = vmatpush3.msra.mxu1 %v4513_v31 }
 0xcfb   :  { %5397 = vmatprep.subr.mxu1 %v6036_v2 }
 0xcfc   :  { %5398 = vmatpush3.msra.mxu1 %v4512_v49 }
 0xcfd   :  { %5449 = vmatprep.subr.mxu1 %v6036_v2 }
 0xd9f   :  { %v2414_v38 = vpop.f32.mrf.mxu0  ;;  %v2314_v4 = vpop.f32.mrf.mxu1 }
 0xda0   :  { %2455 = vrot.lane.b32.xlu0 %v2414_v38, %s6038_s21 }
 0xda1   :  { %v5364_v5 = vpop.f32.mrf.mxu0  ;;  %v5341_v6 = vpop.f32.mrf.mxu1 }
 0xda3   :  { %v2419_v7 = vpop.f32.mrf.mxu0  ;;  %v2319_v8 = vpop.f32.mrf.mxu1 }
 0xda4   :  { %2457 = vrot.lane.b32.xlu0 %v2419_v7, %s6038_s21 }
 0xda5   :  { %v5367_v9 = vpop.f32.mrf.mxu0  ;;  %v5344_v10 = vpop.f32.mrf.mxu1 }
 0xda7   :  { %v2424_v12 = vpop.f32.mrf.mxu0  ;;  %v2324_v13 = vpop.f32.mrf.mxu1 }
 0xda8   :  { %2459 = vrot.lane.b32.xlu0 %v2424_v12, %s6038_s21 }
 0xda9   :  { %v5370_v15 = vpop.f32.mrf.mxu0  ;;  %v5347_v16 = vpop.f32.mrf.mxu1 }
 0xdaa   :  { %v4540_v15 = vld [vmem:[%s7574_s10 + $0x50] sm:$0xff]  ;;  %v4539_v16 = vld [vmem:[%s7574_s10 + $0x48] sm:$0xff] }
 0xdab   :  { %v2429_v20 = vpop.f32.mrf.mxu0  ;;  %v2329_v43 = vpop.f32.mrf.mxu1 }
 0xdac   :  { %2461 = vrot.lane.b32.xlu0 %v2429_v20, %s6038_s21  ;;  %v4538_v20 = vld [vmem:[%s7574_s10 + $0x40] sm:$0xff] }
 0xdad   :  { %v5373_v11 = vpop.f32.mrf.mxu0  ;;  %v5350_v3 = vpop.f32.mrf.mxu1 }
 0xdaf   :  { %v2434_v35 = vpop.f32.mrf.mxu0  ;;  %v2334_v23 = vpop.f32.mrf.mxu1 }
 0xdb0   :  { %2463 = vrot.lane.b32.xlu0 %v2434_v35, %s6038_s21  ;;  %v4530_v35 = vld [vmem:[%s7573_s9 + $0x2] ss:$0 sm:$0xff] }
 0xdb1   :  { %v5376_v14 = vpop.f32.mrf.mxu0  ;;  %v5353_v32 = vpop.f32.mrf.mxu1 }
 0xdb3   :  { %v2439_v36 = vpop.f32.mrf.mxu0  ;;  %v2339_v58 = vpop.f32.mrf.mxu1 }
 0xdb4   :  { %2465 = vrot.lane.b32.xlu1 %v2439_v36, %s6038_s21 }
 0xdb5   :  { %v5379_v46 = vpop.f32.mrf.mxu0  ;;  %v5356_v17 = vpop.f32.mrf.mxu1 }
 0xdb7   :  { %v2444_v48 = vpop.f32.mrf.mxu0  ;;  %v2344_v21 = vpop.f32.mrf.mxu1 }
 0xdb8   :  { %2467 = vrot.lane.b32.xlu0 %v2444_v48, %s6038_s21 }
 0xdb9   :  { %v5382_v25 = vpop.f32.mrf.mxu0  ;;  %v5359_v40 = vpop.f32.mrf.mxu1 }
 0xe12   :  { %v2456_v27 = vpop.permute.xlu0 %2455 }
 0xe13   :  { %v2476_v30 = vsel %vm675_vm4, %v2314_v4, %v2456_v27 }
 0xe14   :  { %5400 = vmatmul.mubr.msk.f32.vlgmr.msra.gmra.mxu1 %vm705_vm5, %v2476_v30 }
 0xe15   :  { %5402 = vmatprep.mubr.msk.f32.mxu1 %vm6037_vm1, %v6036_v2 }
 0xe16   :  { %v2458_v45 = vpop.permute.xlu0 %2457 }
 0xe17   :  { %v2477_v31 = vsel %vm675_vm4, %v2319_v8, %v2458_v45 }
 0xe18   :  { %5403 = vmatmul.mubr.msk.f32.gmra.mxu1 %vm705_vm5, %v2477_v31 }
 0xe19   :  { %5405 = vmatprep.mubr.msk.f32.mxu1 %vm6037_vm1, %v6036_v2 }
 0xe1a   :  { %v2460_v49 = vpop.permute.xlu0 %2459 }
 0xe1b   :  { %v2478_v38 = vsel %vm675_vm4, %v2324_v13, %v2460_v49  ;;  %v4541_v13 = vld [vmem:[%s7574_s10 + $0x58] sm:$0xff] }
 0xe1c   :  { %5406 = vmatmul.mubr.msk.f32.gmra.mxu1 %vm705_vm5, %v2478_v38  ;;  %5421 = vmatpush3.msra.mxu0 %v4541_v13 }
 0xe1d   :  { %5408 = vmatprep.mubr.msk.f32.mxu1 %vm6037_vm1, %v6036_v2  ;;  %5422 = vmatprep.subr.mxu0 %v6036_v2 }
 0xe1e   :  { %v2462_v4 = vpop.permute.xlu0 %2461  ;;  %5423 = vmatpush3.msra.mxu0 %v4540_v15 }
 0xe1f   :  { %v2479_v5 = vsel %vm675_vm4, %v2329_v43, %v2462_v4  ;;  %5424 = vmatprep.subr.mxu0 %v6036_v2  ;;  %v4521_v43 = vld [vmem:[%s7572_s8 + $0x2] ss:$0 sm:$0xff] }
 0xe20   :  { %5409 = vmatmul.mubr.msk.f32.gmra.mxu1 %vm705_vm5, %v2479_v5  ;;  %5425 = vmatpush3.msra.mxu0 %v4539_v16  ;;  %v2500_v11 = vmul.f32 %v4521_v43, %v6483_v39  ;;  %v2501_v36 = vmul.f32 %v4521_v43, %v6488_v41  ;;  %v2502_v25 = vmul.f32 %v4521_v43, %v6497_v52 }
 0xe21   :  { %5411 = vmatprep.mubr.msk.f32.mxu1 %vm6037_vm1, %v6036_v2  ;;  %5426 = vmatprep.subr.mxu0 %v6036_v2  ;;  %v2503_v49 = vmul.f32 %v4521_v43, %v6503_v60  ;;  %v2505_v16 = vmul.f32 %v4521_v43, %v6510_v28 }
 0xe22   :  { %v2464_v6 = vpop.permute.xlu0 %2463  ;;  %5427 = vmatpush3.msra.mxu0 %v4538_v20 }
 0xe23   :  { %v2480_v7 = vsel %vm675_vm4, %v2334_v23, %v2464_v6  ;;  %5466 = vmatprep.subr.mxu0 %v6036_v2 }
 0xe24   :  { %5412 = vmatmul.mubr.msk.f32.gmra.mxu1 %vm705_vm5, %v2480_v7 }
 0xe25   :  { %5414 = vmatprep.mubr.msk.f32.mxu1 %vm6037_vm1, %v6036_v2 }
 0xe26   :  { %v2466_v8 = vpop.permute.xlu1 %2465 }
 0xe27   :  { %v2481_v9 = vsel %vm675_vm4, %v2339_v58, %v2466_v8  ;;  %v2504_v8 = vmul.f32 %v4521_v43, %v6507_v19 }
 0xe28   :  { %5415 = vmatmul.mubr.msk.f32.gmra.mxu1 %vm705_vm5, %v2481_v9 }
 0xe29   :  { %5417 = vmatprep.mubr.msk.f32.mxu1 %vm6037_vm1, %v6036_v2 }
 0xe2a   :  { %v2468_v10 = vpop.permute.xlu0 %2467 }
 0xe2b   :  { %v2482_v12 = vsel %vm675_vm4, %v2344_v21, %v2468_v10 }
 0xe2c   :  { %5418 = vmatmul.mubr.msk.f32.gmra.mxu1 %vm705_vm5, %v2482_v12 }
 0xe2d   :  { %5463 = vmatprep.mubr.msk.f32.mxu1 %vm6037_vm1, %v6036_v2 }
 0xed4   :  { %v2594_v3 = vpop.f32.mrf.mxu1 }
 0xed5   :  { %v2595_v23 = vadd.f32 %v2594_v3, %v2500_v11 }
 0xed6   :  { %v5401_v14 = vpop.f32.mrf.mxu1 }
 0xed7   :  { %v2636_v32 = vadd.f32 %v4530_v35, %v2595_v23 }
 0xed8   :  { %v2599_v58 = vpop.f32.mrf.mxu1 }
 0xed9   :  { %v4531_v46 = vmul.f32 -1.442695, %v2636_v32  ;;  %v2600_v17 = vadd.f32 %v2599_v58, %v2501_v36 }
 0xeda   :  { %v5404_v48 = vpop.f32.mrf.mxu1 }
 0xedb   :  { %5829 = vpow2.f32 %v4531_v46  ;;  %v2637_v21 = vadd.f32 %v4530_v35, %v2600_v17  ;;  %v2506_v46 = vmul.f32 %v4521_v43, %v6513_v37 }
 0xedc   :  { %v2604_v40 = vpop.f32.mrf.mxu1 }
 0xedd   :  { %v4532_v27 = vmul.f32 -1.442695, %v2637_v21  ;;  %v2605_v30 = vadd.f32 %v2604_v40, %v2502_v25 }
 0xede   :  { %v5407_v45 = vpop.f32.mrf.mxu1 }
 0xedf   :  { %5831 = vpow2.f32 %v4532_v27  ;;  %v2638_v31 = vadd.f32 %v4530_v35, %v2605_v30 }
 0xee0   :  { %v2609_v38 = vpop.f32.mrf.mxu1 }
 0xee1   :  { %v4533_v4 = vmul.f32 -1.442695, %v2638_v31  ;;  %v2610_v5 = vadd.f32 %v2609_v38, %v2503_v49 }
 0xee2   :  { %v5410_v6 = vpop.f32.mrf.mxu1 }
 0xee3   :  { %5833 = vpow2.f32 %v4533_v4  ;;  %v2639_v7 = vadd.f32 %v4530_v35, %v2610_v5 }
 0xee4   :  { %v2614_v9 = vpop.f32.mrf.mxu1 }
 0xee5   :  { %v4534_v10 = vmul.f32 -1.442695, %v2639_v7  ;;  %v2615_v12 = vadd.f32 %v2614_v9, %v2504_v8 }
 0xee6   :  { %v5413_v13 = vpop.f32.mrf.mxu1 }
 0xee7   :  { %5835 = vpow2.f32 %v4534_v10  ;;  %v2640_v15 = vadd.f32 %v4530_v35, %v2615_v12 }
 0xee8   :  { %v5830_v20 = vpop.eup %5829  ;;  %v2619_v11 = vpop.f32.mrf.mxu1 }
 0xee9   :  { %v2664_v3 = vadd.f32 1.0, %v5830_v20  ;;  %v4535_v23 = vmul.f32 -1.442695, %v2640_v15  ;;  %v2620_v14 = vadd.f32 %v2619_v11, %v2505_v16 }
 0xeea   :  { %v5416_v36 = vpop.f32.mrf.mxu1 }
 0xeeb   :  { %5837 = vrcp.f32 %v2664_v3  ;;  %v2641_v58 = vadd.f32 %v4530_v35, %v2620_v14 }
 0xeec   :  { %v5832_v17 = vpop.eup %5831  ;;  %5839 = vpow2.f32 %v4535_v23  ;;  %v2624_v48 = vpop.f32.mrf.mxu1 }
 0xeed   :  { %v2665_v25 = vadd.f32 1.0, %v5832_v17  ;;  %v4536_v40 = vmul.f32 -1.442695, %v2641_v58  ;;  %v2625_v27 = vadd.f32 %v2624_v48, %v2506_v46 }
 0xeee   :  { %v5419_v30 = vpop.f32.mrf.mxu1 }
 0xeef   :  { %5841 = vrcp.f32 %v2665_v25  ;;  %v2642_v45 = vadd.f32 %v4530_v35, %v2625_v27 }
 0xef0   :  { %v5834_v49 = vpop.eup %5833  ;;  %5843 = vpow2.f32 %v4536_v40 }
 0xef1   :  { %v2666_v38 = vadd.f32 1.0, %v5834_v49  ;;  %v4537_v4 = vmul.f32 -1.442695, %v2642_v45 }
 0xef3   :  { %5845 = vrcp.f32 %v2666_v38 }
 0xef4   :  { %v5836_v5 = vpop.eup %5835  ;;  %5847 = vpow2.f32 %v4537_v4  ;;  %v4543_v4 = vld [vmem:[%s7575_s11 + $0x2] ss:$0 sm:$0xff] }
 0xef5   :  { %v2667_v6 = vadd.f32 1.0, %v5836_v5 }
 0xef7   :  { %5849 = vrcp.f32 %v2667_v6 }
 0xef8   :  { %v5838_v8 = vpop.eup %5837 }
 0xef9   :  { %v5840_v43 = vpop.eup %5839  ;;  %v2685_v9 = vmul.f32 %v5838_v8, %v2636_v32 }
 0xefa   :  { %v2668_v10 = vadd.f32 1.0, %v5840_v43 }
 0xefb   :  { %5429 = vmatmul.mubr.msk.f32.vlgmr.msra.gmra.mxu0 %vm675_vm4, %v2685_v9 }
 0xefc   :  { %v5842_v12 = vpop.eup %5841  ;;  %5851 = vrcp.f32 %v2668_v10  ;;  %5431 = vmatprep.mubr.msk.f32.mxu0 %vm6037_vm1, %v6036_v2 }
 0xefd   :  { %v5844_v35 = vpop.eup %5843  ;;  %v2686_v13 = vmul.f32 %v5842_v12, %v2637_v21 }
 0xefe   :  { %v2669_v16 = vadd.f32 1.0, %v5844_v35 }
 0xeff   :  { %5432 = vmatmul.mubr.msk.f32.gmra.mxu0 %vm675_vm4, %v2686_v13 }
 0xf00   :  { %v5846_v20 = vpop.eup %5845  ;;  %5853 = vrcp.f32 %v2669_v16  ;;  %5434 = vmatprep.mubr.msk.f32.mxu0 %vm6037_vm1, %v6036_v2 }
 0xf01   :  { %v5848_v11 = vpop.eup %5847  ;;  %v2687_v32 = vmul.f32 %v5846_v20, %v2638_v31 }
 0xf02   :  { %v2670_v3 = vadd.f32 1.0, %v5848_v11 }
 0xf03   :  { %5435 = vmatmul.mubr.msk.f32.gmra.mxu0 %vm675_vm4, %v2687_v32 }
 0xf04   :  { %v5850_v23 = vpop.eup %5849  ;;  %5855 = vrcp.f32 %v2670_v3  ;;  %5437 = vmatprep.mubr.msk.f32.mxu0 %vm6037_vm1, %v6036_v2 }
 0xf05   :  { %v2688_v14 = vmul.f32 %v5850_v23, %v2639_v7 }
 0xf07   :  { %5438 = vmatmul.mubr.msk.f32.gmra.mxu0 %vm675_vm4, %v2688_v14 }
 0xf08   :  { %5440 = vmatprep.mubr.msk.f32.mxu0 %vm6037_vm1, %v6036_v2 }
 0xf09   :  { %v5852_v21 = vpop.eup %5851 }
 0xf0a   :  { %v2689_v36 = vmul.f32 %v5852_v21, %v2640_v15 }
 0xf0c   :  { %5441 = vmatmul.mubr.msk.f32.gmra.mxu0 %vm675_vm4, %v2689_v36 }
 0xf0d   :  { %v5854_v46 = vpop.eup %5853  ;;  %5443 = vmatprep.mubr.msk.f32.mxu0 %vm6037_vm1, %v6036_v2 }
 0xf0e   :  { %v2690_v31 = vmul.f32 %v5854_v46, %v2641_v58 }
 0xf10   :  { %5444 = vmatmul.mubr.msk.f32.gmra.mxu0 %vm675_vm4, %v2690_v31 }
 0xf11   :  { %v5856_v17 = vpop.eup %5855  ;;  %5446 = vmatprep.mubr.msk.f32.mxu0 %vm6037_vm1, %v6036_v2 }
 0xf12   :  { %v2691_v7 = vmul.f32 %v5856_v17, %v2642_v45 }
 0xf14   :  { %5447 = vmatmul.mubr.msk.f32.gmra.mxu0 %vm675_vm4, %v2691_v7 }
 0xf15   :  { %5482 = vmatprep.mubr.msk.f32.mxu0 %vm6037_vm1, %v6036_v2 }
 0xfbb   :  { %v2792_v15 = vpop.f32.mrf.mxu0 }
 0xfbc   :  { %v2793_v3 = vadd.f32 %v4543_v4, %v2792_v15 }
 0xfbd   :  { %v5430_v48 = vpop.f32.mrf.mxu0 }
 0xfbe   :  { %v4551_v36 = vmul.f32 -1.442695, %v2793_v3 }
 0xfbf   :  { %v2797_v25 = vpop.f32.mrf.mxu0 }
 0xfc0   :  { %v2798_v20 = vadd.f32 %v4543_v4, %v2797_v25 }
 0xfc1   :  { %v5433_v40 = vpop.f32.mrf.mxu0 }
 0xfc2   :  { %v4552_v21 = vmul.f32 -1.442695, %v2798_v20 }
 0xfc3   :  { %v2802_v27 = vpop.f32.mrf.mxu0 }
 0xfc4   :  { %v2803_v10 = vadd.f32 %v4543_v4, %v2802_v27 }
 0xfc5   :  { %v5436_v30 = vpop.f32.mrf.mxu0 }
 0xfc6   :  { %v4553_v23 = vmul.f32 -1.442695, %v2803_v10 }
 0xfc7   :  { %v2807_v49 = vpop.f32.mrf.mxu0 }
 0xfc8   :  { %v2808_v6 = vadd.f32 %v4543_v4, %v2807_v49 }
 0xfc9   :  { %v5439_v58 = vpop.f32.mrf.mxu0 }
 0xfca   :  { %v4554_v13 = vmul.f32 -1.442695, %v2808_v6 }
 0xfcc   :  { %v2812_v38 = vpop.f32.mrf.mxu0 }
 0xfcd   :  { %v2813_v45 = vadd.f32 %v4543_v4, %v2812_v38 }
 0xfce   :  { %v5442_v5 = vpop.f32.mrf.mxu0 }
 0xfcf   :  { %v4555_v12 = vmul.f32 -1.442695, %v2813_v45 }
 0xfd0   :  { %v2817_v8 = vpop.f32.mrf.mxu0 }
 0xfd1   :  { %v2818_v43 = vadd.f32 %v4543_v4, %v2817_v8 }
 0xfd2   :  { %v5445_v9 = vpop.f32.mrf.mxu0 }
 0xfd3   :  { %v4556_v35 = vmul.f32 -1.442695, %v2818_v43 }
 0xfd4   :  { %v2822_v16 = vpop.f32.mrf.mxu0 }
 0xfd5   :  { %5857 = vpow2.f32 %v4556_v35  ;;  %v2823_v11 = vadd.f32 %v4543_v4, %v2822_v16 }
 0xfd6   :  { %v5448_v32 = vpop.f32.mrf.mxu0  ;;  %5859 = vpow2.f32 %v4555_v12 }
 0xfd7   :  { %v4557_v14 = vmul.f32 -1.442695, %v2823_v11  ;;  %5861 = vpow2.f32 %v4554_v13 }
 0xfd9   :  { %5863 = vpow2.f32 %v4557_v14 }
 0xfda   :  { %5865 = vpow2.f32 %v4553_v23 }
 0xfdb   :  { %5867 = vpow2.f32 %v4552_v21 }
 0xfdc   :  { %5869 = vpow2.f32 %v4551_v36 }
 0xfe2   :  { %v5858_v46 = vpop.eup %5857 }
 0xfe3   :  { %v5860_v31 = vpop.eup %5859  ;;  %v2852_v17 = vadd.f32 1.0, %v5858_v46  ;;  %v4561_v46 = vld [vmem:[%s7576_s12 + $0x90] sm:$0xff] }
 0xfe4   :  { %v5862_v7 = vpop.eup %5861  ;;  %v2851_v25 = vadd.f32 1.0, %v5860_v31  ;;  %v4560_v31 = vld [vmem:[%s7576_s12 + $0x88] sm:$0xff] }
 0xfe5   :  { %5871 = vrcp.f32 %v2852_v17  ;;  %v2850_v15 = vadd.f32 1.0, %v5862_v7  ;;  %v4559_v17 = vld [vmem:[%s7576_s12 + $0x80] sm:$0xff] }
 0xfe6   :  { %v5864_v48 = vpop.eup %5863 }
 0xfe7   :  { %v2853_v40 = vadd.f32 1.0, %v5864_v48  ;;  %v5866_v27 = vpop.eup %5865 }
 0xfe8   :  { %v5868_v30 = vpop.eup %5867  ;;  %v2849_v49 = vadd.f32 1.0, %v5866_v27  ;;  %v4574_v27 = vld [vmem:[%s7578_s14 + $0x58] sm:$0xff] }
 0xfe9   :  { %5873 = vrcp.f32 %v2853_v40  ;;  %v5870_v58 = vpop.eup %5869  ;;  %v2848_v38 = vadd.f32 1.0, %v5868_v30  ;;  %v4572_v30 = vld [vmem:[%s7578_s14 + $0x48] sm:$0xff] }
 0xfea   :  { %5875 = vrcp.f32 %v2851_v25  ;;  %v2847_v4 = vadd.f32 1.0, %v5870_v58  ;;  %v4568_v58 = vld [vmem:[%s7577_s13 + $0x2] ss:$0 sm:$0xff] }
 0xfeb   :  { %5877 = vrcp.f32 %v2850_v15  ;;  %v4573_v15 = vld [vmem:[%s7578_s14 + $0x50] sm:$0xff] }
 0xfec   :  { %5879 = vrcp.f32 %v2849_v49  ;;  %v4571_v49 = vld [vmem:[%s7578_s14 + $0x40] sm:$0xff] }
 0xfed   :  { %5881 = vrcp.f32 %v2848_v38 }
 0xfee   :  { %5883 = vrcp.f32 %v2847_v4 }
 0xff2   :  { %v5872_v5 = vpop.eup %5871 }
 0xff3   :  { %v2873_v35 = vmul.f32 %v5872_v5, %v2818_v43 }
 0xff6   :  { %v5874_v8 = vpop.eup %5873 }
 0xff7   :  { %v2874_v9 = vmul.f32 %v5874_v8, %v2823_v11  ;;  %v5876_v12 = vpop.eup %5875 }
 0xff8   :  { %v5878_v13 = vpop.eup %5877  ;;  %v2872_v16 = vmul.f32 %v5876_v12, %v2813_v45  ;;  %v4566_v45 = vld [vmem:[%s7576_s12 + $0xb8] sm:$0xff] }
 0xff9   :  { %5450 = vmatpush3.msra.mxu1 %v2874_v9  ;;  %v5880_v32 = vpop.eup %5879  ;;  %v2871_v23 = vmul.f32 %v5878_v13, %v2808_v6  ;;  %v4565_v6 = vld [vmem:[%s7576_s12 + $0xb0] sm:$0xff]  ;;  %5467 = vmatpush3.msra.mxu0 %v4566_v45 }
 0xffa   :  { %5451 = vmatprep.subr.mxu1 %v6036_v2  ;;  %v5882_v14 = vpop.eup %5881  ;;  %v2870_v21 = vmul.f32 %v5880_v32, %v2803_v10  ;;  %5468 = vmatprep.subr.mxu0 %v6036_v2  ;;  %v4564_v10 = vld [vmem:[%s7576_s12 + $0xa8] sm:$0xff] }
 0xffb   :  { %5452 = vmatpush3.msra.mxu1 %v2873_v35  ;;  %v5884_v36 = vpop.eup %5883  ;;  %v2869_v43 = vmul.f32 %v5882_v14, %v2798_v20  ;;  %5469 = vmatpush3.msra.mxu0 %v4565_v6  ;;  %v4563_v20 = vld [vmem:[%s7576_s12 + $0xa0] sm:$0xff] }
 0xffc   :  { %5453 = vmatprep.subr.mxu1 %v6036_v2  ;;  %v2868_v11 = vmul.f32 %v5884_v36, %v2793_v3  ;;  %5470 = vmatprep.subr.mxu0 %v6036_v2  ;;  %v4562_v3 = vld [vmem:[%s7576_s12 + $0x98] sm:$0xff] }
 0xffd   :  { %5454 = vmatpush3.msra.mxu1 %v2872_v16  ;;  %5471 = vmatpush3.msra.mxu0 %v4564_v10  ;;  %v4576_v16 = vld [vmem:[%s7579_s15 + $0x2] ss:$0 sm:$0xff] }
 0xffe   :  { %5455 = vmatprep.subr.mxu1 %v6036_v2  ;;  %5472 = vmatprep.subr.mxu0 %v6036_v2 }
 0xfff   :  { %5456 = vmatpush3.msra.mxu1 %v2871_v23  ;;  %5473 = vmatpush3.msra.mxu0 %v4563_v20 }
0x1000   :  { %5457 = vmatprep.subr.mxu1 %v6036_v2  ;;  %5474 = vmatprep.subr.mxu0 %v6036_v2 }
0x1001   :  { %5458 = vmatpush3.msra.mxu1 %v2870_v21  ;;  %5475 = vmatpush3.msra.mxu0 %v4562_v3 }
0x1002   :  { %5459 = vmatprep.subr.mxu1 %v6036_v2  ;;  %5476 = vmatprep.subr.mxu0 %v6036_v2 }
0x1003   :  { %5460 = vmatpush3.msra.mxu1 %v2869_v43  ;;  %5477 = vmatpush3.msra.mxu0 %v4561_v46 }
0x1004   :  { %5461 = vmatprep.subr.mxu1 %v6036_v2  ;;  %5478 = vmatprep.subr.mxu0 %v6036_v2 }
0x1005   :  { %5462 = vmatpush3.msra.mxu1 %v2868_v11  ;;  %5479 = vmatpush3.msra.mxu0 %v4560_v31 }
0x1006   :  { %5464 = vmatmul.mubr.msk.f32.vlgmr.msra.gmra.mxu1 %vm1103_vm6, %v6547_v63  ;;  %5485 = vmatprep.subr.mxu1 %v6036_v2 }
0x1007   :  { %5493 = vmatprep.mubr.msk.f32.mxu1 %vm6037_vm1, %v6036_v2  ;;  %5480 = vmatprep.subr.mxu0 %v6036_v2 }
0x1008   :  { %5481 = vmatpush3.msra.mxu0 %v4559_v17  ;;  %5486 = vmatpush3.msra.mxu1 %v4574_v27 }
0x1009   :  { %5496 = vmatprep.subr.mxu0 %v6036_v2  ;;  %5487 = vmatprep.subr.mxu1 %v6036_v2 }
0x100a   :  { %5488 = vmatpush3.msra.mxu1 %v4573_v15 }
0x100b   :  { %5489 = vmatprep.subr.mxu1 %v6036_v2 }
0x100c   :  { %5490 = vmatpush3.msra.mxu1 %v4572_v30 }
0x100d   :  { %5491 = vmatprep.subr.mxu1 %v6036_v2 }
0x100e   :  { %5492 = vmatpush3.msra.mxu1 %v4571_v49 }
0x100f   :  { %5519 = vmatprep.subr.mxu1 %v6036_v2 }
0x10c6   :  { %v2941_v7 = vpop.f32.mrf.mxu1 }
0x10c7   :  { %2946 = vrot.lane.b32.xlu0 %v2941_v7, %s6038_s21 }
0x10c8   :  { %v5465_v48 = vpop.f32.mrf.mxu1 }
0x1139   :  { %v2947_v25 = vpop.permute.xlu0 %2946 }
0x113a   :  { %v2949_v40 = vsel %vm675_vm4, %v6876_v53, %v2947_v25 }
0x113b   :  { %5483 = vmatmul.mubr.msk.f32.vlgmr.msra.gmra.mxu0 %vm705_vm5, %v2949_v40 }
0x113c   :  { %5498 = vmatprep.mubr.msk.f32.mxu0 %vm6037_vm1, %v6036_v2 }
0x11fb   :  { %v3036_v38 = vpop.f32.mrf.mxu0 }
0x11fc   :  { %v3037_v4 = vadd.f32 %v4568_v58, %v3036_v38 }
0x11fd   :  { %v5484_v5 = vpop.f32.mrf.mxu0 }
0x11fe   :  { %v4570_v8 = vmul.f32 -1.442695, %v3037_v4 }
0x1200   :  { %5885 = vpow2.f32 %v4570_v8 }
0x120d   :  { %v5886_v9 = vpop.eup %5885 }
0x120e   :  { %v3043_v12 = vadd.f32 1.0, %v5886_v9 }
0x1210   :  { %5887 = vrcp.f32 %v3043_v12 }
0x121d   :  { %v5888_v35 = vpop.eup %5887 }
0x121e   :  { %v3046_v13 = vmul.f32 %v5888_v35, %v3037_v4 }
0x1220   :  { %5494 = vmatmul.mubr.msk.f32.vlgmr.msra.gmra.mxu1 %vm675_vm4, %v3046_v13 }
0x1221   :  { %5521 = vmatprep.mubr.msk.f32.mxu1 %vm6037_vm1, %v6036_v2 }
0x12e0   :  { %v3129_v32 = vpop.f32.mrf.mxu1 }
0x12e1   :  { %v3130_v23 = vadd.f32 %v4576_v16, %v3129_v32 }
0x12e2   :  { %v5495_v14 = vpop.f32.mrf.mxu1 }
0x12e3   :  { %v7203_v21 = vadd.f32 %v3130_v23, %v6876_v53  ;;  %v4599_v53 = vld [vmem:[%s7571_s7 + $0xf8] sm:$0xff] }
0x12e5   :  { %5497 = vmatpush3.msra.mxu0 %v7203_v21  ;;  %5520 = vmatpush3.msra.mxu1 %v7203_v21 }
0x12e6   :  { %5522 = vmatmul.mubr.msk.f32.vlgmr.msra.gmra.mxu1 %vm169_vm3, %v6883_v26  ;;  %5499 = vmatmul.mubr.msk.f32.vlgmr.msra.gmra.mxu0 %vm169_vm3, %v6890_v22  ;;  %v4598_v26 = vld [vmem:[%s7571_s7 + $0xf0] sm:$0xff]  ;;  %v4597_v22 = vld [vmem:[%s7571_s7 + $0xe8] sm:$0xff] }
0x12e7   :  { %5524 = vmatprep.mubr.msk.f32.mxu1 %vm6037_vm1, %v6036_v2  ;;  %5501 = vmatprep.mubr.msk.f32.mxu0 %vm6037_vm1, %v6036_v2 }
0x12e8   :  { %5542 = vmatprep.subr.mxu0 %v6036_v2  ;;  %5579 = vmatprep.subr.mxu1 %v6036_v2 }
0x12e9   :  { %5543 = vmatpush3.msra.mxu0 %v4599_v53 }
0x12ea   :  { %5525 = vmatmul.mubr.msk.f32.gmra.mxu1 %vm169_vm3, %v6903_v42  ;;  %5502 = vmatmul.mubr.msk.f32.gmra.mxu0 %vm169_vm3, %v6910_v54  ;;  %v4596_v42 = vld [vmem:[%s7571_s7 + $0xe0] sm:$0xff]  ;;  %v4595_v54 = vld [vmem:[%s7571_s7 + $0xd8] sm:$0xff] }
0x12eb   :  { %5527 = vmatprep.mubr.msk.f32.mxu1 %vm6037_vm1, %v6036_v2  ;;  %5504 = vmatprep.mubr.msk.f32.mxu0 %vm6037_vm1, %v6036_v2 }
0x12ec   :  { %5544 = vmatprep.subr.mxu0 %v6036_v2 }
0x12ed   :  { %5545 = vmatpush3.msra.mxu0 %v4598_v26 }
0x12ee   :  { %5528 = vmatmul.mubr.msk.f32.gmra.mxu1 %vm169_vm3, %v6921_v56  ;;  %5505 = vmatmul.mubr.msk.f32.gmra.mxu0 %vm169_vm3, %v6928_v1  ;;  %v4594_v56 = vld [vmem:[%s7571_s7 + $0xd0] sm:$0xff]  ;;  %v4593_v1 = vld [vmem:[%s7571_s7 + $0xc8] sm:$0xff] }
0x12ef   :  { %5530 = vmatprep.mubr.msk.f32.mxu1 %vm6037_vm1, %v6036_v2  ;;  %5507 = vmatprep.mubr.msk.f32.mxu0 %vm6037_vm1, %v6036_v2 }
0x12f0   :  { %5546 = vmatprep.subr.mxu0 %v6036_v2 }
0x12f1   :  { %5547 = vmatpush3.msra.mxu0 %v4597_v22 }
0x12f2   :  { %5531 = vmatmul.mubr.msk.f32.gmra.mxu1 %vm169_vm3, %v6939_v57  ;;  %5508 = vmatmul.mubr.msk.f32.gmra.mxu0 %vm169_vm3, %v6946_v33  ;;  %v4592_v57 = vld [vmem:[%s7571_s7 + $0xc0] sm:$0xff] }
0x12f3   :  { %5533 = vmatprep.mubr.msk.f32.mxu1 %vm6037_vm1, %v6036_v2  ;;  %5510 = vmatprep.mubr.msk.f32.mxu0 %vm6037_vm1, %v6036_v2 }
0x12f4   :  { %5548 = vmatprep.subr.mxu0 %v6036_v2 }
0x12f5   :  { %5549 = vmatpush3.msra.mxu0 %v4596_v42  ;;  %v4621_v42 = vld [vmem:[%s7574_s10 + $0x78] sm:$0xff] }
0x12f6   :  { %5534 = vmatmul.mubr.msk.f32.gmra.mxu1 %vm169_vm3, %v6957_v59  ;;  %5511 = vmatmul.mubr.msk.f32.gmra.mxu0 %vm169_vm3, %v6964_v61 }
0x12f7   :  { %5536 = vmatprep.mubr.msk.f32.mxu1 %vm6037_vm1, %v6036_v2  ;;  %5513 = vmatprep.mubr.msk.f32.mxu0 %vm6037_vm1, %v6036_v2 }
0x12f8   :  { %5550 = vmatprep.subr.mxu0 %v6036_v2  ;;  %5580 = vmatpush3.msra.mxu1 %v4621_v42 }
0x12f9   :  { %5551 = vmatpush3.msra.mxu0 %v4595_v54  ;;  %5581 = vmatprep.subr.mxu1 %v6036_v2  ;;  %v4620_v54 = vld [vmem:[%s7574_s10 + $0x70] sm:$0xff] }
0x12fa   :  { %5537 = vmatmul.mubr.msk.f32.gmra.mxu1 %vm169_vm3, %v6975_v62  ;;  %5514 = vmatmul.mubr.msk.f32.gmra.mxu0 %vm169_vm3, %v6982_v51 }
0x12fb   :  { %5539 = vmatprep.mubr.msk.f32.mxu1 %vm6037_vm1, %v6036_v2  ;;  %5516 = vmatprep.mubr.msk.f32.mxu0 %vm6037_vm1, %v6036_v2 }
0x12fc   :  { %5552 = vmatprep.subr.mxu0 %v6036_v2  ;;  %5582 = vmatpush3.msra.mxu1 %v4620_v54 }
0x12fd   :  { %5553 = vmatpush3.msra.mxu0 %v4594_v56  ;;  %5583 = vmatprep.subr.mxu1 %v6036_v2  ;;  %v4619_v56 = vld [vmem:[%s7574_s10 + $0x68] sm:$0xff] }
0x12fe   :  { %5540 = vmatmul.mubr.msk.f32.gmra.mxu1 %vm169_vm3, %v6993_v0  ;;  %5517 = vmatmul.mubr.msk.f32.gmra.mxu0 %vm169_vm3, %v7000_v18 }
0x12ff   :  { %5558 = vmatprep.mubr.msk.f32.mxu0 %vm6037_vm1, %v6036_v2  ;;  %5587 = vmatprep.mubr.msk.f32.mxu1 %vm6037_vm1, %v6036_v2 }
0x1300   :  { %5554 = vmatprep.subr.mxu0 %v6036_v2  ;;  %5584 = vmatpush3.msra.mxu1 %v4619_v56 }
0x1301   :  { %5555 = vmatpush3.msra.mxu0 %v4593_v1  ;;  %5585 = vmatprep.subr.mxu1 %v6036_v2  ;;  %v4618_v1 = vld [vmem:[%s7574_s10 + $0x60] sm:$0xff] }
0x1302   :  { %5556 = vmatprep.subr.mxu0 %v6036_v2  ;;  %5586 = vmatpush3.msra.mxu1 %v4618_v1 }
0x1303   :  { %5557 = vmatpush3.msra.mxu0 %v4592_v57  ;;  %5637 = vmatprep.subr.mxu1 %v6036_v2  ;;  %v4601_v57 = vld [vmem:[%s7572_s8 + $0x3] ss:$0 sm:$0xff] }
0x1304   :  { %5608 = vmatprep.subr.mxu0 %v6036_v2 }
0x13a6   :  { %v3300_v33 = vpop.f32.mrf.mxu1  ;;  %v3200_v59 = vpop.f32.mrf.mxu0 }
0x13a7   :  { %3341 = vrot.lane.b32.xlu0 %v3300_v33, %s6038_s21  ;;  %v3386_v33 = vmul.f32 %v4601_v57, %v6483_v39 }
0x13a8   :  { %v5523_v61 = vpop.f32.mrf.mxu1  ;;  %v5500_v62 = vpop.f32.mrf.mxu0 }
0x13a9   :  { %v4610_v61 = vld [vmem:[%s7573_s9 + $0x3] ss:$0 sm:$0xff] }
0x13aa   :  { %v3305_v51 = vpop.f32.mrf.mxu1  ;;  %v3205_v0 = vpop.f32.mrf.mxu0 }
0x13ab   :  { %3343 = vrot.lane.b32.xlu0 %v3305_v51, %s6038_s21 }
0x13ac   :  { %v5526_v18 = vpop.f32.mrf.mxu1  ;;  %v5503_v36 = vpop.f32.mrf.mxu0 }
0x13ad   :  { %v3387_v18 = vmul.f32 %v4601_v57, %v6488_v41 }
0x13ae   :  { %v3310_v43 = vpop.f32.mrf.mxu1  ;;  %v3210_v11 = vpop.f32.mrf.mxu0 }
0x13af   :  { %3345 = vrot.lane.b32.xlu0 %v3310_v43, %s6038_s21 }
0x13b0   :  { %v5529_v45 = vpop.f32.mrf.mxu1  ;;  %v5506_v6 = vpop.f32.mrf.mxu0 }
0x13b2   :  { %v3315_v10 = vpop.f32.mrf.mxu1  ;;  %v3215_v20 = vpop.f32.mrf.mxu0 }
0x13b3   :  { %3347 = vrot.lane.b32.xlu0 %v3315_v10, %s6038_s21  ;;  %v3388_v10 = vmul.f32 %v4601_v57, %v6497_v52 }
0x13b4   :  { %v5532_v3 = vpop.f32.mrf.mxu1  ;;  %v5509_v46 = vpop.f32.mrf.mxu0 }
0x13b6   :  { %v3320_v31 = vpop.f32.mrf.mxu1  ;;  %v3220_v17 = vpop.f32.mrf.mxu0 }
0x13b7   :  { %3349 = vrot.lane.b32.xlu0 %v3320_v31, %s6038_s21 }
0x13b8   :  { %v5535_v7 = vpop.f32.mrf.mxu1  ;;  %v5512_v48 = vpop.f32.mrf.mxu0 }
0x13ba   :  { %v3325_v25 = vpop.f32.mrf.mxu1  ;;  %v3225_v40 = vpop.f32.mrf.mxu0 }
0x13bb   :  { %3351 = vrot.lane.b32.xlu0 %v3325_v25, %s6038_s21 }
0x13bc   :  { %v5538_v27 = vpop.f32.mrf.mxu1  ;;  %v5515_v15 = vpop.f32.mrf.mxu0 }
0x13bd   :  { %v3390_v27 = vmul.f32 %v4601_v57, %v6507_v19 }
0x13be   :  { %v3330_v30 = vpop.f32.mrf.mxu1  ;;  %v3230_v49 = vpop.f32.mrf.mxu0 }
0x13bf   :  { %3353 = vrot.lane.b32.xlu1 %v3330_v30, %s6038_s21 }
0x13c0   :  { %v5541_v58 = vpop.f32.mrf.mxu1  ;;  %v5518_v38 = vpop.f32.mrf.mxu0 }
0x13c1   :  { %v3391_v38 = vmul.f32 %v4601_v57, %v6510_v28 }
0x1419   :  { %v3342_v4 = vpop.permute.xlu0 %3341 }
0x141a   :  { %v3362_v5 = vsel %vm675_vm4, %v3200_v59, %v3342_v4 }
0x141b   :  { %5559 = vmatmul.mubr.msk.f32.vlgmr.msra.gmra.mxu0 %vm705_vm5, %v3362_v5 }
0x141c   :  { %5561 = vmatprep.mubr.msk.f32.mxu0 %vm6037_vm1, %v6036_v2 }
0x141d   :  { %v3344_v8 = vpop.permute.xlu0 %3343 }
0x141e   :  { %v3363_v9 = vsel %vm675_vm4, %v3205_v0, %v3344_v8 }
0x141f   :  { %5562 = vmatmul.mubr.msk.f32.gmra.mxu0 %vm705_vm5, %v3363_v9 }
0x1420   :  { %5564 = vmatprep.mubr.msk.f32.mxu0 %vm6037_vm1, %v6036_v2 }
0x1421   :  { %v3346_v12 = vpop.permute.xlu0 %3345 }
0x1422   :  { %v3364_v35 = vsel %vm675_vm4, %v3210_v11, %v3346_v12 }
0x1423   :  { %5565 = vmatmul.mubr.msk.f32.gmra.mxu0 %vm705_vm5, %v3364_v35 }
0x1424   :  { %5567 = vmatprep.mubr.msk.f32.mxu0 %vm6037_vm1, %v6036_v2 }
0x1425   :  { %v3348_v13 = vpop.permute.xlu0 %3347 }
0x1426   :  { %v3365_v16 = vsel %vm675_vm4, %v3215_v20, %v3348_v13  ;;  %v3392_v13 = vmul.f32 %v4601_v57, %v6513_v37 }
0x1427   :  { %5568 = vmatmul.mubr.msk.f32.gmra.mxu0 %vm705_vm5, %v3365_v16 }
0x1428   :  { %5570 = vmatprep.mubr.msk.f32.mxu0 %vm6037_vm1, %v6036_v2 }
0x1429   :  { %v3350_v32 = vpop.permute.xlu0 %3349 }
0x142a   :  { %v3366_v23 = vsel %vm675_vm4, %v3220_v17, %v3350_v32  ;;  %v3389_v17 = vmul.f32 %v4601_v57, %v6503_v60 }
0x142b   :  { %5571 = vmatmul.mubr.msk.f32.gmra.mxu0 %vm705_vm5, %v3366_v23 }
0x142c   :  { %5573 = vmatprep.mubr.msk.f32.mxu0 %vm6037_vm1, %v6036_v2 }
0x142d   :  { %v3352_v14 = vpop.permute.xlu0 %3351 }
0x142e   :  { %v3367_v53 = vsel %vm675_vm4, %v3225_v40, %v3352_v14 }
0x142f   :  { %5574 = vmatmul.mubr.msk.f32.gmra.mxu0 %vm705_vm5, %v3367_v53 }
0x1430   :  { %5576 = vmatprep.mubr.msk.f32.mxu0 %vm6037_vm1, %v6036_v2 }
0x1431   :  { %v3354_v26 = vpop.permute.xlu1 %3353 }
0x1432   :  { %v3368_v22 = vsel %vm675_vm4, %v3230_v49, %v3354_v26 }
0x1433   :  { %5577 = vmatmul.mubr.msk.f32.gmra.mxu0 %vm705_vm5, %v3368_v22 }
0x1434   :  { %5616 = vmatprep.mubr.msk.f32.mxu0 %vm6037_vm1, %v6036_v2 }
0x14db   :  { %v3480_v59 = vpop.f32.mrf.mxu0 }
0x14dc   :  { %v3481_v62 = vadd.f32 %v3480_v59, %v3386_v33 }
0x14dd   :  { %v5560_v51 = vpop.f32.mrf.mxu0 }
0x14de   :  { %v3522_v0 = vadd.f32 %v4610_v61, %v3481_v62 }
0x14df   :  { %v3485_v36 = vpop.f32.mrf.mxu0 }
0x14e0   :  { %v4611_v43 = vmul.f32 -1.442695, %v3522_v0  ;;  %v3486_v11 = vadd.f32 %v3485_v36, %v3387_v18 }
0x14e1   :  { %v5563_v45 = vpop.f32.mrf.mxu0 }
0x14e2   :  { %5889 = vpow2.f32 %v4611_v43  ;;  %v3523_v6 = vadd.f32 %v4610_v61, %v3486_v11 }
0x14e3   :  { %v3490_v20 = vpop.f32.mrf.mxu0 }
0x14e4   :  { %v4612_v39 = vmul.f32 -1.442695, %v3523_v6  ;;  %v3491_v3 = vadd.f32 %v3490_v20, %v3388_v10 }
0x14e5   :  { %v5566_v46 = vpop.f32.mrf.mxu0 }
0x14e6   :  { %5891 = vpow2.f32 %v4612_v39  ;;  %v3524_v31 = vadd.f32 %v4610_v61, %v3491_v3 }
0x14e7   :  { %v3495_v7 = vpop.f32.mrf.mxu0 }
0x14e8   :  { %v4613_v48 = vmul.f32 -1.442695, %v3524_v31  ;;  %v3496_v25 = vadd.f32 %v3495_v7, %v3389_v17  ;;  %v3763_v17 = vld [vmem:[%s7580_s16 + $0x10] sm:$0xff]  ;;  %v3762_v7 = vld [vmem:[%s7580_s16 + $0x8] sm:$0xff] }
0x14e9   :  { %v5569_v41 = vpop.f32.mrf.mxu0 }
0x14ea   :  { %5893 = vpow2.f32 %v4613_v48  ;;  %v3525_v40 = vadd.f32 %v4610_v61, %v3496_v25  ;;  %v3761_v48 = vld [vmem:[%s7580_s16] sm:$0xff] }
0x14eb   :  { %v3500_v15 = vpop.f32.mrf.mxu0  ;;  %v4623_v25 = vld [vmem:[%s7575_s11 + $0x3] ss:$0 sm:$0xff] }
0x14ec   :  { %v4614_v30 = vmul.f32 -1.442695, %v3525_v40  ;;  %v3501_v49 = vadd.f32 %v3500_v15, %v3390_v27 }
0x14ed   :  { %v5572_v52 = vpop.f32.mrf.mxu0 }
0x14ee   :  { %5895 = vpow2.f32 %v4614_v30  ;;  %v3526_v58 = vadd.f32 %v4610_v61, %v3501_v49 }
0x14ef   :  { %v5890_v4 = vpop.eup %5889  ;;  %v3505_v5 = vpop.f32.mrf.mxu0 }
0x14f0   :  { %v3550_v8 = vadd.f32 1.0, %v5890_v4  ;;  %v4615_v60 = vmul.f32 -1.442695, %v3526_v58  ;;  %v3506_v9 = vadd.f32 %v3505_v5, %v3391_v38 }
0x14f1   :  { %v5575_v12 = vpop.f32.mrf.mxu0 }
0x14f2   :  { %5897 = vrcp.f32 %v3550_v8  ;;  %v3527_v35 = vadd.f32 %v4610_v61, %v3506_v9 }
0x14f3   :  { %v5892_v16 = vpop.eup %5891  ;;  %5899 = vpow2.f32 %v4615_v60  ;;  %v3510_v19 = vpop.f32.mrf.mxu0 }
0x14f4   :  { %v3551_v32 = vadd.f32 1.0, %v5892_v16  ;;  %v4616_v23 = vmul.f32 -1.442695, %v3527_v35  ;;  %v3511_v14 = vadd.f32 %v3510_v19, %v3392_v13 }
0x14f5   :  { %v5578_v53 = vpop.f32.mrf.mxu0 }
0x14f6   :  { %5901 = vrcp.f32 %v3551_v32  ;;  %v3528_v26 = vadd.f32 %v4610_v61, %v3511_v14 }
0x14f7   :  { %v5894_v28 = vpop.eup %5893  ;;  %5903 = vpow2.f32 %v4616_v23 }
0x14f8   :  { %v3552_v22 = vadd.f32 1.0, %v5894_v28  ;;  %v4617_v42 = vmul.f32 -1.442695, %v3528_v26 }
0x14fa   :  { %5905 = vrcp.f32 %v3552_v22 }
0x14fb   :  { %v5896_v54 = vpop.eup %5895  ;;  %5907 = vpow2.f32 %v4617_v42 }
0x14fc   :  { %v3553_v56 = vadd.f32 1.0, %v5896_v54 }
0x14fe   :  { %5909 = vrcp.f32 %v3553_v56 }
0x14ff   :  { %v5898_v1 = vpop.eup %5897 }
0x1500   :  { %v5900_v37 = vpop.eup %5899  ;;  %v3571_v57 = vmul.f32 %v5898_v1, %v3522_v0 }
0x1501   :  { %v3554_v33 = vadd.f32 1.0, %v5900_v37 }
0x1502   :  { %5588 = vmatmul.mubr.msk.f32.vlgmr.msra.gmra.mxu1 %vm675_vm4, %v3571_v57 }
0x1503   :  { %v5902_v59 = vpop.eup %5901  ;;  %5911 = vrcp.f32 %v3554_v33  ;;  %5590 = vmatprep.mubr.msk.f32.mxu1 %vm6037_vm1, %v6036_v2 }
0x1504   :  { %v5904_v61 = vpop.eup %5903  ;;  %v3572_v62 = vmul.f32 %v5902_v59, %v3523_v6 }
0x1505   :  { %v3555_v51 = vadd.f32 1.0, %v5904_v61 }
0x1506   :  { %5591 = vmatmul.mubr.msk.f32.gmra.mxu1 %vm675_vm4, %v3572_v62 }
0x1507   :  { %v5906_v18 = vpop.eup %5905  ;;  %5913 = vrcp.f32 %v3555_v51  ;;  %5593 = vmatprep.mubr.msk.f32.mxu1 %vm6037_vm1, %v6036_v2 }
0x1508   :  { %v5908_v36 = vpop.eup %5907  ;;  %v3573_v0 = vmul.f32 %v5906_v18, %v3524_v31  ;;  %v3764_v31 = vld [vmem:[%s7580_s16 + $0x18] sm:$0xff] }
0x1509   :  { %v3556_v43 = vadd.f32 1.0, %v5908_v36  ;;  %5609 = vmatpush3.msra.mxu0 %v3764_v31 }
0x150a   :  { %5594 = vmatmul.mubr.msk.f32.gmra.mxu1 %vm675_vm4, %v3573_v0  ;;  %5610 = vmatprep.subr.mxu0 %v6036_v2 }
0x150b   :  { %v5910_v11 = vpop.eup %5909  ;;  %5915 = vrcp.f32 %v3556_v43  ;;  %5596 = vmatprep.mubr.msk.f32.mxu1 %vm6037_vm1, %v6036_v2  ;;  %5611 = vmatpush3.msra.mxu0 %v3763_v17 }
0x150c   :  { %v3574_v45 = vmul.f32 %v5910_v11, %v3525_v40  ;;  %5612 = vmatprep.subr.mxu0 %v6036_v2 }
0x150d   :  { %5613 = vmatpush3.msra.mxu0 %v3762_v7 }
0x150e   :  { %5597 = vmatmul.mubr.msk.f32.gmra.mxu1 %vm675_vm4, %v3574_v45  ;;  %5614 = vmatprep.subr.mxu0 %v6036_v2 }
0x150f   :  { %5599 = vmatprep.mubr.msk.f32.mxu1 %vm6037_vm1, %v6036_v2  ;;  %5615 = vmatpush3.msra.mxu0 %v3761_v48 }
0x1510   :  { %v5912_v6 = vpop.eup %5911  ;;  %5671 = vmatprep.subr.mxu0 %v6036_v2 }
0x1511   :  { %v3575_v10 = vmul.f32 %v5912_v6, %v3526_v58 }
0x1513   :  { %5600 = vmatmul.mubr.msk.f32.gmra.mxu1 %vm675_vm4, %v3575_v10 }
0x1514   :  { %v5914_v20 = vpop.eup %5913  ;;  %5602 = vmatprep.mubr.msk.f32.mxu1 %vm6037_vm1, %v6036_v2 }
0x1515   :  { %v3576_v39 = vmul.f32 %v5914_v20, %v3527_v35 }
0x1517   :  { %5603 = vmatmul.mubr.msk.f32.gmra.mxu1 %vm675_vm4, %v3576_v39 }
0x1518   :  { %v5916_v3 = vpop.eup %5915  ;;  %5605 = vmatprep.mubr.msk.f32.mxu1 %vm6037_vm1, %v6036_v2 }
0x1519   :  { %v3577_v46 = vmul.f32 %v5916_v3, %v3528_v26 }
0x151b   :  { %5606 = vmatmul.mubr.msk.f32.gmra.mxu1 %vm675_vm4, %v3577_v46 }
0x151c   :  { %5651 = vmatprep.mubr.msk.f32.mxu1 %vm6037_vm1, %v6036_v2 }
0x15c2   :  { %v3678_v41 = vpop.f32.mrf.mxu1 }
0x15c3   :  { %v3679_v40 = vadd.f32 %v4623_v25, %v3678_v41 }
0x15c4   :  { %v5589_v27 = vpop.f32.mrf.mxu1 }
0x15c5   :  { %v4631_v15 = vmul.f32 -1.442695, %v3679_v40 }
0x15c6   :  { %v3683_v30 = vpop.f32.mrf.mxu1 }
0x15c7   :  { %5917 = vpow2.f32 %v4631_v15  ;;  %v3684_v49 = vadd.f32 %v4623_v25, %v3683_v30 }
0x15c8   :  { %v5592_v52 = vpop.f32.mrf.mxu1 }
0x15c9   :  { %v4632_v58 = vmul.f32 -1.442695, %v3684_v49 }
0x15ca   :  { %v3688_v38 = vpop.f32.mrf.mxu1 }
0x15cb   :  { %5919 = vpow2.f32 %v4632_v58  ;;  %v3689_v4 = vadd.f32 %v4623_v25, %v3688_v38  ;;  %v4638_v38 = vld [vmem:[%s7581_s17] ss:$0 sm:$0xff] }
0x15cc   :  { %v5595_v5 = vpop.f32.mrf.mxu1 }
0x15cd   :  { %v4633_v8 = vmul.f32 -1.442695, %v3689_v4 }
0x15ce   :  { %v3693_v60 = vpop.f32.mrf.mxu1 }
0x15cf   :  { %5921 = vpow2.f32 %v4633_v8  ;;  %v3694_v9 = vadd.f32 %v4623_v25, %v3693_v60 }
0x15d0   :  { %v5598_v12 = vpop.f32.mrf.mxu1 }
0x15d1   :  { %v4634_v35 = vmul.f32 -1.442695, %v3694_v9 }
0x15d3   :  { %5923 = vpow2.f32 %v4634_v35  ;;  %v3698_v13 = vpop.f32.mrf.mxu1 }
0x15d4   :  { %v5918_v16 = vpop.eup %5917  ;;  %v3699_v19 = vadd.f32 %v4623_v25, %v3698_v13 }
0x15d5   :  { %v3733_v32 = vadd.f32 1.0, %v5918_v16  ;;  %v5601_v23 = vpop.f32.mrf.mxu1 }
0x15d6   :  { %v4635_v14 = vmul.f32 -1.442695, %v3699_v19 }
0x15d7   :  { %5925 = vrcp.f32 %v3733_v32  ;;  %v3703_v53 = vpop.f32.mrf.mxu1 }
0x15d8   :  { %v5920_v26 = vpop.eup %5919  ;;  %5927 = vpow2.f32 %v4635_v14  ;;  %v3704_v28 = vadd.f32 %v4623_v25, %v3703_v53 }
0x15d9   :  { %v3734_v22 = vadd.f32 1.0, %v5920_v26  ;;  %v5604_v42 = vpop.f32.mrf.mxu1 }
0x15da   :  { %v4636_v54 = vmul.f32 -1.442695, %v3704_v28 }
0x15db   :  { %5929 = vrcp.f32 %v3734_v22  ;;  %v3708_v56 = vpop.f32.mrf.mxu1 }
0x15dc   :  { %v5922_v1 = vpop.eup %5921  ;;  %5931 = vpow2.f32 %v4636_v54  ;;  %v3709_v37 = vadd.f32 %v4623_v25, %v3708_v56 }
0x15dd   :  { %v3735_v57 = vadd.f32 1.0, %v5922_v1  ;;  %v5607_v33 = vpop.f32.mrf.mxu1 }
0x15de   :  { %v4637_v59 = vmul.f32 -1.442695, %v3709_v37 }
0x15df   :  { %5933 = vrcp.f32 %v3735_v57 }
0x15e0   :  { %v5924_v61 = vpop.eup %5923  ;;  %5935 = vpow2.f32 %v4637_v59 }
0x15e1   :  { %v3736_v62 = vadd.f32 1.0, %v5924_v61 }
0x15e3   :  { %5937 = vrcp.f32 %v3736_v62 }
0x15e4   :  { %v5926_v51 = vpop.eup %5925 }
0x15e5   :  { %v5928_v18 = vpop.eup %5927  ;;  %v7401_v36 = vmul.f32 %v5926_v51, %v3679_v40 }
0x15e6   :  { %v3737_v0 = vadd.f32 1.0, %v5928_v18 }
0x15e7   :  { %5617 = vmatmul.mubr.msk.f32.vlgmr.msra.gmra.mxu0 %vm675_vm4, %v7401_v36 }
0x15e8   :  { %v5930_v43 = vpop.eup %5929  ;;  %5939 = vrcp.f32 %v3737_v0  ;;  %5619 = vmatprep.mubr.msk.f32.mxu0 %vm6037_vm1, %v6036_v2 }
0x15e9   :  { %v5932_v11 = vpop.eup %5931  ;;  %v7407_v45 = vmul.f32 %v5930_v43, %v3684_v49 }
0x15ea   :  { %v3738_v6 = vadd.f32 1.0, %v5932_v11 }
0x15eb   :  { %5620 = vmatmul.mubr.msk.f32.gmra.mxu0 %vm675_vm4, %v7407_v45 }
0x15ec   :  { %v5934_v10 = vpop.eup %5933  ;;  %5941 = vrcp.f32 %v3738_v6  ;;  %5622 = vmatprep.mubr.msk.f32.mxu0 %vm6037_vm1, %v6036_v2 }
0x15ed   :  { %v5936_v20 = vpop.eup %5935  ;;  %v7413_v39 = vmul.f32 %v5934_v10, %v3689_v4 }
0x15ee   :  { %v3739_v3 = vadd.f32 1.0, %v5936_v20 }
0x15ef   :  { %5623 = vmatmul.mubr.msk.f32.gmra.mxu0 %vm675_vm4, %v7413_v39 }
0x15f0   :  { %v5938_v46 = vpop.eup %5937  ;;  %5943 = vrcp.f32 %v3739_v3  ;;  %5625 = vmatprep.mubr.msk.f32.mxu0 %vm6037_vm1, %v6036_v2 }
0x15f1   :  { %v7419_v31 = vmul.f32 %v5938_v46, %v3694_v9 }
0x15f3   :  { %5626 = vmatmul.mubr.msk.f32.gmra.mxu0 %vm675_vm4, %v7419_v31 }
0x15f4   :  { %5628 = vmatprep.mubr.msk.f32.mxu0 %vm6037_vm1, %v6036_v2 }
0x15f5   :  { %v5940_v17 = vpop.eup %5939 }
0x15f6   :  { %v7425_v7 = vmul.f32 %v5940_v17, %v3699_v19 }
0x15f8   :  { %5629 = vmatmul.mubr.msk.f32.gmra.mxu0 %vm675_vm4, %v7425_v7 }
0x15f9   :  { %v5942_v48 = vpop.eup %5941  ;;  %5631 = vmatprep.mubr.msk.f32.mxu0 %vm6037_vm1, %v6036_v2 }
0x15fa   :  { %v7431_v25 = vmul.f32 %v5942_v48, %v3704_v28 }
0x15fc   :  { %5632 = vmatmul.mubr.msk.f32.gmra.mxu0 %vm675_vm4, %v7431_v25 }
0x15fd   :  { %v5944_v41 = vpop.eup %5943  ;;  %5634 = vmatprep.mubr.msk.f32.mxu0 %vm6037_vm1, %v6036_v2 }
0x15fe   :  { %v7437_v40 = vmul.f32 %v5944_v41, %v3709_v37 }
0x1600   :  { %5635 = vmatmul.mubr.msk.f32.gmra.mxu0 %vm675_vm4, %v7437_v40 }
0x1601   :  { %5687 = vmatprep.mubr.msk.f32.mxu0 %vm6037_vm1, %v6036_v2 }
0x16a7   :  { %v3859_v27 = vpop.f32.mrf.mxu0 }
0x16a8   :  { %v3860_v60 = vadd.f32 %v4638_v38, %v3859_v27 }
0x16a9   :  { %v5618_v15 = vpop.f32.mrf.mxu0 }
0x16aa   :  { %v4646_v13 = vmul.f32 -1.442695, %v3860_v60 }
0x16ab   :  { %v3864_v30 = vpop.f32.mrf.mxu0 }
0x16ac   :  { %v3865_v26 = vadd.f32 %v4638_v38, %v3864_v30  ;;  %v4653_v30 = vld [vmem:[%s7582_s18] ss:$0 sm:$0xff] }
0x16ad   :  { %v5621_v49 = vpop.f32.mrf.mxu0 }
0x16ae   :  { %v4647_v1 = vmul.f32 -1.442695, %v3865_v26 }
0x16af   :  { %v3869_v52 = vpop.f32.mrf.mxu0 }
0x16b0   :  { %v3870_v4 = vadd.f32 %v4638_v38, %v3869_v52 }
0x16b1   :  { %v5624_v58 = vpop.f32.mrf.mxu0 }
0x16b2   :  { %v4648_v9 = vmul.f32 -1.442695, %v3870_v4 }
0x16b3   :  { %v3874_v5 = vpop.f32.mrf.mxu0 }
0x16b4   :  { %5945 = vpow2.f32 %v4648_v9  ;;  %v3875_v19 = vadd.f32 %v4638_v38, %v3874_v5 }
0x16b5   :  { %v5627_v8 = vpop.f32.mrf.mxu0  ;;  %5947 = vpow2.f32 %v4646_v13 }
0x16b6   :  { %v4649_v28 = vmul.f32 -1.442695, %v3875_v19 }
0x16b8   :  { %v3879_v12 = vpop.f32.mrf.mxu0 }
0x16b9   :  { %v3880_v35 = vadd.f32 %v4638_v38, %v3879_v12 }
0x16ba   :  { %v5630_v16 = vpop.f32.mrf.mxu0 }
0x16bb   :  { %v4650_v32 = vmul.f32 -1.442695, %v3880_v35 }
0x16bc   :  { %v3884_v23 = vpop.f32.mrf.mxu0 }
0x16bd   :  { %v3885_v14 = vadd.f32 %v4638_v38, %v3884_v23  ;;  %5949 = vpow2.f32 %v4650_v32 }
0x16be   :  { %v5633_v53 = vpop.f32.mrf.mxu0 }
0x16bf   :  { %v4651_v22 = vmul.f32 -1.442695, %v3885_v14 }
0x16c0   :  { %v3889_v42 = vpop.f32.mrf.mxu0 }
0x16c1   :  { %5951 = vpow2.f32 %v4651_v22  ;;  %v3890_v54 = vadd.f32 %v4638_v38, %v3889_v42  ;;  %v5946_v57 = vpop.eup %5945 }
0x16c2   :  { %v5636_v56 = vpop.f32.mrf.mxu0  ;;  %5953 = vpow2.f32 %v4649_v28  ;;  %v5948_v33 = vpop.eup %5947  ;;  %v3916_v59 = vadd.f32 1.0, %v5946_v57 }
0x16c3   :  { %v4652_v37 = vmul.f32 -1.442695, %v3890_v54  ;;  %v3914_v51 = vadd.f32 1.0, %v5948_v33  ;;  %v81_v56 = vld [vmem:[%s7597_s1] sm:$0xff] }
0x16c5   :  { %5955 = vpow2.f32 %v4652_v37 }
0x16c6   :  { %5957 = vpow2.f32 %v4647_v1  ;;  %v6039_v1 = vmov 0  }
0x16c7   :  { %5959 = vrcp.f32 %v3916_v59  ;;  %5707 = vset.pattern.permute.xlu1 %v6039_v1  ;;  %5708 = vset.pattern.permute.xlu0 %v6039_v1 }
0x16ca   :  { %v5950_v61 = vpop.eup %5949 }
0x16cb   :  { %v3918_v18 = vadd.f32 1.0, %v5950_v61 }
0x16ce   :  { %v5952_v62 = vpop.eup %5951 }
0x16cf   :  { %v3919_v0 = vadd.f32 1.0, %v5952_v62  ;;  %v5954_v43 = vpop.eup %5953 }
0x16d0   :  { %v3917_v6 = vadd.f32 1.0, %v5954_v43 }
0x16d1   :  { %5961 = vrcp.f32 %v3919_v0 }
0x16d2   :  { %v5956_v11 = vpop.eup %5955  ;;  %5963 = vrcp.f32 %v3914_v51 }
0x16d3   :  { %5965 = vrcp.f32 %v3918_v18  ;;  %v3920_v10 = vadd.f32 1.0, %v5956_v11  ;;  %v5958_v20 = vpop.eup %5957  ;;  %v5991_v11 = vld [vmem:[%s7594_s26] sm:$0xff] }
0x16d4   :  { %v3915_v3 = vadd.f32 1.0, %v5958_v20  ;;  %v5960_v46 = vpop.eup %5959 }
0x16d5   :  { %5967 = vrcp.f32 %v3920_v10  ;;  %v3937_v41 = vmul.f32 %v5960_v46, %v3870_v4 }
0x16d6   :  { %5969 = vrcp.f32 %v3917_v6 }
0x16d7   :  { %5971 = vrcp.f32 %v3915_v3  ;;  %v3951_v9 = vmul.f32 %v4653_v30, %v3937_v41  ;;  %v4669_v41 = vld [vmem:[%s7578_s14 + $0x68] sm:$0xff] }
0x16d9   :  { %v3962_v4 = vsel %vm675_vm4, %v3951_v9, 0.0 }
0x16de   :  { %v5962_v17 = vpop.eup %5961 }
0x16df   :  { %v5964_v48 = vpop.eup %5963  ;;  %v3940_v27 = vmul.f32 %v5962_v17, %v3885_v14  ;;  %v4671_v17 = vld [vmem:[%s7578_s14 + $0x78] sm:$0xff] }
0x16e0   :  { %v5966_v15 = vpop.eup %5965  ;;  %v3935_v58 = vmul.f32 %v5964_v48, %v3860_v60  ;;  %v4670_v48 = vld [vmem:[%s7578_s14 + $0x70] sm:$0xff] }
0x16e1   :  { %v3954_v49 = vmul.f32 %v4653_v30, %v3940_v27  ;;  %v3939_v38 = vmul.f32 %v5966_v15, %v3880_v35  ;;  %v4668_v27 = vld [vmem:[%s7578_s14 + $0x60] sm:$0xff]  ;;  %s5992_s14 = scalar_lea.vmem %s4339_s24, 128 }
0x16e2   :  { %v5968_v52 = vpop.eup %5967  ;;  %v3949_v16 = vmul.f32 %v4653_v30, %v3935_v58  ;;  %v4665_v15 = vld [vmem:[%s7577_s13 + $0x3] ss:$0 sm:$0xff]  ;;  %p5993_p0 = scmp.ne.s32.totalorder %s4339_s24, %s5992_s14  ;;  %p5998_p2 = scmp.lt.s32.totalorder %s5992_s14, %s5992_s14 }
0x16e3   :  { %v3941_v5 = vmul.f32 %v5968_v52, %v3890_v54  ;;  %v3971_v8 = vsel %vm675_vm4, %v3954_v49, 0.0  ;;  %v5970_v12 = vpop.eup %5969  ;;  %v3953_v14 = vmul.f32 %v4653_v30, %v3939_v38 }
0x16e4   :  { %3972 = vadd.xlane.f32.xlu1 %v3971_v8  ;;  %v3938_v32 = vmul.f32 %v5970_v12, %v3875_v19  ;;  %v5972_v53 = vpop.eup %5971  ;;  %v3956_v60 = vsel %vm675_vm4, %v3949_v16, 0.0  ;;  %p5999_p3 = por %p5998_p2, %p5997_p1 }
0x16e5   :  { %v3955_v13 = vmul.f32 %v4653_v30, %v3941_v5  ;;  %v3936_v28 = vmul.f32 %v5972_v53, %v3865_v26  ;;  %v3968_v35 = vsel %vm675_vm4, %v3953_v14, 0.0 }
0x16e6   :  { %v3952_v22 = vmul.f32 %v4653_v30, %v3938_v32  ;;  %p6000_p4 = pnand %p5999_p3, %p5993_p0 }
0x16e7   :  { %v3974_v23 = vsel %vm675_vm4, %v3955_v13, 0.0  ;;  %v3950_v54 = vmul.f32 %v4653_v30, %v3936_v28 }
0x16e8   :  { %3963 = vadd.xlane.f32.xlu1 %v3962_v4  ;;  %3975 = vadd.xlane.f32.xlu0 %v3974_v23  ;;  %v3965_v42 = vsel %vm675_vm4, %v3952_v22, 0.0 }
0x16e9   :  { %v3959_v19 = vsel %vm675_vm4, %v3950_v54, 0.0 }
0x16ec   :  { %3957 = vadd.xlane.f32.xlu1 %v3956_v60  ;;  %3969 = vadd.xlane.f32.xlu0 %v3968_v35 }
0x16f0   :  { %3966 = vadd.xlane.f32.xlu0 %v3965_v42 }
0x16f4   :  { %3960 = vadd.xlane.f32.xlu0 %v3959_v19 }
0x16fd   :  { %4056 = vperm.xlu1 %5707, %v81_v56  }
0x176d   :  { %v3973_v26 = vpop.xlane.xlu1 %3972 }
0x176e   :  { %v3982_v33 = vmul.f32 %v3973_v26, %v6368_v50 }
0x1771   :  { %v3976_v37 = vpop.xlane.xlu0 %3975  ;;  %v3964_v62 = vpop.xlane.xlu1 %3963 }
0x1772   :  { %v3983_v57 = vmul.f32 %v3976_v37, %v6370_v55  ;;  %v3979_v55 = vmul.f32 %v3964_v62, %v6330_v34  ;;  %v4661_v34 = vld [vmem:[%s7576_s12 + $0xe8] sm:$0xff] }
0x1774   :  { %5638 = vmatpush3.msra.mxu1 %v3983_v57 }
0x1775   :  { %5639 = vmatprep.subr.mxu1 %v6036_v2  ;;  %v3970_v59 = vpop.xlane.xlu0 %3969  ;;  %v3958_v50 = vpop.xlane.xlu1 %3957 }
0x1776   :  { %v3981_v61 = vmul.f32 %v3970_v59, %v6366_v47  ;;  %5640 = vmatpush3.msra.mxu1 %v3982_v33  ;;  %v3977_v47 = vmul.f32 %v3958_v50, %v6308_v24  ;;  %v4663_v24 = vld [vmem:[%s7576_s12 + $0xf8] sm:$0xff] }
0x1777   :  { %5641 = vmatprep.subr.mxu1 %v6036_v2  ;;  %5672 = vmatpush3.msra.mxu0 %v4663_v24 }
0x1778   :  { %5642 = vmatpush3.msra.mxu1 %v3981_v61  ;;  %5673 = vmatprep.subr.mxu0 %v6036_v2 }
0x1779   :  { %v3967_v51 = vpop.xlane.xlu0 %3966  ;;  %5643 = vmatprep.subr.mxu1 %v6036_v2 }
0x177a   :  { %v3980_v18 = vmul.f32 %v3967_v51, %v6364_v44  ;;  %v4660_v44 = vld [vmem:[%s7576_s12 + $0xe0] sm:$0xff] }
0x177c   :  { %5644 = vmatpush3.msra.mxu1 %v3980_v18 }
0x177d   :  { %5645 = vmatprep.subr.mxu1 %v6036_v2  ;;  %v3961_v0 = vpop.xlane.xlu0 %3960 }
0x177e   :  { %v3978_v43 = vmul.f32 %v3961_v0, %v6320_v29  ;;  %5646 = vmatpush3.msra.mxu1 %v3979_v55  ;;  %v4662_v29 = vld [vmem:[%s7576_s12 + $0xf0] sm:$0xff] }
0x177f   :  { %5647 = vmatprep.subr.mxu1 %v6036_v2  ;;  %5674 = vmatpush3.msra.mxu0 %v4662_v29 }
0x1780   :  { %5648 = vmatpush3.msra.mxu1 %v3978_v43  ;;  %5675 = vmatprep.subr.mxu0 %v6036_v2 }
0x1781   :  { %5649 = vmatprep.subr.mxu1 %v6036_v2  ;;  %5676 = vmatpush3.msra.mxu0 %v4661_v34 }
0x1782   :  { %5650 = vmatpush3.msra.mxu1 %v3977_v47  ;;  %5677 = vmatprep.subr.mxu0 %v6036_v2 }
0x1783   :  { %5652 = vmatmul.mubr.msk.f32.vlgmr.msra.gmra.mxu1 %vm1103_vm6, %v6547_v63  ;;  %5654 = vmatprep.subr.mxu1 %v6036_v2 }
0x1784   :  { %5655 = vmatpush3.msra.mxu1 %v7437_v40  ;;  %5668 = vmatprep.mubr.msk.f32.mxu1 %vm6037_vm1, %v6036_v2 }
0x1785   :  { %5656 = vmatprep.subr.mxu1 %v6036_v2  ;;  %5678 = vmatpush3.msra.mxu0 %v4660_v44 }
0x1786   :  { %5657 = vmatpush3.msra.mxu1 %v7431_v25  ;;  %5679 = vmatprep.subr.mxu0 %v6036_v2  ;;  %v4656_v25 = vld [vmem:[%s7576_s12 + $0xc0] sm:$0xff] }
0x1787   :  { %5658 = vmatprep.subr.mxu1 %v6036_v2 }
0x1788   :  { %5659 = vmatpush3.msra.mxu1 %v7425_v7 }
0x1789   :  { %5660 = vmatprep.subr.mxu1 %v6036_v2 }
0x178a   :  { %5661 = vmatpush3.msra.mxu1 %v7419_v31 }
0x178b   :  { %5662 = vmatprep.subr.mxu1 %v6036_v2 }
0x178c   :  { %5663 = vmatpush3.msra.mxu1 %v7413_v39  ;;  %v4057_v39 = vpop.permute.xlu1 %4056 }
0x178d   :  { %5664 = vmatprep.subr.mxu1 %v6036_v2 }
0x178e   :  { %5665 = vmatpush3.msra.mxu1 %v7407_v45  ;;  %v4657_v45 = vld [vmem:[%s7576_s12 + $0xc8] sm:$0xff] }
0x178f   :  { %5666 = vmatprep.subr.mxu1 %v6036_v2 }
0x1790   :  { %5667 = vmatpush3.msra.mxu1 %v7401_v36  ;;  %v4658_v36 = vld [vmem:[%s7576_s12 + $0xd0] sm:$0xff] }
0x1791   :  { %5669 = vmatmul.mubr.msk.f32.vlgmr.msra.gmra.mxu1 %vm1103_vm6, %v6547_v63  ;;  %5690 = vmatprep.subr.mxu1 %v6036_v2  ;;  %v4659_v63 = vld [vmem:[%s7576_s12 + $0xd8] sm:$0xff] }
0x1792   :  { %5698 = vmatprep.mubr.msk.f32.mxu1 %vm6037_vm1, %v6036_v2  ;;  %5680 = vmatpush3.msra.mxu0 %v4659_v63 }
0x1793   :  { %5681 = vmatprep.subr.mxu0 %v6036_v2  ;;  %5691 = vmatpush3.msra.mxu1 %v4671_v17 }
0x1794   :  { %5682 = vmatpush3.msra.mxu0 %v4658_v36  ;;  %5692 = vmatprep.subr.mxu1 %v6036_v2 }
0x1795   :  { %5683 = vmatprep.subr.mxu0 %v6036_v2  ;;  %5693 = vmatpush3.msra.mxu1 %v4670_v48 }
0x1796   :  { %5684 = vmatpush3.msra.mxu0 %v4657_v45  ;;  %5694 = vmatprep.subr.mxu1 %v6036_v2 }
0x1797   :  { %5685 = vmatprep.subr.mxu0 %v6036_v2  ;;  %5695 = vmatpush3.msra.mxu1 %v4669_v41 }
0x1798   :  { %5686 = vmatpush3.msra.mxu0 %v4656_v25  ;;  %5696 = vmatprep.subr.mxu1 %v6036_v2 }
0x1799   :  { %5697 = vmatpush3.msra.mxu1 %v4668_v27 }
0x1843   :  { %v4050_v31 = vpop.f32.mrf.mxu1 }
0x1844   :  { %v4059_v7 = vmul.f32 %v4057_v39, %v4050_v31 }
0x1845   :  { %v5653_v40 = vpop.f32.mrf.mxu1 }
0x1846   :  { %v4060_v6 = vadd.f32 %v5991_v11, %v4059_v7 }
0x1848   :  { %4321 = vst.msk [vmem:[#allocation4] sm:$0xff] %vm169_vm3, %v4060_v6 }
0x1851   :  { %v4127_v10 = vpop.f32.mrf.mxu1 }
0x1852   :  { %4132 = vrot.lane.b32.xlu0 %v4127_v10, %s6038_s21 }
0x1853   :  { %v5670_v20 = vpop.f32.mrf.mxu1 }
0x18c4   :  { %v4133_v3 = vpop.permute.xlu0 %4132 }
0x18c5   :  { %v4135_v46 = vsel %vm675_vm4, %v7203_v21, %v4133_v3 }
0x18c6   :  { %5688 = vmatmul.mubr.msk.f32.vlgmr.msra.gmra.mxu0 %vm705_vm5, %v4135_v46 }
0x1986   :  { %v4222_v30 = vpop.f32.mrf.mxu0 }
0x1987   :  { %v4223_v49 = vadd.f32 %v4665_v15, %v4222_v30 }
0x1988   :  { %v5689_v52 = vpop.f32.mrf.mxu0 }
0x1989   :  { %v4667_v58 = vmul.f32 -1.442695, %v4223_v49 }
0x198b   :  { %5973 = vpow2.f32 %v4667_v58 }
0x1998   :  { %v5974_v38 = vpop.eup %5973 }
0x1999   :  { %v4229_v5 = vadd.f32 1.0, %v5974_v38 }
0x199b   :  { %5975 = vrcp.f32 %v4229_v5 }
0x19a8   :  { %v5976_v8 = vpop.eup %5975 }
0x19a9   :  { %v4232_v9 = vmul.f32 %v5976_v8, %v4223_v49 }
0x19ab   :  { %5699 = vmatmul.mubr.msk.f32.vlgmr.msra.gmra.mxu1 %vm675_vm4, %v4232_v9 }
0x19ac   :  { %6003 = shalt.err (!%p6000_p4)
}
0x19ad   :  { %4341 = dma.vmem_to_hbm [thread:$0]  %s4339_s24, 128, %s7584_s20, [#allocation5]   ;;  %v4673_v2 = vld [vmem:[%s7579_s15 + $0x3] ss:$0 sm:$0xff] }
0x19ae   :  { %s6041_s9 = smov [#allocation2]  }
0x19af   :  { %s4328_s10 = sshll.u32 %s6041_s9, 4  ;;  %s4329_s10 = int_to_ptr.vmem [resolvable:$true] %s4328_s10 }
0x19b0   :  { %s6012_s3 = scalar_lea.vmem %s4329_s10, 128  ;;  %p6017_p6 = scmp.lt.s32.totalorder %s4329_s10, %s4329_s10 }
0x19b1   :  { %p6013_p5 = scmp.ne.s32.totalorder %s4329_s10, %s6012_s3  ;;  %p6018_p7 = scmp.lt.s32.totalorder %s6012_s3, %s6012_s3 }
0x19b3   :  { %p6019_p8 = por %p6018_p7, %p6017_p6 }
0x19b5   :  { %p6020_p9 = pnand %p6019_p8, %p6013_p5 }
0x1a6b   :  { %v4315_v12 = vpop.f32.mrf.mxu1 }
0x1a6c   :  { %v4316_v13 = vadd.f32 %v4673_v2, %v4315_v12 }
0x1a6d   :  { %v5700_v16 = vpop.f32.mrf.mxu1 }
0x1a6e   :  { %v4319_v32 = vadd.f32 %v4316_v13, %v7203_v21 }
0x1a70   :  { %4320 = vst.msk [vmem:[#allocation2] sm:$0xff] %vm675_vm4, %v4319_v32 }
0x1a71   :  { %6023 = shalt.err (!%p6020_p9)
}
0x1a72   :  { %4331 = dma.vmem_to_hbm [thread:$0]  %s4329_s10, 128, %s7583_s19, [#allocation3]  }
0x1a73   :  { %6032 = dma.done.wait [#allocation3], 128  }
0x1a74   :  { %6033 = vsyncadd [#allocation3], 4294967168 }
0x1a75   :  { %6034 = dma.done.wait [#allocation5], 128  }
0x1a76   :  { %6035 = vsyncadd [#allocation5], 4294967168 }
0x1a77   :  { %4348 = vsyncpa [#allocation3], 1 }
0x1a78   :  { %4349 = vsyncpa [#allocation5], 1 }

</bundles_post_ra>
